<compile_context>
chip_gen: v5e
topology: v5e:2x2
jax: 0.10.0
libtpu: 0.0.40
codegen_flags: <defaults>
</compile_context>

<pallas_src>
import functools

import jax
import jax.numpy as jnp
from jax.experimental import pallas as pl
from jax.experimental.pallas import tpu as pltpu


# ----------------------------------------------------------------------------
# helpers
# ----------------------------------------------------------------------------
def _round_up(v, m):
    return (v + m - 1) // m * m


def _gelu_exact(x):
    # PyTorch nn.GELU() default: exact erf-based GELU.
    return 0.5 * x * (1.0 + jax.lax.erf(x * 0.7071067811865476))


# ----------------------------------------------------------------------------
# Fused kernel: grid = (row_tiles, layers)
#   per layer:  x = proj(LN1(x)) + x          (attention output is dead code)
#               x = GELU(GELU(LN2(x) @ W1 + b1) @ W2 + b2) + x
# The residual stream lives in the resident output block across the layer
# axis; per-layer weights stream in (double-buffered by the Pallas pipeline).
# ----------------------------------------------------------------------------
def _transformer_kernel(x_ref, ln1g_ref, ln1b_ref, wp_ref, bp_ref,
                        ln2g_ref, ln2b_ref, w1_ref, b1_ref, w2_ref, b2_ref,
                        o_ref, *, d_valid, eps=1e-5):
    layer = pl.program_id(1)

    @pl.when(layer == 0)
    def _():
        o_ref[...] = x_ref[...]

    x = o_ref[...]

    # Lane mask for the padded feature axis: LayerNorm statistics only use the
    # first d_valid lanes.  Padded lanes are zero on entry and stay zero.
    lane = jax.lax.broadcasted_iota(jnp.int32, x.shape, dimension=1)
    valid = lane < d_valid
    inv_d = 1.0 / float(d_valid)

    def layer_norm(v, g, b):
        mean = jnp.sum(v, axis=-1, keepdims=True) * inv_d
        centered = jnp.where(valid, v - mean, 0.0)
        var = jnp.sum(centered * centered, axis=-1, keepdims=True) * inv_d
        return centered * jax.lax.rsqrt(var + eps) * g + b

    # --- "attention" sub-layer:  proj(norm1(x)) + x -------------------------
    h = layer_norm(x, ln1g_ref[0], ln1b_ref[0])
    x = x + jnp.dot(h, wp_ref[0], preferred_element_type=jnp.float32) + bp_ref[0]

    # --- MLP sub-layer: Linear -> GELU -> Linear -> GELU (dropout = id) -----
    h = layer_norm(x, ln2g_ref[0], ln2b_ref[0])
    h = _gelu_exact(jnp.dot(h, w1_ref[0], preferred_element_type=jnp.float32) + b1_ref[0])
    h = _gelu_exact(jnp.dot(h, w2_ref[0], preferred_element_type=jnp.float32) + b2_ref[0])
    o_ref[...] = x + h


# ----------------------------------------------------------------------------
# wrapper: padding glue + pallas_call
# ----------------------------------------------------------------------------
def _pad_params(p, d_pad, h_pad):
    def vec(a, n):      # (L, n_logical) -> (L, 1, n_pad)
        return jnp.pad(a, ((0, 0), (0, n - a.shape[-1])))[:, None, :]

    def mat(a, r, c):   # (L, r_logical, c_logical) -> (L, r, c)
        return jnp.pad(a, ((0, 0), (0, r - a.shape[1]), (0, c - a.shape[2])))

    return dict(
        ln1_g=vec(p["ln1_g"], d_pad), ln1_b=vec(p["ln1_b"], d_pad),
        wp=mat(p["wp"], d_pad, d_pad), bp=vec(p["bp"], d_pad),
        ln2_g=vec(p["ln2_g"], d_pad), ln2_b=vec(p["ln2_b"], d_pad),
        w1=mat(p["w1"], d_pad, h_pad), b1=vec(p["b1"], h_pad),
        w2=mat(p["w2"], h_pad, d_pad), b2=vec(p["b2"], d_pad),
    )


@functools.partial(jax.jit, static_argnames=("row_tile",))
def transformer_forward(x, params, *, row_tile=256):
    """x: [B, T, N, D] -> [B, T, N, D], matching Transformer.forward (eval)."""
    B, T, N, D = x.shape
    L, _, H = params["w1"].shape
    M = B * T * N

    d_pad = _round_up(D, 128)                 # lane-dense features
    h_pad = _round_up(H, 128)
    tm = min(row_tile, _round_up(M, 8))       # sublane-aligned row tile
    m_pad = _round_up(M, tm)

    x2 = x.reshape(M, D).astype(jnp.float32)
    x2 = jnp.pad(x2, ((0, m_pad - M), (0, d_pad - D)))
    pp = _pad_params(params, d_pad, h_pad)

    row_spec = pl.BlockSpec((tm, d_pad), lambda i, l: (i, 0))

    def wspec(shape):                          # one layer's weights per step
        return pl.BlockSpec((1,) + shape, lambda i, l: (l, 0, 0))

    out = pl.pallas_call(
        functools.partial(_transformer_kernel, d_valid=D),
        out_shape=jax.ShapeDtypeStruct((m_pad, d_pad), jnp.float32),
        grid=(m_pad // tm, L),
        in_specs=[
            row_spec,                                   # x (residual stream)
            wspec((1, d_pad)), wspec((1, d_pad)),       # ln1 gamma / beta
            wspec((d_pad, d_pad)), wspec((1, d_pad)),   # proj W / b
            wspec((1, d_pad)), wspec((1, d_pad)),       # ln2 gamma / beta
            wspec((d_pad, h_pad)), wspec((1, h_pad)),   # mlp W1 / b1
            wspec((h_pad, d_pad)), wspec((1, d_pad)),   # mlp W2 / b2
        ],
        out_specs=row_spec,
        input_output_aliases={0: 0},
        compiler_params=pltpu.CompilerParams(
            dimension_semantics=("parallel", "arbitrary")),
    )(x2, pp["ln1_g"], pp["ln1_b"], pp["wp"], pp["bp"],
      pp["ln2_g"], pp["ln2_b"], pp["w1"], pp["b1"], pp["w2"], pp["b2"])

    return out[:M, :D].reshape(B, T, N, D)


# ----------------------------------------------------------------------------
# plain-JAX reference (same dead-attention semantics) for a sanity check
# ----------------------------------------------------------------------------
def _layer_norm_ref(x, g, b, eps=1e-5):
    mean = jnp.mean(x, axis=-1, keepdims=True)
    var = jnp.mean(jnp.square(x - mean), axis=-1, keepdims=True)
    return (x - mean) * jax.lax.rsqrt(var + eps) * g + b


def transformer_reference(x, params):
    B, T, N, D = x.shape
    L = params["wp"].shape[0]
    hp = jax.lax.Precision.HIGHEST
    h = x.reshape(B * T * N, D).astype(jnp.float32)
    for l in range(L):
        y = _layer_norm_ref(h, params["ln1_g"][l], params["ln1_b"][l])
        h = h + jnp.dot(y, params["wp"][l], precision=hp) + params["bp"][l]
        y = _layer_norm_ref(h, params["ln2_g"][l], params["ln2_b"][l])
        y = _gelu_exact(jnp.dot(y, params["w1"][l], precision=hp) + params["b1"][l])
        y = _gelu_exact(jnp.dot(y, params["w2"][l], precision=hp) + params["b2"][l])
        h = h + y
    return h.reshape(B, T, N, D)


# ----------------------------------------------------------------------------
# deterministic synthetic parameters
# ----------------------------------------------------------------------------
def init_params(key, D, H, L):
    ks = jax.random.split(key, 10)

    def w(k, fan_in, shape):
        return jax.random.normal(k, shape, jnp.float32) / jnp.sqrt(float(fan_in))

    # TODO(synk): qkv Linear weights are omitted — the reference discards the
    # attention output (see faithfulness note), so they cannot affect results.
    return dict(
        ln1_g=1.0 + 0.1 * jax.random.normal(ks[0], (L, D), jnp.float32),
        ln1_b=0.05 * jax.random.normal(ks[1], (L, D), jnp.float32),
        wp=w(ks[2], D, (L, D, D)),
        bp=0.02 * jax.random.normal(ks[3], (L, D), jnp.float32),
        ln2_g=1.0 + 0.1 * jax.random.normal(ks[4], (L, D), jnp.float32),
        ln2_b=0.05 * jax.random.normal(ks[5], (L, D), jnp.float32),
        w1=w(ks[6], D, (L, D, H)),
        b1=0.02 * jax.random.normal(ks[7], (L, H), jnp.float32),
        w2=w(ks[8], H, (L, H, D)),
        b2=0.02 * jax.random.normal(ks[9], (L, D), jnp.float32),
    )


# ----------------------------------------------------------------------------
if __name__ == "__main__":
    # Small shapes consistent with Transformer.forward: x = [B, T, N, D].
    B, T, N = 2, 4, 16
    D, n_heads, expansion_factor, L = 32, 4, 4, 4
    assert D % n_heads == 0
    H = D * expansion_factor

    key = jax.random.PRNGKey(0)
    kx, kp = jax.random.split(key)
    x = jax.random.normal(kx, (B, T, N, D), jnp.float32)
    params = init_params(kp, D, H, L)

    out = transformer_forward(x, params)
    out = jax.block_until_ready(out)
    assert out.shape == (B, T, N, D) and out.dtype == jnp.float32

    ref = transformer_reference(x, params)
    max_err = float(jnp.max(jnp.abs(out - ref)))
    assert max_err < 5e-2, f"kernel/reference mismatch: {max_err}"

    print("KERNEL_OK")
</pallas_src>

<mosaic_0001>
module attributes {stable_mosaic.version = 11 : i64} {
  func.func @_transformer_kernel(%arg0: i32, %arg1: i32, %arg2: memref<128x128xf32, #tpu.memory_space<vmem>>, %arg3: memref<1x1x128xf32, #tpu.memory_space<vmem>>, %arg4: memref<1x1x128xf32, #tpu.memory_space<vmem>>, %arg5: memref<1x128x128xf32, #tpu.memory_space<vmem>>, %arg6: memref<1x1x128xf32, #tpu.memory_space<vmem>>, %arg7: memref<1x1x128xf32, #tpu.memory_space<vmem>>, %arg8: memref<1x1x128xf32, #tpu.memory_space<vmem>>, %arg9: memref<1x128x128xf32, #tpu.memory_space<vmem>>, %arg10: memref<1x1x128xf32, #tpu.memory_space<vmem>>, %arg11: memref<1x128x128xf32, #tpu.memory_space<vmem>>, %arg12: memref<1x1x128xf32, #tpu.memory_space<vmem>>, %arg13: memref<128x128xf32, #tpu.memory_space<vmem>>) attributes {dimension_semantics = [#tpu.dimension_semantics<parallel>, #tpu.dimension_semantics<arbitrary>], iteration_bounds = array<i64: 1, 4>, scalar_prefetch = 0 : i64, scratch_operands = 0 : i64, tpu.core_type = #tpu.core_type<tc>, window_params = [{transform_indices = @transform_0, window_bounds = array<i64: 128, 128>}, {transform_indices = @transform_1, window_bounds = array<i64: 1, 1, 128>}, {transform_indices = @transform_2, window_bounds = array<i64: 1, 1, 128>}, {transform_indices = @transform_3, window_bounds = array<i64: 1, 128, 128>}, {transform_indices = @transform_4, window_bounds = array<i64: 1, 1, 128>}, {transform_indices = @transform_5, window_bounds = array<i64: 1, 1, 128>}, {transform_indices = @transform_6, window_bounds = array<i64: 1, 1, 128>}, {transform_indices = @transform_7, window_bounds = array<i64: 1, 128, 128>}, {transform_indices = @transform_8, window_bounds = array<i64: 1, 1, 128>}, {transform_indices = @transform_9, window_bounds = array<i64: 1, 128, 128>}, {transform_indices = @transform_10, window_bounds = array<i64: 1, 1, 128>}, {transform_indices = @transform_11, window_bounds = array<i64: 128, 128>}]} {
    %c0_i32 = arith.constant 0 : i32
    %0 = arith.cmpi eq, %arg1, %c0_i32 : i32
    %1 = arith.extui %0 : i1 to i32
    %c0_i32_0 = arith.constant 0 : i32
    %2 = arith.cmpi ne, %1, %c0_i32_0 : i32
    scf.if %2 {
      %c0_54 = arith.constant 0 : index
      %c0_55 = arith.constant 0 : index
      %99 = vector.load %arg2[%c0_54, %c0_55] : memref<128x128xf32, #tpu.memory_space<vmem>>, vector<128x128xf32>
      %c0_56 = arith.constant 0 : index
      %c0_57 = arith.constant 0 : index
      %100 = vector.load %arg13[%c0_56, %c0_57] : memref<128x128xf32, #tpu.memory_space<vmem>>, vector<128x128xf32>
      tpu.vector_store %arg13[%c0_56, %c0_57], %99 {strides = array<i32>} : memref<128x128xf32, #tpu.memory_space<vmem>>, vector<128x128xf32>,
    } else {
    }
    %c0 = arith.constant 0 : index
    %c0_1 = arith.constant 0 : index
    %3 = vector.load %arg13[%c0, %c0_1] : memref<128x128xf32, #tpu.memory_space<vmem>>, vector<128x128xf32>
    %4 = tpu.iota {dimensions = array<i32: 1>} : vector<128x128xi32>
    %c32_i32 = arith.constant 32 : i32
    %5 = vector.broadcast %c32_i32 : i32 to vector<128x128xi32>
    %6 = arith.cmpi slt, %4, %5 : vector<128x128xi32>
    %c0_2 = arith.constant 0 : index
    %c0_3 = arith.constant 0 : index
    %c0_4 = arith.constant 0 : index
    %7 = vector.load %arg3[%c0_2, %c0_3, %c0_4] : memref<1x1x128xf32, #tpu.memory_space<vmem>>, vector<1x1x128xf32>
    %8 = vector.shape_cast %7 : vector<1x1x128xf32> to vector<1x128xf32>
    %c0_5 = arith.constant 0 : index
    %c0_6 = arith.constant 0 : index
    %c0_7 = arith.constant 0 : index
    %9 = vector.load %arg4[%c0_5, %c0_6, %c0_7] : memref<1x1x128xf32, #tpu.memory_space<vmem>>, vector<1x1x128xf32>
    %10 = vector.shape_cast %9 : vector<1x1x128xf32> to vector<1x128xf32>
    %cst = arith.constant dense<0.000000e+00> : vector<128xf32>
    %11 = vector.multi_reduction <add>, %3, %cst [1] : vector<128x128xf32> to vector<128xf32>
    %12 = vector.shape_cast %11 : vector<128xf32> to vector<128x1xf32>
    %cst_8 = arith.constant 3.125000e-02 : f32
    %13 = vector.broadcast %cst_8 : f32 to vector<128x1xf32>
    %14 = arith.mulf %12, %13 : vector<128x1xf32>
    %15 = vector.broadcast %14 : vector<128x1xf32> to vector<128x128xf32>
    %16 = arith.subf %3, %15 : vector<128x128xf32>
    %cst_9 = arith.constant 0.000000e+00 : f32
    %17 = vector.broadcast %cst_9 : f32 to vector<128x128xf32>
    %18 = arith.select %6, %16, %17 : vector<128x128xi1>, vector<128x128xf32>
    %19 = arith.mulf %18, %18 : vector<128x128xf32>
    %cst_10 = arith.constant dense<0.000000e+00> : vector<128xf32>
    %20 = vector.multi_reduction <add>, %19, %cst_10 [1] : vector<128x128xf32> to vector<128xf32>
    %21 = vector.shape_cast %20 : vector<128xf32> to vector<128x1xf32>
    %cst_11 = arith.constant 3.125000e-02 : f32
    %22 = vector.broadcast %cst_11 : f32 to vector<128x1xf32>
    %23 = arith.mulf %21, %22 : vector<128x1xf32>
    %cst_12 = arith.constant 9.99999974E-6 : f32
    %24 = vector.broadcast %cst_12 : f32 to vector<128x1xf32>
    %25 = arith.addf %23, %24 : vector<128x1xf32>
    %26 = math.rsqrt %25 : vector<128x1xf32>
    %27 = vector.broadcast %26 : vector<128x1xf32> to vector<128x128xf32>
    %28 = arith.mulf %18, %27 : vector<128x128xf32>
    %29 = vector.broadcast %8 : vector<1x128xf32> to vector<128x128xf32>
    %30 = arith.mulf %28, %29 : vector<128x128xf32>
    %31 = vector.broadcast %10 : vector<1x128xf32> to vector<128x128xf32>
    %32 = arith.addf %30, %31 : vector<128x128xf32>
    %c0_13 = arith.constant 0 : index
    %c0_14 = arith.constant 0 : index
    %c0_15 = arith.constant 0 : index
    %33 = vector.load %arg5[%c0_13, %c0_14, %c0_15] : memref<1x128x128xf32, #tpu.memory_space<vmem>>, vector<1x128x128xf32>
    %34 = vector.shape_cast %33 : vector<1x128x128xf32> to vector<128x128xf32>
    %cst_16 = arith.constant dense<0.000000e+00> : vector<128x128xf32>
    %35 = tpu.matmul %32, %34, %cst_16 {dimension_numbers = #tpu.dot_dimension_numbers<[1], [0], [0], [1], [0, 0, 1, 1], [], []>} : vector<128x128xf32>, vector<128x128xf32>, vector<128x128xf32> -> vector<128x128xf32>
    %36 = arith.addf %3, %35 : vector<128x128xf32>
    %c0_17 = arith.constant 0 : index
    %c0_18 = arith.constant 0 : index
    %c0_19 = arith.constant 0 : index
    %37 = vector.load %arg6[%c0_17, %c0_18, %c0_19] : memref<1x1x128xf32, #tpu.memory_space<vmem>>, vector<1x1x128xf32>
    %38 = vector.shape_cast %37 : vector<1x1x128xf32> to vector<1x128xf32>
    %39 = vector.broadcast %38 : vector<1x128xf32> to vector<128x128xf32>
    %40 = arith.addf %36, %39 : vector<128x128xf32>
    %c0_20 = arith.constant 0 : index
    %c0_21 = arith.constant 0 : index
    %c0_22 = arith.constant 0 : index
    %41 = vector.load %arg7[%c0_20, %c0_21, %c0_22] : memref<1x1x128xf32, #tpu.memory_space<vmem>>, vector<1x1x128xf32>
    %42 = vector.shape_cast %41 : vector<1x1x128xf32> to vector<1x128xf32>
    %c0_23 = arith.constant 0 : index
    %c0_24 = arith.constant 0 : index
    %c0_25 = arith.constant 0 : index
    %43 = vector.load %arg8[%c0_23, %c0_24, %c0_25] : memref<1x1x128xf32, #tpu.memory_space<vmem>>, vector<1x1x128xf32>
    %44 = vector.shape_cast %43 : vector<1x1x128xf32> to vector<1x128xf32>
    %cst_26 = arith.constant dense<0.000000e+00> : vector<128xf32>
    %45 = vector.multi_reduction <add>, %40, %cst_26 [1] : vector<128x128xf32> to vector<128xf32>
    %46 = vector.shape_cast %45 : vector<128xf32> to vector<128x1xf32>
    %cst_27 = arith.constant 3.125000e-02 : f32
    %47 = vector.broadcast %cst_27 : f32 to vector<128x1xf32>
    %48 = arith.mulf %46, %47 : vector<128x1xf32>
    %49 = vector.broadcast %48 : vector<128x1xf32> to vector<128x128xf32>
    %50 = arith.subf %40, %49 : vector<128x128xf32>
    %cst_28 = arith.constant 0.000000e+00 : f32
    %51 = vector.broadcast %cst_28 : f32 to vector<128x128xf32>
    %52 = arith.select %6, %50, %51 : vector<128x128xi1>, vector<128x128xf32>
    %53 = arith.mulf %52, %52 : vector<128x128xf32>
    %cst_29 = arith.constant dense<0.000000e+00> : vector<128xf32>
    %54 = vector.multi_reduction <add>, %53, %cst_29 [1] : vector<128x128xf32> to vector<128xf32>
    %55 = vector.shape_cast %54 : vector<128xf32> to vector<128x1xf32>
    %cst_30 = arith.constant 3.125000e-02 : f32
    %56 = vector.broadcast %cst_30 : f32 to vector<128x1xf32>
    %57 = arith.mulf %55, %56 : vector<128x1xf32>
    %cst_31 = arith.constant 9.99999974E-6 : f32
    %58 = vector.broadcast %cst_31 : f32 to vector<128x1xf32>
    %59 = arith.addf %57, %58 : vector<128x1xf32>
    %60 = math.rsqrt %59 : vector<128x1xf32>
    %61 = vector.broadcast %60 : vector<128x1xf32> to vector<128x128xf32>
    %62 = arith.mulf %52, %61 : vector<128x128xf32>
    %63 = vector.broadcast %42 : vector<1x128xf32> to vector<128x128xf32>
    %64 = arith.mulf %62, %63 : vector<128x128xf32>
    %65 = vector.broadcast %44 : vector<1x128xf32> to vector<128x128xf32>
    %66 = arith.addf %64, %65 : vector<128x128xf32>
    %c0_32 = arith.constant 0 : index
    %c0_33 = arith.constant 0 : index
    %c0_34 = arith.constant 0 : index
    %67 = vector.load %arg9[%c0_32, %c0_33, %c0_34] : memref<1x128x128xf32, #tpu.memory_space<vmem>>, vector<1x128x128xf32>
    %68 = vector.shape_cast %67 : vector<1x128x128xf32> to vector<128x128xf32>
    %cst_35 = arith.constant dense<0.000000e+00> : vector<128x128xf32>
    %69 = tpu.matmul %66, %68, %cst_35 {dimension_numbers = #tpu.dot_dimension_numbers<[1], [0], [0], [1], [0, 0, 1, 1], [], []>} : vector<128x128xf32>, vector<128x128xf32>, vector<128x128xf32> -> vector<128x128xf32>
    %c0_36 = arith.constant 0 : index
    %c0_37 = arith.constant 0 : index
    %c0_38 = arith.constant 0 : index
    %70 = vector.load %arg10[%c0_36, %c0_37, %c0_38] : memref<1x1x128xf32, #tpu.memory_space<vmem>>, vector<1x1x128xf32>
    %71 = vector.shape_cast %70 : vector<1x1x128xf32> to vector<1x128xf32>
    %72 = vector.broadcast %71 : vector<1x128xf32> to vector<128x128xf32>
    %73 = arith.addf %69, %72 : vector<128x128xf32>
    %cst_39 = arith.constant 5.000000e-01 : f32
    %74 = vector.broadcast %cst_39 : f32 to vector<128x128xf32>
    %75 = arith.mulf %74, %73 : vector<128x128xf32>
    %cst_40 = arith.constant 0.707106769 : f32
    %76 = vector.broadcast %cst_40 : f32 to vector<128x128xf32>
    %77 = arith.mulf %73, %76 : vector<128x128xf32>
    %78 = math.erf %77 : vector<128x128xf32>
    %cst_41 = arith.constant 1.000000e+00 : f32
    %79 = vector.broadcast %cst_41 : f32 to vector<128x128xf32>
    %80 = arith.addf %79, %78 : vector<128x128xf32>
    %81 = arith.mulf %75, %80 : vector<128x128xf32>
    %c0_42 = arith.constant 0 : index
    %c0_43 = arith.constant 0 : index
    %c0_44 = arith.constant 0 : index
    %82 = vector.load %arg11[%c0_42, %c0_43, %c0_44] : memref<1x128x128xf32, #tpu.memory_space<vmem>>, vector<1x128x128xf32>
    %83 = vector.shape_cast %82 : vector<1x128x128xf32> to vector<128x128xf32>
    %cst_45 = arith.constant dense<0.000000e+00> : vector<128x128xf32>
    %84 = tpu.matmul %81, %83, %cst_45 {dimension_numbers = #tpu.dot_dimension_numbers<[1], [0], [0], [1], [0, 0, 1, 1], [], []>} : vector<128x128xf32>, vector<128x128xf32>, vector<128x128xf32> -> vector<128x128xf32>
    %c0_46 = arith.constant 0 : index
    %c0_47 = arith.constant 0 : index
    %c0_48 = arith.constant 0 : index
    %85 = vector.load %arg12[%c0_46, %c0_47, %c0_48] : memref<1x1x128xf32, #tpu.memory_space<vmem>>, vector<1x1x128xf32>
    %86 = vector.shape_cast %85 : vector<1x1x128xf32> to vector<1x128xf32>
    %87 = vector.broadcast %86 : vector<1x128xf32> to vector<128x128xf32>
    %88 = arith.addf %84, %87 : vector<128x128xf32>
    %cst_49 = arith.constant 5.000000e-01 : f32
    %89 = vector.broadcast %cst_49 : f32 to vector<128x128xf32>
    %90 = arith.mulf %89, %88 : vector<128x128xf32>
    %cst_50 = arith.constant 0.707106769 : f32
    %91 = vector.broadcast %cst_50 : f32 to vector<128x128xf32>
    %92 = arith.mulf %88, %91 : vector<128x128xf32>
    %93 = math.erf %92 : vector<128x128xf32>
    %cst_51 = arith.constant 1.000000e+00 : f32
    %94 = vector.broadcast %cst_51 : f32 to vector<128x128xf32>
    %95 = arith.addf %94, %93 : vector<128x128xf32>
    %96 = arith.mulf %90, %95 : vector<128x128xf32>
    %97 = arith.addf %40, %96 : vector<128x128xf32>
    %c0_52 = arith.constant 0 : index
    %c0_53 = arith.constant 0 : index
    %98 = vector.load %arg13[%c0_52, %c0_53] : memref<128x128xf32, #tpu.memory_space<vmem>>, vector<128x128xf32>
    tpu.vector_store %arg13[%c0_52, %c0_53], %97 {strides = array<i32>} : memref<128x128xf32, #tpu.memory_space<vmem>>, vector<128x128xf32>,
    return
  }
  func.func @transform_0(%arg0: i32, %arg1: i32) -> (i32, i32) {
    %c0_i32 = arith.constant 0 : i32
    %c0_i32_0 = arith.constant 0 : i32
    return %arg0, %c0_i32 : i32, i32
  }
  func.func @transform_1(%arg0: i32, %arg1: i32) -> (i32, i32, i32) {
    %c0_i32 = arith.constant 0 : i32
    %c0_i32_0 = arith.constant 0 : i32
    %c0_i32_1 = arith.constant 0 : i32
    return %arg1, %c0_i32, %c0_i32_0 : i32, i32, i32
  }
  func.func @transform_2(%arg0: i32, %arg1: i32) -> (i32, i32, i32) {
    %c0_i32 = arith.constant 0 : i32
    %c0_i32_0 = arith.constant 0 : i32
    %c0_i32_1 = arith.constant 0 : i32
    return %arg1, %c0_i32, %c0_i32_0 : i32, i32, i32
  }
  func.func @transform_3(%arg0: i32, %arg1: i32) -> (i32, i32, i32) {
    %c0_i32 = arith.constant 0 : i32
    %c0_i32_0 = arith.constant 0 : i32
    %c0_i32_1 = arith.constant 0 : i32
    return %arg1, %c0_i32, %c0_i32_0 : i32, i32, i32
  }
  func.func @transform_4(%arg0: i32, %arg1: i32) -> (i32, i32, i32) {
    %c0_i32 = arith.constant 0 : i32
    %c0_i32_0 = arith.constant 0 : i32
    %c0_i32_1 = arith.constant 0 : i32
    return %arg1, %c0_i32, %c0_i32_0 : i32, i32, i32
  }
  func.func @transform_5(%arg0: i32, %arg1: i32) -> (i32, i32, i32) {
    %c0_i32 = arith.constant 0 : i32
    %c0_i32_0 = arith.constant 0 : i32
    %c0_i32_1 = arith.constant 0 : i32
    return %arg1, %c0_i32, %c0_i32_0 : i32, i32, i32
  }
  func.func @transform_6(%arg0: i32, %arg1: i32) -> (i32, i32, i32) {
    %c0_i32 = arith.constant 0 : i32
    %c0_i32_0 = arith.constant 0 : i32
    %c0_i32_1 = arith.constant 0 : i32
    return %arg1, %c0_i32, %c0_i32_0 : i32, i32, i32
  }
  func.func @transform_7(%arg0: i32, %arg1: i32) -> (i32, i32, i32) {
    %c0_i32 = arith.constant 0 : i32
    %c0_i32_0 = arith.constant 0 : i32
    %c0_i32_1 = arith.constant 0 : i32
    return %arg1, %c0_i32, %c0_i32_0 : i32, i32, i32
  }
  func.func @transform_8(%arg0: i32, %arg1: i32) -> (i32, i32, i32) {
    %c0_i32 = arith.constant 0 : i32
    %c0_i32_0 = arith.constant 0 : i32
    %c0_i32_1 = arith.constant 0 : i32
    return %arg1, %c0_i32, %c0_i32_0 : i32, i32, i32
  }
  func.func @transform_9(%arg0: i32, %arg1: i32) -> (i32, i32, i32) {
    %c0_i32 = arith.constant 0 : i32
    %c0_i32_0 = arith.constant 0 : i32
    %c0_i32_1 = arith.constant 0 : i32
    return %arg1, %c0_i32, %c0_i32_0 : i32, i32, i32
  }
  func.func @transform_10(%arg0: i32, %arg1: i32) -> (i32, i32, i32) {
    %c0_i32 = arith.constant 0 : i32
    %c0_i32_0 = arith.constant 0 : i32
    %c0_i32_1 = arith.constant 0 : i32
    return %arg1, %c0_i32, %c0_i32_0 : i32, i32, i32
  }
  func.func @transform_11(%arg0: i32, %arg1: i32) -> (i32, i32) {
    %c0_i32 = arith.constant 0 : i32
    %c0_i32_0 = arith.constant 0 : i32
    return %arg0, %c0_i32 : i32, i32
  }
}

</mosaic_0001>

<bundles_post_ra>
// kernel: transformer_forward.1
= control target key start
LH: loop header
LB: loop body
LE: loop exit
PB: predicated region body
PF: predicated region fallthrough
CT: control target
= control target key end

     0   :  { %s3605_s17 = smov 0   ;;  %s3607_s18 = smov 0   ;;  %s5641_s0 = inlined_call_operand.vmem [shape: f32[128,128], index: 0, kind: input, shape index: {}, may-alias: {0,11}]   ;;  %s5642_s1 = inlined_call_operand.vmem [shape: f32[4,1,128], index: 1, kind: input, shape index: {}]   ;;  %s5643_s2 = inlined_call_operand.vmem [shape: f32[4,1,128], index: 2, kind: input, shape index: {}]   ;;  %s5644_s3 = inlined_call_operand.vmem [shape: f32[4,128,128], index: 3, kind: input, shape index: {}]   ;;  %s5645_s4 = inlined_call_operand.vmem [shape: f32[4,1,128], index: 4, kind: input, shape index: {}]   ;;  %s5646_s5 = inlined_call_operand.vmem [shape: f32[4,1,128], index: 5, kind: input, shape index: {}]   ;;  %s5647_s6 = inlined_call_operand.vmem [shape: f32[4,1,128], index: 6, kind: input, shape index: {}]   ;;  %s5648_s7 = inlined_call_operand.vmem [shape: f32[4,128,128], index: 7, kind: input, shape index: {}]   ;;  %s5649_s8 = inlined_call_operand.vmem [shape: f32[4,1,128], index: 8, kind: input, shape index: {}]   ;;  %s5650_s9 = inlined_call_operand.vmem [shape: f32[4,128,128], index: 9, kind: input, shape index: {}]   ;;  %s5651_s10 = inlined_call_operand.vmem [shape: f32[4,1,128], index: 10, kind: input, shape index: {}]   ;;  %s5652_s11 = inlined_call_operand.vmem [shape: f32[128,128], index: 11, kind: output, shape index: {}, may-alias: {0,11}]  }
   0x1   :  { %5659 = sst [smem:[#allocation9_spill]] %s5644_s3  ;;  %s3609_s19 = smov 0  }
   0x2 LB: > { %5660 = sst [smem:[#allocation2_spill]] %s3539_s18  ;;  %s30_s20 = sadd.s32 1, %s3539_s18  ;;  %s3543_s19 = sphi %s3609_s19, %s21_s19   ;;  %s3539_s18 = sphi %s3607_s18, %s5712_s18   ;;  %s3535_s17 = sphi %s3605_s17, %s5711_s17  }
   0x3   : > { %p3262_p0 = scmp.ge.s32.totalorder %s3543_s19, 1  ;;  %p31_p1 = scmp.ge.s32.totalorder %s30_s20, 4 }
   0x4   : > { %p436_p2 = scmp.lt.s32.totalorder %s3543_s19, 5 }
   0x5   : > { %s5714_s20 = smov (%p31_p1, %s30_s20), 0 }
   0x6   : > { %5661 = sst [smem:[#allocation3_spill]] %s5714_s20  ;;  %p437_p3 = pnand %p3262_p0, %p436_p2 }
   0x8   : > { %440 = sbr.rel (%p437_p3) target bundleno = 1404 (0x57c), region = 64 }
   0xd   : > { %p518_p4 = scmp.lt.s32.totalorder %s3535_s17, 3  ;;  %s5662_s3 = sld [smem:[#allocation9_spill]] }
   0xe   : > { %p3269_p5 = scmp.ne.s32.totalorder %s3535_s17, 0 }
   0xf   : > { %s3623_s21 = scalar_select %p518_p4, %s3535_s17, 3 }
  0x10   : > { %563 = sbr.rel (%p3269_p5) target bundleno = 129 (0x81), region = 68 }
  0x11   : > { %s3306_s28 = sshll.u32 %s3623_s21, 7  ;;  %s534_s23 = scalar_lea.vmem %s5646_s5, %s3623_s21 }
  0x12   : > { %s3654_s27 = scalar_lea.vmem %s5648_s7, %s3306_s28  ;;  %s3660_s12 = scalar_lea.vmem %s5649_s8, %s3623_s21 }
  0x13   : > { %s3641_s15 = scalar_lea.vmem %s5662_s3, %s3306_s28  ;;  %s3665_s3 = scalar_lea.vmem %s5650_s9, %s3306_s28 }
  0x14   : > { %s3671_s20 = scalar_lea.vmem %s5651_s10, %s3623_s21 }
  0x15   : > { %v564_v0 = vld [vmem:[%s5641_s0] sm:$0xff]  ;;  %v565_v1 = vld [vmem:[%s5641_s0 + $0x8] sm:$0xff]  ;;  %v566_v2 = vld [vmem:[%s5641_s0 + $0x10] sm:$0xff] }
  0x16   : > { %580 = vst [vmem:[%s5652_s11] sm:$0xff] %v564_v0 }
  0x1d   : > { %v567_v3 = vld [vmem:[%s5641_s0 + $0x18] sm:$0xff] }
  0x1e   : > { %581 = vst [vmem:[%s5652_s11 + $0x8] sm:$0xff] %v565_v1 }
  0x25   : > { %v568_v4 = vld [vmem:[%s5641_s0 + $0x20] sm:$0xff] }
  0x26   : > { %582 = vst [vmem:[%s5652_s11 + $0x10] sm:$0xff] %v566_v2 }
  0x2d   : > { %v569_v5 = vld [vmem:[%s5641_s0 + $0x28] sm:$0xff] }
  0x2e   : > { %583 = vst [vmem:[%s5652_s11 + $0x18] sm:$0xff] %v567_v3 }
  0x35   : > { %v570_v6 = vld [vmem:[%s5641_s0 + $0x30] sm:$0xff] }
  0x36   : > { %584 = vst [vmem:[%s5652_s11 + $0x20] sm:$0xff] %v568_v4 }
  0x3d   : > { %v571_v7 = vld [vmem:[%s5641_s0 + $0x38] sm:$0xff] }
  0x3e   : > { %585 = vst [vmem:[%s5652_s11 + $0x28] sm:$0xff] %v569_v5 }
  0x45   : > { %v572_v8 = vld [vmem:[%s5641_s0 + $0x40] sm:$0xff] }
  0x46   : > { %586 = vst [vmem:[%s5652_s11 + $0x30] sm:$0xff] %v570_v6 }
  0x4d   : > { %v573_v9 = vld [vmem:[%s5641_s0 + $0x48] sm:$0xff] }
  0x4e   : > { %587 = vst [vmem:[%s5652_s11 + $0x38] sm:$0xff] %v571_v7 }
  0x55   : > { %v574_v10 = vld [vmem:[%s5641_s0 + $0x50] sm:$0xff] }
  0x56   : > { %588 = vst [vmem:[%s5652_s11 + $0x40] sm:$0xff] %v572_v8 }
  0x5d   : > { %v575_v11 = vld [vmem:[%s5641_s0 + $0x58] sm:$0xff] }
  0x5e   : > { %589 = vst [vmem:[%s5652_s11 + $0x48] sm:$0xff] %v573_v9 }
  0x65   : > { %v576_v12 = vld [vmem:[%s5641_s0 + $0x60] sm:$0xff] }
  0x66   : > { %590 = vst [vmem:[%s5652_s11 + $0x50] sm:$0xff] %v574_v10 }
  0x6d   : > { %v577_v13 = vld [vmem:[%s5641_s0 + $0x68] sm:$0xff] }
  0x6e   : > { %591 = vst [vmem:[%s5652_s11 + $0x58] sm:$0xff] %v575_v11 }
  0x75   : > { %v578_v14 = vld [vmem:[%s5641_s0 + $0x70] sm:$0xff] }
  0x76   : > { %592 = vst [vmem:[%s5652_s11 + $0x60] sm:$0xff] %v576_v12 }
  0x7d   : > { %v579_v15 = vld [vmem:[%s5641_s0 + $0x78] sm:$0xff] }
  0x7e   : > { %593 = vst [vmem:[%s5652_s11 + $0x68] sm:$0xff] %v577_v13 }
  0x7f   : > { %594 = vst [vmem:[%s5652_s11 + $0x70] sm:$0xff] %v578_v14 }
  0x80   : > { %595 = vst [vmem:[%s5652_s11 + $0x78] sm:$0xff] %v579_v15 }
  0x81 PF: > { %v3772_v16 = vld [vmem:[%s5652_s11 + $0x20] sm:$0xff]  ;;  %v3777_v17 = vld [vmem:[%s5652_s11 + $0x10] sm:$0xff]  ;;  %v3790_v19 = vld [vmem:[%s5652_s11 + $0x28] sm:$0xff]  ;;  %v612_v31 = vlaneseq  ;;  %s5663_s25 = scalar_lea.vmem %s5642_s1, %s3623_s21  ;;  %s5664_s18 = scalar_lea.vmem %s5643_s2, %s3623_s21 }
  0x82   : > { %v3782_v18 = vld [vmem:[%s5652_s11] sm:$0xff]  ;;  %625 = vadd.xlane.f32.xlu2 %v3772_v16  ;;  %621 = vadd.xlane.f32.xlu1 %v3777_v17  ;;  %v3795_v20 = vld [vmem:[%s5652_s11 + $0x18] sm:$0xff]  ;;  %v3800_v21 = vld [vmem:[%s5652_s11 + $0x8] sm:$0xff]  ;;  %s5679_s13 = scalar_lea.vmem %s5645_s4, %s3623_s21 }
  0x83   : > { %617 = vadd.xlane.f32.xlu0 %v3782_v18  ;;  %v3808_v22 = vld [vmem:[%s5652_s11 + $0x60] sm:$0xff]  ;;  %v3813_v23 = vld [vmem:[%s5652_s11 + $0x30] sm:$0xff]  ;;  %v3825_v25 = vld [vmem:[%s5652_s11 + $0x38] sm:$0xff]  ;;  %v3859_v32 = vand.u32 127, %v612_v31 }
  0x84   : > { %v3837_v27 = vld [vmem:[%s5652_s11 + $0x40] sm:$0xff]  ;;  %v3849_v29 = vld [vmem:[%s5652_s11 + $0x48] sm:$0xff]  ;;  %v3856_v30 = vld [vmem:[%s5652_s11 + $0x50] sm:$0xff] }
  0x85   : > { %v3820_v24 = vld [vmem:[%s5652_s11 + $0x68] sm:$0xff]  ;;  %vm614_vm0 = vcmp.lt.s32.totalorder %v3859_v32, 32 }
  0x86   : > { %v3832_v26 = vld [vmem:[%s5652_s11 + $0x70] sm:$0xff] }
  0x87   : > { %v3844_v28 = vld [vmem:[%s5652_s11 + $0x78] sm:$0xff] }
  0x8a   : > { %627 = vadd.xlane.f32.xlu2 %v3790_v19  ;;  %623 = vadd.xlane.f32.xlu1 %v3795_v20 }
  0x8b   : > { %619 = vadd.xlane.f32.xlu0 %v3800_v21 }
  0x92   : > { %641 = vadd.xlane.f32.xlu2 %v3808_v22  ;;  %629 = vadd.xlane.f32.xlu1 %v3813_v23 }
  0x9a   : > { %643 = vadd.xlane.f32.xlu2 %v3820_v24  ;;  %631 = vadd.xlane.f32.xlu1 %v3825_v25 }
  0xa2   : > { %645 = vadd.xlane.f32.xlu2 %v3832_v26  ;;  %633 = vadd.xlane.f32.xlu1 %v3837_v27 }
  0xaa   : > { %647 = vadd.xlane.f32.xlu2 %v3844_v28  ;;  %635 = vadd.xlane.f32.xlu1 %v3849_v29 }
  0xb2   : > { %637 = vadd.xlane.f32.xlu1 %v3856_v30 }
  0xf5   : > { %v626_v33 = vpop.xlane.xlu2 %625  ;;  %v622_v34 = vpop.xlane.xlu1 %621 }
  0xf6   : > { %v618_v35 = vpop.xlane.xlu0 %617  ;;  %v651_v44 = vmul.f32 0.03125, %v622_v34  ;;  %v653_v6 = vmul.f32 0.03125, %v626_v33 }
  0xf7   : > { %v649_v36 = vmul.f32 0.03125, %v618_v35 }
  0xf8   : > { %v667_v49 = vsub.f32 %v3777_v17, %v651_v44  ;;  %v669_v11 = vsub.f32 %v3772_v16, %v653_v6  ;;  %v1000_v6 = vld [vmem:[%s3641_s15 + $0x48] sm:$0xff] }
  0xf9   : > { %v665_v37 = vsub.f32 %v3782_v18, %v649_v36 }
  0xfa   : > { %v3886_v58 = vsel %vm614_vm0, %v667_v49, 0.0  ;;  %v3921_v31 = vsel %vm614_vm0, %v669_v11, 0.0  ;;  %v997_v11 = vld [vmem:[%s3641_s15 + $0x30] sm:$0xff] }
  0xfb   : > { %v3865_v38 = vsel %vm614_vm0, %v665_v37, 0.0  ;;  %v699_v63 = vmul.f32 %v3886_v58, %v3886_v58  ;;  %v701_v35 = vmul.f32 %v3921_v31, %v3921_v31 }
  0xfc   : > { %v697_v39 = vmul.f32 %v3865_v38, %v3865_v38 }
  0xfd   : > { %v628_v40 = vpop.xlane.xlu2 %627  ;;  %v624_v41 = vpop.xlane.xlu1 %623 }
  0xfe   : > { %v654_v42 = vmul.f32 0.03125, %v628_v40  ;;  %713 = vadd.xlane.f32.xlu0 %v697_v39  ;;  %v620_v43 = vpop.xlane.xlu0 %619  ;;  %v652_v57 = vmul.f32 0.03125, %v624_v41 }
  0xff   : > { %v650_v45 = vmul.f32 0.03125, %v620_v43  ;;  %v1005_v43 = vld [vmem:[%s3641_s15 + $0x70] sm:$0xff] }
 0x100   : > { %v670_v46 = vsub.f32 %v3790_v19, %v654_v42  ;;  %v668_v0 = vsub.f32 %v3795_v20, %v652_v57  ;;  %v1006_v42 = vld [vmem:[%s3641_s15 + $0x78] sm:$0xff] }
 0x101   : > { %v666_v47 = vsub.f32 %v3800_v21, %v650_v45  ;;  %1007 = vmatpush.msra.mxu0 %v1006_v42  ;;  %3309 = vmatpush.msra.mxu3 %v1006_v42 }
 0x102   : > { %v3873_v48 = vsel %vm614_vm0, %v670_v46, 0.0  ;;  %v3907_v7 = vsel %vm614_vm0, %v668_v0, 0.0 }
 0x103   : > { %v702_v50 = vmul.f32 %v3873_v48, %v3873_v48  ;;  %v3880_v51 = vsel %vm614_vm0, %v666_v47, 0.0  ;;  %v700_v10 = vmul.f32 %v3907_v7, %v3907_v7  ;;  %1008 = vmatpush.msra.mxu0 %v1005_v43  ;;  %3310 = vmatpush.msra.mxu3 %v1005_v43 }
 0x104   : > { %v698_v52 = vmul.f32 %v3880_v51, %v3880_v51 }
 0x105   : > { %723 = vadd.xlane.f32.xlu2 %v702_v50  ;;  %v642_v53 = vpop.xlane.xlu2 %641  ;;  %v630_v54 = vpop.xlane.xlu1 %629 }
 0x106   : > { %v661_v55 = vmul.f32 0.03125, %v642_v53  ;;  %v655_v56 = vmul.f32 0.03125, %v630_v54  ;;  %715 = vadd.xlane.f32.xlu0 %v698_v52 }
 0x108   : > { %v677_v59 = vsub.f32 %v3808_v22, %v661_v55  ;;  %v671_v60 = vsub.f32 %v3813_v23, %v655_v56 }
 0x10a   : > { %v3892_v61 = vsel %vm614_vm0, %v677_v59, 0.0  ;;  %v3896_v62 = vsel %vm614_vm0, %v671_v60, 0.0 }
 0x10b   : > { %v709_v1 = vmul.f32 %v3892_v61, %v3892_v61  ;;  %v703_v2 = vmul.f32 %v3896_v62, %v3896_v62 }
 0x10d   : > { %737 = vadd.xlane.f32.xlu2 %v709_v1  ;;  %v644_v3 = vpop.xlane.xlu2 %643  ;;  %725 = vadd.xlane.f32.xlu1 %v703_v2  ;;  %v632_v4 = vpop.xlane.xlu1 %631 }
 0x10e   : > { %v662_v5 = vmul.f32 0.03125, %v644_v3  ;;  %717 = vadd.xlane.f32.xlu0 %v699_v63  ;;  %v656_v44 = vmul.f32 0.03125, %v632_v4  ;;  %v1004_v3 = vld [vmem:[%s3641_s15 + $0x68] sm:$0xff]  ;;  %v1003_v4 = vld [vmem:[%s3641_s15 + $0x60] sm:$0xff] }
 0x10f   : > { %1009 = vmatpush.msra.mxu0 %v1004_v3  ;;  %3311 = vmatpush.msra.mxu3 %v1004_v3 }
 0x110   : > { %v678_v8 = vsub.f32 %v3820_v24, %v662_v5  ;;  %v672_v49 = vsub.f32 %v3825_v25, %v656_v44  ;;  %v1001_v5 = vld [vmem:[%s3641_s15 + $0x50] sm:$0xff] }
 0x111   : > { %1010 = vmatpush.msra.mxu0 %v1003_v4  ;;  %3312 = vmatpush.msra.mxu3 %v1003_v4 }
 0x112   : > { %v3912_v9 = vsel %vm614_vm0, %v678_v8, 0.0  ;;  %v3957_v54 = vsel %vm614_vm0, %v672_v49, 0.0  ;;  %v999_v8 = vld [vmem:[%s3641_s15 + $0x40] sm:$0xff] }
 0x113   : > { %v710_v12 = vmul.f32 %v3912_v9, %v3912_v9  ;;  %v704_v55 = vmul.f32 %v3957_v54, %v3957_v54 }
 0x115   : > { %v646_v13 = vpop.xlane.xlu2 %645  ;;  %739 = vadd.xlane.f32.xlu1 %v710_v12  ;;  %v634_v14 = vpop.xlane.xlu1 %633  ;;  %v996_v12 = vld [vmem:[%s3641_s15 + $0x28] sm:$0xff] }
 0x116   : > { %v657_v15 = vmul.f32 0.03125, %v634_v14  ;;  %719 = vadd.xlane.f32.xlu0 %v700_v10  ;;  %v663_v53 = vmul.f32 0.03125, %v646_v13  ;;  %v998_v10 = vld [vmem:[%s3641_s15 + $0x38] sm:$0xff]  ;;  %v995_v13 = vld [vmem:[%s3641_s15 + $0x20] sm:$0xff] }
 0x117   : > { %v994_v14 = vld [vmem:[%s3641_s15 + $0x18] sm:$0xff] }
 0x118   : > { %v673_v33 = vsub.f32 %v3837_v27, %v657_v15  ;;  %v679_v56 = vsub.f32 %v3832_v26, %v663_v53  ;;  %v993_v15 = vld [vmem:[%s3641_s15 + $0x10] sm:$0xff] }
 0x11a   : > { %v3926_v34 = vsel %vm614_vm0, %v673_v33, 0.0  ;;  %v3964_v60 = vsel %vm614_vm0, %v679_v56, 0.0  ;;  %v992_v33 = vld [vmem:[%s3641_s15 + $0x8] sm:$0xff] }
 0x11b   : > { %v705_v36 = vmul.f32 %v3926_v34, %v3926_v34  ;;  %v711_v63 = vmul.f32 %v3964_v60, %v3964_v60 }
 0x11d   : > { %v648_v37 = vpop.xlane.xlu2 %647  ;;  %729 = vadd.xlane.f32.xlu2 %v705_v36  ;;  %v636_v39 = vpop.xlane.xlu1 %635 }
 0x11e   : > { %v664_v40 = vmul.f32 0.03125, %v648_v37  ;;  %v658_v41 = vmul.f32 0.03125, %v636_v39  ;;  %721 = vadd.xlane.f32.xlu0 %v701_v35  ;;  %v991_v35 = vld [vmem:[%s3641_s15] sm:$0xff] }
 0x120   : > { %v680_v27 = vsub.f32 %v3844_v28, %v664_v40  ;;  %v674_v45 = vsub.f32 %v3849_v29, %v658_v41  ;;  %v3952_v29 = vld [vmem:[%s5652_s11 + $0x58] sm:$0xff] }
 0x122   : > { %v3938_v46 = vsel %vm614_vm0, %v680_v27, 0.0  ;;  %v3942_v47 = vsel %vm614_vm0, %v674_v45, 0.0 }
 0x123   : > { %v712_v50 = vmul.f32 %v3938_v46, %v3938_v46  ;;  %v706_v52 = vmul.f32 %v3942_v47, %v3942_v47 }
 0x125   : > { %743 = vadd.xlane.f32.xlu2 %v712_v50  ;;  %731 = vadd.xlane.f32.xlu1 %v706_v52  ;;  %v638_v57 = vpop.xlane.xlu1 %637 }
 0x126   : > { %639 = vadd.xlane.f32.xlu0 %v3952_v29  ;;  %v659_v59 = vmul.f32 0.03125, %v638_v57 }
 0x128   : > { %v675_v0 = vsub.f32 %v3856_v30, %v659_v59  ;;  %v1002_v30 = vld [vmem:[%s3641_s15 + $0x58] sm:$0xff] }
 0x129   : > { %1011 = vmatpush.msra.mxu0 %v1002_v30  ;;  %3313 = vmatpush.msra.mxu3 %v1002_v30 }
 0x12a   : > { %v3971_v1 = vsel %vm614_vm0, %v675_v0, 0.0 }
 0x12b   : > { %v707_v2 = vmul.f32 %v3971_v1, %v3971_v1  ;;  %1012 = vmatpush.msra.mxu0 %v1001_v5  ;;  %3314 = vmatpush.msra.mxu3 %v1001_v5 }
 0x12d   : > { %1013 = vmatpush.msra.mxu0 %v1000_v6  ;;  %3315 = vmatpush.msra.mxu3 %v1000_v6  ;;  %v3997_v6 = vld [vmem:[%s5663_s25] ss:$0 sm:$0xff] }
 0x12e   : > { %727 = vadd.xlane.f32.xlu0 %v704_v55 }
 0x12f   : > { %1014 = vmatpush.msra.mxu0 %v999_v8  ;;  %3316 = vmatpush.msra.mxu3 %v999_v8 }
 0x131   : > { %1015 = vmatpush.msra.mxu0 %v998_v10  ;;  %3317 = vmatpush.msra.mxu3 %v998_v10 }
 0x133   : > { %1016 = vmatpush.msra.mxu0 %v997_v11  ;;  %3318 = vmatpush.msra.mxu3 %v997_v11 }
 0x135   : > { %1017 = vmatpush.msra.mxu0 %v996_v12  ;;  %3319 = vmatpush.msra.mxu3 %v996_v12 }
 0x136   : > { %741 = vadd.xlane.f32.xlu0 %v711_v63 }
 0x137   : > { %1018 = vmatpush.msra.mxu0 %v995_v13  ;;  %3320 = vmatpush.msra.mxu3 %v995_v13 }
 0x139   : > { %1019 = vmatpush.msra.mxu0 %v994_v14  ;;  %3321 = vmatpush.msra.mxu3 %v994_v14 }
 0x13b   : > { %1020 = vmatpush.msra.mxu0 %v993_v15  ;;  %3322 = vmatpush.msra.mxu3 %v993_v15 }
 0x13d   : > { %1021 = vmatpush.msra.mxu0 %v992_v33  ;;  %3323 = vmatpush.msra.mxu3 %v992_v33 }
 0x13e   : > { %733 = vadd.xlane.f32.xlu0 %v707_v2 }
 0x13f   : > { %1022 = vmatpush.msra.mxu0 %v991_v35  ;;  %3324 = vmatpush.msra.mxu3 %v991_v35 }
 0x171   : > { %v714_v36 = vpop.xlane.xlu0 %713 }
 0x172   : > { %v745_v37 = vmul.f32 0.03125, %v714_v36 }
 0x174   : > { %v761_v39 = vadd.f32 1e-05, %v745_v37 }
 0x176   : > { %3388 = vrsqrt.f32 %v761_v39  ;;  %vm783_vm2 = vweird.f32 %v761_v39 }
 0x178   : > { %v724_v40 = vpop.xlane.xlu2 %723 }
 0x179   : > { %v716_v41 = vpop.xlane.xlu0 %715  ;;  %v750_v0 = vmul.f32 0.03125, %v724_v40 }
 0x17a   : > { %v746_v42 = vmul.f32 0.03125, %v716_v41 }
 0x17b   : > { %v3999_v8 = vadd.f32 1e-05, %v750_v0 }
 0x17c   : > { %v3389_v43 = vpop.eup %3388  ;;  %v762_v44 = vadd.f32 1e-05, %v746_v42 }
 0x17d   : > { %v778_v27 = vmul.f32 %v3389_v43, %v761_v39  ;;  %vm784_vm1 = vweird.f32 %v3389_v43  ;;  %v4010_v39 = vld [vmem:[%s5664_s18] ss:$0 sm:$0xff]  ;;  %s5685_s18 = scalar_lea.vmem %s5647_s6, %s3623_s21 }
 0x17e   : > { %3390 = vrsqrt.f32 %v762_v44  ;;  %vm785_vm3 = vmor %vm783_vm2, %vm784_vm1  ;;  %vm793_vm5 = vweird.f32 %v762_v44 }
 0x17f   : > { %v779_v45 = vmul.f32 %v3389_v43, %v778_v27 }
 0x180   : > { %v738_v49 = vpop.xlane.xlu2 %737  ;;  %v726_v50 = vpop.xlane.xlu1 %725 }
 0x181   : > { %v780_v52 = vmul.f32 0.5, %v779_v45  ;;  %v757_v53 = vmul.f32 0.03125, %v738_v49  ;;  %v718_v55 = vpop.xlane.xlu0 %717 }
 0x182   : > { %v747_v56 = vmul.f32 0.03125, %v718_v55 }
 0x183   : > { %v781_v57 = vsub.f32 1.5, %v780_v52  ;;  %v773_v59 = vadd.f32 1e-05, %v757_v53 }
 0x184   : > { %v3391_v63 = vpop.eup %3390  ;;  %v3989_v2 = vadd.f32 1e-05, %v747_v56 }
 0x185   : > { %v782_v3 = vmul.f32 %v3389_v43, %v781_v57  ;;  %v788_v4 = vmul.f32 %v3391_v63, %v762_v44  ;;  %3392 = vrsqrt.f32 %v773_v59  ;;  %vm794_vm4 = vweird.f32 %v3391_v63 }
 0x186   : > { %3394 = vrsqrt.f32 %v3989_v2  ;;  %vm795_vm6 = vmor %vm793_vm5, %vm794_vm4  ;;  %vm903_vm7 = vweird.f32 %v773_v59  ;;  %vm803_vm11 = vweird.f32 %v3989_v2  ;;  %vm833_vm4 = vweird.f32 %v3999_v8 }
 0x187   : > { %v789_v30 = vmul.f32 %v3391_v63, %v788_v4  ;;  %v786_v5 = vsel %vm785_vm3, %v3389_v43, %v782_v3  ;;  %3396 = vrsqrt.f32 %v3999_v8  ;;  %v751_v43 = vmul.f32 0.03125, %v726_v50 }
 0x188   : > { %v740_v10 = vpop.xlane.xlu1 %739  ;;  %v937_v11 = vmul.f32 %v786_v5, %v3865_v38 }
 0x189   : > { %v790_v12 = vmul.f32 0.5, %v789_v30  ;;  %v758_v13 = vmul.f32 0.03125, %v740_v10  ;;  %v720_v14 = vpop.xlane.xlu0 %719  ;;  %v4019_v57 = vadd.f32 1e-05, %v751_v43 }
 0x18a   : > { %v748_v15 = vmul.f32 0.03125, %v720_v14  ;;  %v956_v37 = vmul.f32 %v3997_v6, %v937_v11 }
 0x18b   : > { %v3393_v33 = vpop.eup %3392  ;;  %v791_v35 = vsub.f32 1.5, %v790_v12  ;;  %v4002_v36 = vadd.f32 1e-05, %v758_v13 }
 0x18c   : > { %v898_v38 = vmul.f32 %v3393_v33, %v773_v59  ;;  %v4013_v40 = vadd.f32 1e-05, %v748_v15  ;;  %v3395_v41 = vpop.eup %3394  ;;  %v975_v49 = vadd.f32 %v4010_v39, %v956_v37  ;;  %vm904_vm8 = vweird.f32 %v3393_v33 }
 0x18d   : > { %v792_v42 = vmul.f32 %v3391_v63, %v791_v35  ;;  %3398 = vrsqrt.f32 %v4002_v36  ;;  %v798_v45 = vmul.f32 %v3395_v41, %v3989_v2  ;;  %v4022_v0 = vpop.eup %3396  ;;  %vm4027_vm9 = vmor %vm903_vm7, %vm904_vm8  ;;  %vm804_vm10 = vweird.f32 %v3395_v41 }
 0x18e   : > { %v899_v27 = vmul.f32 %v3393_v33, %v898_v38  ;;  %3400 = vrsqrt.f32 %v4013_v40  ;;  %1023 = vmatmul.f32.vlgmr.msra.gmra.mxu0 %v975_v49  ;;  %v828_v13 = vmul.f32 %v4022_v0, %v3999_v8  ;;  %vm805_vm12 = vmor %vm803_vm11, %vm804_vm10  ;;  %vm913_vm13 = vweird.f32 %v4002_v36 }
 0x18f   : > { %v799_v53 = vmul.f32 %v3395_v41, %v798_v45  ;;  %v796_v56 = vsel %vm795_vm6, %v3391_v63, %v792_v42  ;;  %3402 = vrsqrt.f32 %v4019_v57  ;;  %vm813_vm2 = vweird.f32 %v4013_v40 }
 0x190   : > { %v900_v52 = vmul.f32 0.5, %v899_v27  ;;  %v730_v55 = vpop.xlane.xlu2 %729  ;;  %v938_v44 = vmul.f32 %v796_v56, %v3880_v51  ;;  %vm834_vm6 = vweird.f32 %v4022_v0  ;;  %vm843_vm10 = vweird.f32 %v4019_v57 }
 0x191   : > { %v722_v50 = vpop.xlane.xlu0 %721  ;;  %v800_v4 = vmul.f32 0.5, %v799_v53 }
 0x192   : > { %v901_v3 = vsub.f32 1.5, %v900_v52  ;;  %v749_v30 = vmul.f32 0.03125, %v722_v50  ;;  %v957_v10 = vmul.f32 %v3997_v6, %v938_v44  ;;  %v829_v52 = vmul.f32 %v4022_v0, %v828_v13 }
 0x193   : > { %v4024_v5 = vpop.eup %3398  ;;  %v801_v59 = vsub.f32 1.5, %v800_v4 }
 0x194   : > { %v902_v11 = vmul.f32 %v3393_v33, %v901_v3  ;;  %v908_v12 = vmul.f32 %v4024_v5, %v4002_v36  ;;  %v3401_v51 = vpop.eup %3400  ;;  %v4036_v14 = vadd.f32 1e-05, %v749_v30  ;;  %v976_v38 = vadd.f32 %v4010_v39, %v957_v10 }
 0x195   : > { %v802_v15 = vmul.f32 %v3395_v41, %v801_v59  ;;  %v808_v37 = vmul.f32 %v3401_v51, %v4013_v40  ;;  %v4048_v4 = vpop.eup %3402  ;;  %vm914_vm14 = vweird.f32 %v4024_v5  ;;  %vm814_vm15 = vweird.f32 %v3401_v51 }
 0x196   : > { %v909_v35 = vmul.f32 %v4024_v5, %v908_v12  ;;  %3404 = vrsqrt.f32 %v4036_v14  ;;  %v906_v42 = vsel %vm4027_vm9, %v3393_v33, %v902_v11  ;;  %1026 = vmatmul.f32.gmra.mxu0 %v976_v38  ;;  %v830_v11 = vmul.f32 0.5, %v829_v52  ;;  %vm4056_vm1 = vmor %vm913_vm13, %vm914_vm14 }
 0x197   : > { %v809_v27 = vmul.f32 %v3401_v51, %v808_v37  ;;  %v806_v45 = vsel %vm805_vm12, %v3395_v41, %v802_v15  ;;  %v949_v49 = vmul.f32 %v906_v42, %v3892_v61  ;;  %v753_v12 = vmul.f32 0.03125, %v730_v55  ;;  %vm815_vm3 = vmor %vm813_vm2, %vm814_vm15 }
 0x198   : > { %v910_v43 = vmul.f32 0.5, %v909_v35  ;;  %v744_v2 = vpop.xlane.xlu2 %743  ;;  %v939_v56 = vmul.f32 %v806_v45, %v3886_v58  ;;  %v838_v15 = vmul.f32 %v4048_v4, %v4019_v57  ;;  %vm823_vm7 = vweird.f32 %v4036_v14  ;;  %vm4097_vm9 = vmor %vm833_vm4, %vm834_vm6 }
 0x199   : > { %v640_v53 = vpop.xlane.xlu0 %639  ;;  %v810_v44 = vmul.f32 0.5, %v809_v27  ;;  %v968_v61 = vmul.f32 %v3997_v6, %v949_v49  ;;  %v760_v30 = vmul.f32 0.03125, %v744_v2  ;;  %v4078_v52 = vadd.f32 1e-05, %v753_v12 }
 0x19a   : > { %v911_v50 = vsub.f32 1.5, %v910_v43  ;;  %v660_v3 = vmul.f32 0.03125, %v640_v53  ;;  %v958_v33 = vmul.f32 %v3997_v6, %v939_v56  ;;  %vm844_vm11 = vweird.f32 %v4048_v4 }
 0x19b   : > { %v811_v41 = vsub.f32 1.5, %v810_v44  ;;  %v987_v37 = vadd.f32 %v4010_v39, %v968_v61  ;;  %v4070_v43 = vadd.f32 1e-05, %v760_v30  ;;  %v839_v44 = vmul.f32 %v4048_v4, %v838_v15  ;;  %vm4123_vm12 = vmor %vm843_vm10, %vm844_vm11 }
 0x19c   : > { %v3405_v10 = vpop.eup %3404  ;;  %v912_v58 = vmul.f32 %v4024_v5, %v911_v50  ;;  %v676_v63 = vsub.f32 %v3952_v29, %v660_v3  ;;  %v977_v35 = vadd.f32 %v4010_v39, %v958_v33  ;;  %v831_v50 = vsub.f32 1.5, %v830_v11 }
 0x19d   : > { %v812_v36 = vmul.f32 %v3401_v51, %v811_v41  ;;  %v818_v13 = vmul.f32 %v3405_v10, %v4036_v14  ;;  %1059 = vmatmul.f32.vlgmr.msra.gmra.mxu3 %v987_v37  ;;  %vm824_vm5 = vweird.f32 %v3405_v10  ;;  %3406 = vrsqrt.f32 %v4070_v43 }
 0x19e   : > { %v4068_v38 = vsel %vm614_vm0, %v676_v63, 0.0  ;;  %1029 = vmatmul.f32.gmra.mxu0 %v977_v35  ;;  %v916_v49 = vsel %vm4056_vm1, %v4024_v5, %v912_v58  ;;  %3408 = vrsqrt.f32 %v4078_v52  ;;  %v832_v41 = vmul.f32 %v4022_v0, %v831_v50  ;;  %vm825_vm8 = vmor %vm823_vm7, %vm824_vm5 }
 0x19f   : > { %v819_v42 = vmul.f32 %v3405_v10, %v818_v13  ;;  %v708_v40 = vmul.f32 %v4068_v38, %v4068_v38  ;;  %v816_v55 = vsel %vm815_vm3, %v3401_v51, %v812_v36  ;;  %v950_v56 = vmul.f32 %v916_v49, %v3912_v9 }
 0x1a0   : > { %v940_v45 = vmul.f32 %v816_v55, %v3907_v7  ;;  %v732_v7 = vpop.xlane.xlu1 %731  ;;  %v840_v63 = vmul.f32 0.5, %v839_v44  ;;  %v836_v8 = vsel %vm4097_vm9, %v4022_v0, %v832_v41  ;;  %vm933_vm3 = vweird.f32 %v4070_v43 }
 0x1a1   : > { %v728_v27 = vpop.xlane.xlu0 %727  ;;  %v820_v2 = vmul.f32 0.5, %v819_v42  ;;  %735 = vadd.xlane.f32.xlu1 %v708_v40  ;;  %v969_v9 = vmul.f32 %v3997_v6, %v950_v56  ;;  %v754_v30 = vmul.f32 0.03125, %v732_v7  ;;  %vm863_vm6 = vweird.f32 %v4078_v52 }
 0x1a2   : > { %v752_v53 = vmul.f32 0.03125, %v728_v27  ;;  %v959_v51 = vmul.f32 %v3997_v6, %v940_v45  ;;  %v841_v42 = vsub.f32 1.5, %v840_v63  ;;  %v942_v45 = vmul.f32 %v836_v8, %v3873_v48 }
 0x1a3   : > { %v821_v3 = vsub.f32 1.5, %v820_v2  ;;  %v988_v11 = vadd.f32 %v4010_v39, %v969_v9  ;;  %v4102_v12 = vpop.eup %3406  ;;  %v4104_v15 = vadd.f32 1e-05, %v754_v30 }
 0x1a4   : > { %v4086_v5 = vadd.f32 1e-05, %v752_v53  ;;  %v978_v33 = vadd.f32 %v4010_v39, %v959_v51  ;;  %v4110_v37 = vpop.eup %3408  ;;  %v842_v49 = vmul.f32 %v4048_v4, %v841_v42  ;;  %v961_v48 = vmul.f32 %v3997_v6, %v942_v45 }
 0x1a5   : > { %v822_v61 = vmul.f32 %v3405_v10, %v821_v3  ;;  %1062 = vmatmul.f32.gmra.mxu3 %v988_v11  ;;  %v858_v0 = vmul.f32 %v4110_v37, %v4078_v52  ;;  %vm934_vm4 = vweird.f32 %v4102_v12  ;;  %vm864_vm7 = vweird.f32 %v4110_v37 }
 0x1a6   : > { %3410 = vrsqrt.f32 %v4086_v5  ;;  %1032 = vmatmul.f32.gmra.mxu0 %v978_v33  ;;  %v846_v9 = vsel %vm4123_vm12, %v4048_v4, %v842_v49  ;;  %vm853_vm13 = vweird.f32 %v4086_v5  ;;  %v980_v11 = vadd.f32 %v4010_v39, %v961_v48  ;;  %vm4163_vm9 = vmor %vm863_vm6, %vm864_vm7 }
 0x1a7   : > { %v826_v59 = vsel %vm825_vm8, %v3405_v10, %v822_v61  ;;  %v859_v44 = vmul.f32 %v4110_v37, %v858_v0  ;;  %vm4156_vm8 = vmor %vm933_vm3, %vm934_vm4  ;;  %vm873_vm10 = vweird.f32 %v4104_v15 }
 0x1a8   : > { %v941_v14 = vmul.f32 %v826_v59, %v3921_v31  ;;  %v928_v31 = vmul.f32 %v4102_v12, %v4070_v43  ;;  %v943_v59 = vmul.f32 %v846_v9, %v3896_v62 }
 0x1a9   : > { %v742_v36 = vpop.xlane.xlu0 %741  ;;  %v860_v58 = vmul.f32 0.5, %v859_v44 }
 0x1aa   : > { %v759_v13 = vmul.f32 0.03125, %v742_v36  ;;  %v960_v35 = vmul.f32 %v3997_v6, %v941_v14  ;;  %v929_v53 = vmul.f32 %v4102_v12, %v928_v31  ;;  %v962_v62 = vmul.f32 %v3997_v6, %v943_v59 }
 0x1ac   : > { %v775_v10 = vadd.f32 1e-05, %v759_v13  ;;  %v3411_v40 = vpop.eup %3410  ;;  %v979_v55 = vadd.f32 %v4010_v39, %v960_v35  ;;  %v930_v41 = vmul.f32 0.5, %v929_v53  ;;  %v981_v0 = vadd.f32 %v4010_v39, %v962_v62 }
 0x1ad   : > { %v848_v27 = vmul.f32 %v3411_v40, %v4086_v5  ;;  %vm854_vm14 = vweird.f32 %v3411_v40  ;;  %v861_v5 = vsub.f32 1.5, %v860_v58 }
 0x1ae   : > { %3412 = vrsqrt.f32 %v775_v10  ;;  %1035 = vmatmul.f32.gmra.mxu0 %v979_v55  ;;  %v931_v4 = vsub.f32 1.5, %v930_v41  ;;  %vm4143_vm15 = vmor %vm853_vm13, %vm854_vm14  ;;  %vm923_vm1 = vweird.f32 %v775_v10 }
 0x1af   : > { %3414 = vrsqrt.f32 %v4104_v15  ;;  %v849_v57 = vmul.f32 %v3411_v40, %v848_v27  ;;  %v862_v45 = vmul.f32 %v4110_v37, %v861_v5 }
 0x1b1   : > { %v734_v56 = vpop.xlane.xlu0 %733  ;;  %v850_v50 = vmul.f32 0.5, %v849_v57 }
 0x1b2   : > { %v755_v51 = vmul.f32 0.03125, %v734_v56 }
 0x1b3   : > { %v851_v7 = vsub.f32 1.5, %v850_v50 }
 0x1b4   : > { %v3413_v3 = vpop.eup %3412  ;;  %v4130_v33 = vadd.f32 1e-05, %v755_v51 }
 0x1b5   : > { %v4135_v61 = vpop.eup %3414  ;;  %v918_v30 = vmul.f32 %v3413_v3, %v775_v10  ;;  %v852_v14 = vmul.f32 %v3411_v40, %v851_v7  ;;  %vm924_vm2 = vweird.f32 %v3413_v3  ;;  %v932_v10 = vmul.f32 %v4102_v12, %v931_v4 }
 0x1b6   : > { %3416 = vrsqrt.f32 %v4130_v33  ;;  %v868_v36 = vmul.f32 %v4135_v61, %v4104_v15  ;;  %1038 = vmatmul.f32.gmra.mxu0 %v980_v11  ;;  %vm925_vm5 = vmor %vm923_vm1, %vm924_vm2  ;;  %vm874_vm11 = vweird.f32 %v4135_v61  ;;  %vm883_vm13 = vweird.f32 %v4130_v33 }
 0x1b7   : > { %v919_v63 = vmul.f32 %v3413_v3, %v918_v30  ;;  %v856_v31 = vsel %vm4143_vm15, %v3411_v40, %v852_v14  ;;  %v936_v56 = vsel %vm4156_vm8, %v4102_v12, %v932_v10  ;;  %vm875_vm12 = vmor %vm873_vm10, %vm874_vm11 }
 0x1b8   : > { %v869_v42 = vmul.f32 %v4135_v61, %v868_v36  ;;  %v944_v49 = vmul.f32 %v856_v31, %v3957_v54  ;;  %v866_v54 = vsel %vm4163_vm9, %v4110_v37, %v862_v45  ;;  %v952_v7 = vmul.f32 %v936_v56, %v3938_v46 }
 0x1b9   : > { %v920_v35 = vmul.f32 0.5, %v919_v63  ;;  %v945_v12 = vmul.f32 %v866_v54, %v3926_v34 }
 0x1ba   : > { %v870_v52 = vmul.f32 0.5, %v869_v42  ;;  %v963_v51 = vmul.f32 %v3997_v6, %v944_v49  ;;  %v971_v37 = vmul.f32 %v3997_v6, %v952_v7 }
 0x1bb   : > { %v921_v8 = vsub.f32 1.5, %v920_v35  ;;  %v964_v30 = vmul.f32 %v3997_v6, %v945_v12 }
 0x1bc   : > { %v3417_v55 = vpop.eup %3416  ;;  %v871_v48 = vsub.f32 1.5, %v870_v52  ;;  %v990_v46 = vadd.f32 %v4010_v39, %v971_v37 }
 0x1bd   : > { %v922_v43 = vmul.f32 %v3413_v3, %v921_v8  ;;  %v878_v2 = vmul.f32 %v3417_v55, %v4130_v33  ;;  %vm884_vm14 = vweird.f32 %v3417_v55  ;;  %v983_v34 = vadd.f32 %v4010_v39, %v964_v30 }
 0x1be   : > { %1041 = vmatmul.f32.gmra.mxu0 %v981_v0  ;;  %v872_v9 = vmul.f32 %v4135_v61, %v871_v48  ;;  %vm885_vm15 = vmor %vm883_vm13, %vm884_vm14 }
 0x1bf   : > { %v926_v57 = vsel %vm925_vm5, %v3413_v3, %v922_v43  ;;  %v879_v44 = vmul.f32 %v3417_v55, %v878_v2 }
 0x1c0   : > { %v951_v53 = vmul.f32 %v926_v57, %v3964_v60  ;;  %v982_v60 = vadd.f32 %v4010_v39, %v963_v51  ;;  %v876_v15 = vsel %vm875_vm12, %v4135_v61, %v872_v9 }
 0x1c1   : > { %v880_v41 = vmul.f32 0.5, %v879_v44  ;;  %v946_v58 = vmul.f32 %v876_v15, %v3942_v47  ;;  %v4201_v47 = vld [vmem:[%s5679_s13] ss:$0 sm:$0xff] }
 0x1c2   : > { %v970_v50 = vmul.f32 %v3997_v6, %v951_v53 }
 0x1c3   : > { %v881_v11 = vsub.f32 1.5, %v880_v41  ;;  %v965_v59 = vmul.f32 %v3997_v6, %v946_v58 }
 0x1c4   : > { %v989_v3 = vadd.f32 %v4010_v39, %v970_v50 }
 0x1c5   : > { %v882_v63 = vmul.f32 %v3417_v55, %v881_v11  ;;  %v984_v14 = vadd.f32 %v4010_v39, %v965_v59 }
 0x1c6   : > { %1065 = vmatmul.f32.gmra.mxu3 %v989_v3  ;;  %1044 = vmatmul.f32.gmra.mxu0 %v982_v60 }
 0x1c7   : > { %v886_v36 = vsel %vm885_vm15, %v3417_v55, %v882_v63 }
 0x1c8   : > { %v947_v4 = vmul.f32 %v886_v36, %v3971_v1 }
 0x1ca   : > { %v966_v33 = vmul.f32 %v3997_v6, %v947_v4 }
 0x1cc   : > { %v985_v61 = vadd.f32 %v4010_v39, %v966_v33 }
 0x1ce   : > { %1068 = vmatmul.f32.gmra.mxu3 %v990_v46  ;;  %1047 = vmatmul.f32.gmra.mxu0 %v983_v34 }
 0x1d6   : > { %1050 = vmatmul.f32.gmra.mxu0 %v984_v14 }
 0x1de   : > { %1053 = vmatmul.f32.gmra.mxu0 %v985_v61 }
 0x20b   : > { %v1024_v13 = vpop.f32.mrf.mxu0 }
 0x20c   : > { %v1072_v35 = vadd.f32 %v1024_v13, %v3782_v18 }
 0x20e   : > { %v4205_v5 = vadd.f32 %v4201_v47, %v1072_v35 }
 0x210   : > { %1110 = vadd.xlane.f32.xlu2 %v4205_v5 }
 0x213   : > { %v1027_v8 = vpop.f32.mrf.mxu0 }
 0x214   : > { %v736_v1 = vpop.xlane.xlu1 %735  ;;  %v1073_v42 = vadd.f32 %v1027_v8, %v3800_v21 }
 0x215   : > { %v756_v62 = vmul.f32 0.03125, %v736_v1 }
 0x216   : > { %v4210_v55 = vadd.f32 %v4201_v47, %v1073_v42 }
 0x217   : > { %v772_v31 = vadd.f32 1e-05, %v756_v62 }
 0x218   : > { %1112 = vadd.xlane.f32.xlu0 %v4210_v55 }
 0x219   : > { %3418 = vrsqrt.f32 %v772_v31  ;;  %vm893_vm2 = vweird.f32 %v772_v31 }
 0x21b   : > { %v1030_v10 = vpop.f32.mrf.mxu0 }
 0x21c   : > { %v1074_v18 = vadd.f32 %v1030_v10, %v3777_v17 }
 0x21e   : > { %v4215_v45 = vadd.f32 %v4201_v47, %v1074_v18 }
 0x21f   : > { %v3419_v43 = vpop.eup %3418 }
 0x220   : > { %v888_v27 = vmul.f32 %v3419_v43, %v772_v31  ;;  %1114 = vadd.xlane.f32.xlu1 %v4215_v45  ;;  %vm894_vm1 = vweird.f32 %v3419_v43 }
 0x221   : > { %vm895_vm3 = vmor %vm893_vm2, %vm894_vm1 }
 0x222   : > { %v889_v0 = vmul.f32 %v3419_v43, %v888_v27  ;;  %v3517_v27 = vld [vmem:[%s5652_s11 + $0x48] sm:$0xff] }
 0x223   : > { %v1033_v21 = vpop.f32.mrf.mxu0 }
 0x224   : > { %v890_v49 = vmul.f32 0.5, %v889_v0  ;;  %v1075_v40 = vadd.f32 %v1033_v21, %v3795_v20 }
 0x226   : > { %v891_v57 = vsub.f32 1.5, %v890_v49  ;;  %v4220_v2 = vadd.f32 %v4201_v47, %v1075_v40 }
 0x228   : > { %v892_v52 = vmul.f32 %v3419_v43, %v891_v57  ;;  %1116 = vadd.xlane.f32.xlu2 %v4220_v2 }
 0x22a   : > { %v896_v17 = vsel %vm895_vm3, %v3419_v43, %v892_v52 }
 0x22b   : > { %v948_v53 = vmul.f32 %v896_v17, %v4068_v38  ;;  %v1036_v56 = vpop.f32.mrf.mxu0  ;;  %v1060_v38 = vpop.f32.mrf.mxu3 }
 0x22c   : > { %v1076_v51 = vadd.f32 %v1036_v56, %v3772_v16  ;;  %v1084_v7 = vadd.f32 %v1060_v38, %v3808_v22  ;;  %v3518_v56 = vld [vmem:[%s5652_s11 + $0x50] sm:$0xff] }
 0x22d   : > { %v967_v50 = vmul.f32 %v3997_v6, %v948_v53 }
 0x22e   : > { %v4228_v20 = vadd.f32 %v4201_v47, %v1076_v51  ;;  %v4243_v12 = vadd.f32 %v4201_v47, %v1084_v7 }
 0x22f   : > { %v986_v54 = vadd.f32 %v4010_v39, %v967_v50 }
 0x230   : > { %1118 = vadd.xlane.f32.xlu0 %v4228_v20 }
 0x231   : > { %1056 = vmatmul.f32.gmra.mxu0 %v986_v54 }
 0x233   : > { %v1039_v48 = vpop.f32.mrf.mxu0  ;;  %v1063_v60 = vpop.f32.mrf.mxu3 }
 0x234   : > { %v1077_v44 = vadd.f32 %v1039_v48, %v3790_v19  ;;  %v1085_v19 = vadd.f32 %v1063_v60, %v3820_v24 }
 0x236   : > { %v4233_v3 = vadd.f32 %v4201_v47, %v1077_v44  ;;  %v4248_v41 = vadd.f32 %v4201_v47, %v1085_v19 }
 0x238   : > { %1120 = vadd.xlane.f32.xlu1 %v4233_v3 }
 0x23b   : > { %v1042_v6 = vpop.f32.mrf.mxu0 }
 0x23c   : > { %v1078_v16 = vadd.f32 %v1042_v6, %v3813_v23 }
 0x23e   : > { %v4238_v39 = vadd.f32 %v4201_v47, %v1078_v16 }
 0x240   : > { %1122 = vadd.xlane.f32.xlu0 %v4238_v39 }
 0x243   : > { %v1045_v46 = vpop.f32.mrf.mxu0 }
 0x244   : > { %v1079_v59 = vadd.f32 %v1045_v46, %v3825_v25  ;;  %v3516_v25 = vld [vmem:[%s5652_s11 + $0x40] sm:$0xff]  ;;  %v1498_v46 = vld [vmem:[%s3654_s27 + $0x70] sm:$0xff] }
 0x246   : > { %v4275_v33 = vadd.f32 %v4201_v47, %v1079_v59 }
 0x248   : > { %1134 = vadd.xlane.f32.xlu0 %v4243_v12 }
 0x249   : > { %v1066_v9 = vpop.f32.mrf.mxu3 }
 0x24a   : > { %v1086_v23 = vadd.f32 %v1066_v9, %v3832_v26 }
 0x24b   : > { %v1048_v36 = vpop.f32.mrf.mxu0 }
 0x24c   : > { %v4253_v37 = vadd.f32 %v4201_v47, %v1086_v23  ;;  %v1080_v1 = vadd.f32 %v3516_v25, %v1048_v36  ;;  %v1497_v36 = vld [vmem:[%s3654_s27 + $0x68] sm:$0xff]  ;;  %v1492_v25 = vld [vmem:[%s3654_s27 + $0x40] sm:$0xff] }
 0x24e   : > { %5680 = vst [vmem:[#allocation4_spill] sm:$0xff] %v4253_v37  ;;  %v4289_v31 = vadd.f32 %v4201_v47, %v1080_v1  ;;  %v1491_v1 = vld [vmem:[%s3654_s27 + $0x38] sm:$0xff] }
 0x250   : > { %1136 = vadd.xlane.f32.xlu0 %v4248_v41 }
 0x251   : > { %v1069_v22 = vpop.f32.mrf.mxu3 }
 0x252   : > { %v1087_v30 = vadd.f32 %v1069_v22, %v3844_v28 }
 0x253   : > { %v1051_v62 = vpop.f32.mrf.mxu0 }
 0x254   : > { %v4258_v11 = vadd.f32 %v4201_v47, %v1087_v30  ;;  %v1081_v0 = vadd.f32 %v3517_v27, %v1051_v62  ;;  %v1489_v62 = vld [vmem:[%s3654_s27 + $0x28] sm:$0xff] }
 0x255   : > { %v1485_v27 = vld [vmem:[%s3654_s27 + $0x8] sm:$0xff] }
 0x256   : > { %5681 = vst [vmem:[#allocation5_spill] sm:$0xff] %v4258_v11  ;;  %v4303_v57 = vadd.f32 %v4201_v47, %v1081_v0 }
 0x258   : > { %1138 = vadd.xlane.f32.xlu0 %v4253_v37  ;;  %5682 = vst [vmem:[#allocation6_spill] sm:$0xff] %v4303_v57 }
 0x25b   : > { %v1054_v52 = vpop.f32.mrf.mxu0 }
 0x25c   : > { %v1082_v50 = vadd.f32 %v3518_v56, %v1054_v52 }
 0x25e   : > { %v4317_v48 = vadd.f32 %v4201_v47, %v1082_v50 }
 0x260   : > { %1140 = vadd.xlane.f32.xlu0 %v4258_v11  ;;  %5683 = vst [vmem:[#allocation7_spill] sm:$0xff] %v4317_v48 }
 0x283   : > { %v1111_v24 = vpop.xlane.xlu2 %1110 }
 0x284   : > { %v1142_v15 = vmul.f32 0.03125, %v1111_v24 }
 0x286   : > { %v1158_v34 = vsub.f32 %v4205_v5, %v1142_v15 }
 0x288   : > { %v4264_v26 = vsel %vm614_vm0, %v1158_v34, 0.0 }
 0x289   : > { %v1190_v58 = vmul.f32 %v4264_v26, %v4264_v26 }
 0x28b   : > { %1206 = vadd.xlane.f32.xlu2 %v1190_v58  ;;  %v1113_v63 = vpop.xlane.xlu0 %1112 }
 0x28c   : > { %v1143_v28 = vmul.f32 0.03125, %v1113_v63 }
 0x28e   : > { %v1159_v14 = vsub.f32 %v4210_v55, %v1143_v28 }
 0x290   : > { %v4272_v4 = vsel %vm614_vm0, %v1159_v14, 0.0  ;;  %v1496_v14 = vld [vmem:[%s3654_s27 + $0x60] sm:$0xff] }
 0x291   : > { %v1191_v61 = vmul.f32 %v4272_v4, %v4272_v4 }
 0x293   : > { %v1115_v13 = vpop.xlane.xlu1 %1114  ;;  %1124 = vadd.xlane.f32.xlu2 %v4275_v33  ;;  %1208 = vadd.xlane.f32.xlu1 %v1191_v61  ;;  %v1495_v61 = vld [vmem:[%s3654_s27 + $0x58] sm:$0xff] }
 0x294   : > { %v1144_v35 = vmul.f32 0.03125, %v1115_v13  ;;  %v1494_v13 = vld [vmem:[%s3654_s27 + $0x50] sm:$0xff] }
 0x296   : > { %v1160_v8 = vsub.f32 %v4215_v45, %v1144_v35  ;;  %v1493_v35 = vld [vmem:[%s3654_s27 + $0x48] sm:$0xff] }
 0x298   : > { %v4286_v42 = vsel %vm614_vm0, %v1160_v8, 0.0  ;;  %v1490_v8 = vld [vmem:[%s3654_s27 + $0x30] sm:$0xff] }
 0x299   : > { %v1192_v10 = vmul.f32 %v4286_v42, %v4286_v42 }
 0x29b   : > { %v1117_v18 = vpop.xlane.xlu2 %1116  ;;  %1126 = vadd.xlane.f32.xlu2 %v4289_v31  ;;  %1210 = vadd.xlane.f32.xlu1 %v1192_v10  ;;  %v1488_v10 = vld [vmem:[%s3654_s27 + $0x20] sm:$0xff] }
 0x29c   : > { %v1145_v43 = vmul.f32 0.03125, %v1117_v18  ;;  %v1487_v18 = vld [vmem:[%s3654_s27 + $0x18] sm:$0xff] }
 0x29e   : > { %v1161_v49 = vsub.f32 %v4220_v2, %v1145_v43  ;;  %v1486_v43 = vld [vmem:[%s3654_s27 + $0x10] sm:$0xff] }
 0x2a0   : > { %v4300_v21 = vsel %vm614_vm0, %v1161_v49, 0.0 }
 0x2a1   : > { %v1193_v40 = vmul.f32 %v4300_v21, %v4300_v21 }
 0x2a3   : > { %1128 = vadd.xlane.f32.xlu2 %v4303_v57  ;;  %1212 = vadd.xlane.f32.xlu1 %v1193_v40  ;;  %v1119_v17 = vpop.xlane.xlu0 %1118  ;;  %v1484_v40 = vld [vmem:[%s3654_s27] sm:$0xff] }
 0x2a4   : > { %v1146_v53 = vmul.f32 0.03125, %v1119_v17 }
 0x2a6   : > { %v1162_v51 = vsub.f32 %v4228_v20, %v1146_v53 }
 0x2a8   : > { %v4314_v54 = vsel %vm614_vm0, %v1162_v51, 0.0 }
 0x2a9   : > { %v1194_v44 = vmul.f32 %v4314_v54, %v4314_v54 }
 0x2ab   : > { %v1121_v38 = vpop.xlane.xlu1 %1120  ;;  %1130 = vadd.xlane.f32.xlu2 %v4317_v48  ;;  %1214 = vadd.xlane.f32.xlu1 %v1194_v44 }
 0x2ac   : > { %v1147_v6 = vmul.f32 0.03125, %v1121_v38 }
 0x2ae   : > { %v1057_v16 = vpop.f32.mrf.mxu0  ;;  %v1163_v60 = vsub.f32 %v4233_v3, %v1147_v6 }
 0x2af   : > { %v1083_v7 = vadd.f32 %v1057_v16, %v3952_v29  ;;  %v1499_v29 = vld [vmem:[%s3654_s27 + $0x78] sm:$0xff] }
 0x2b0   : > { %v4329_v9 = vsel %vm614_vm0, %v1163_v60, 0.0  ;;  %1504 = vmatpush.msra.mxu1 %v1499_v29  ;;  %3325 = vmatpush.msrb.mxu3 %v1499_v29 }
 0x2b1   : > { %v4325_v19 = vadd.f32 %v4201_v47, %v1083_v7  ;;  %v1195_v23 = vmul.f32 %v4329_v9, %v4329_v9 }
 0x2b2   : > { %1505 = vmatpush.msra.mxu1 %v1498_v46  ;;  %3326 = vmatpush.msrb.mxu3 %v1498_v46 }
 0x2b3   : > { %5684 = vst [vmem:[#allocation8_spill] sm:$0xff] %v4325_v19  ;;  %1132 = vadd.xlane.f32.xlu2 %v4325_v19  ;;  %1216 = vadd.xlane.f32.xlu1 %v1195_v23  ;;  %v1123_v22 = vpop.xlane.xlu0 %1122 }
 0x2b4   : > { %v1148_v30 = vmul.f32 0.03125, %v1123_v22  ;;  %1506 = vmatpush.msra.mxu1 %v1497_v36  ;;  %3327 = vmatpush.msrb.mxu3 %v1497_v36 }
 0x2b6   : > { %v1164_v24 = vsub.f32 %v4238_v39, %v1148_v30  ;;  %1507 = vmatpush.msra.mxu1 %v1496_v14  ;;  %3328 = vmatpush.msrb.mxu3 %v1496_v14 }
 0x2b8   : > { %v4339_v47 = vsel %vm614_vm0, %v1164_v24, 0.0  ;;  %1508 = vmatpush.msra.mxu1 %v1495_v61  ;;  %3329 = vmatpush.msrb.mxu3 %v1495_v61 }
 0x2b9   : > { %v1196_v15 = vmul.f32 %v4339_v47, %v4339_v47 }
 0x2ba   : > { %1509 = vmatpush.msra.mxu1 %v1494_v13  ;;  %3330 = vmatpush.msrb.mxu3 %v1494_v13 }
 0x2bb   : > { %1218 = vadd.xlane.f32.xlu0 %v1196_v15  ;;  %v1135_v34 = vpop.xlane.xlu0 %1134 }
 0x2bc   : > { %v1154_v58 = vmul.f32 0.03125, %v1135_v34  ;;  %1510 = vmatpush.msra.mxu1 %v1493_v35  ;;  %3331 = vmatpush.msrb.mxu3 %v1493_v35 }
 0x2be   : > { %v1170_v63 = vsub.f32 %v4243_v12, %v1154_v58  ;;  %1511 = vmatpush.msra.mxu1 %v1492_v25  ;;  %3332 = vmatpush.msrb.mxu3 %v1492_v25 }
 0x2c0   : > { %v4346_v28 = vsel %vm614_vm0, %v1170_v63, 0.0  ;;  %1512 = vmatpush.msra.mxu1 %v1491_v1  ;;  %3333 = vmatpush.msrb.mxu3 %v1491_v1 }
 0x2c1   : > { %v1202_v59 = vmul.f32 %v4346_v28, %v4346_v28 }
 0x2c2   : > { %1513 = vmatpush.msra.mxu1 %v1490_v8  ;;  %3334 = vmatpush.msrb.mxu3 %v1490_v8 }
 0x2c3   : > { %1230 = vadd.xlane.f32.xlu2 %v1202_v59  ;;  %v1137_v52 = vpop.xlane.xlu0 %1136 }
 0x2c4   : > { %1514 = vmatpush.msra.mxu1 %v1489_v62  ;;  %3335 = vmatpush.msrb.mxu3 %v1489_v62  ;;  %v1155_v44 = vmul.f32 0.03125, %v1137_v52  ;;  %v4391_v62 = vld [vmem:[%s534_s23] ss:$0 sm:$0xff] }
 0x2c6   : > { %1515 = vmatpush.msra.mxu1 %v1488_v10  ;;  %3336 = vmatpush.msrb.mxu3 %v1488_v10  ;;  %v1171_v22 = vsub.f32 %v4248_v41, %v1155_v44 }
 0x2c8   : > { %1516 = vmatpush.msra.mxu1 %v1487_v18  ;;  %3337 = vmatpush.msrb.mxu3 %v1487_v18  ;;  %v4374_v36 = vsel %vm614_vm0, %v1171_v22, 0.0 }
 0x2c9   : > { %v1203_v8 = vmul.f32 %v4374_v36, %v4374_v36 }
 0x2ca   : > { %1517 = vmatpush.msra.mxu1 %v1486_v43  ;;  %3338 = vmatpush.msrb.mxu3 %v1486_v43 }
 0x2cb   : > { %v1139_v60 = vpop.xlane.xlu0 %1138 }
 0x2cc   : > { %1518 = vmatpush.msra.mxu1 %v1485_v27  ;;  %3339 = vmatpush.msrb.mxu3 %v1485_v27  ;;  %v1156_v63 = vmul.f32 0.03125, %v1139_v60 }
 0x2ce   : > { %1519 = vmatpush.msra.mxu1 %v1484_v40  ;;  %3340 = vmatpush.msrb.mxu3 %v1484_v40  ;;  %v1172_v10 = vsub.f32 %v4253_v37, %v1156_v63  ;;  %v4402_v40 = vld [vmem:[%s5685_s18] ss:$0 sm:$0xff] }
 0x2fe   : > { %v1207_v0 = vpop.xlane.xlu2 %1206 }
 0x2ff   : > { %v1238_v49 = vmul.f32 0.03125, %v1207_v0  ;;  %v1141_v0 = vpop.xlane.xlu0 %1140 }
 0x301   : > { %v1254_v17 = vadd.f32 1e-05, %v1238_v49 }
 0x303   : > { %3420 = vrsqrt.f32 %v1254_v17  ;;  %vm1276_vm5 = vweird.f32 %v1254_v17 }
 0x306   : > { %v1125_v53 = vpop.xlane.xlu2 %1124  ;;  %v1209_v56 = vpop.xlane.xlu1 %1208 }
 0x307   : > { %v1149_v50 = vmul.f32 0.03125, %v1125_v53  ;;  %v1239_v51 = vmul.f32 0.03125, %v1209_v56 }
 0x309   : > { %v3421_v38 = vpop.eup %3420  ;;  %v1165_v6 = vsub.f32 %v4275_v33, %v1149_v50  ;;  %v1255_v16 = vadd.f32 1e-05, %v1239_v51 }
 0x30a   : > { %v1271_v7 = vmul.f32 %v3421_v38, %v1254_v17  ;;  %vm1277_vm4 = vweird.f32 %v3421_v38 }
 0x30b   : > { %3422 = vrsqrt.f32 %v1255_v16  ;;  %v4367_v23 = vsel %vm614_vm0, %v1165_v6, 0.0  ;;  %vm1278_vm6 = vmor %vm1276_vm5, %vm1277_vm4  ;;  %v1157_v6 = vmul.f32 0.03125, %v1141_v0  ;;  %vm1286_vm8 = vweird.f32 %v1255_v16 }
 0x30c   : > { %v1272_v30 = vmul.f32 %v3421_v38, %v1271_v7  ;;  %v1197_v24 = vmul.f32 %v4367_v23, %v4367_v23 }
 0x30d   : > { %v1173_v63 = vsub.f32 %v4258_v11, %v1157_v6 }
 0x30e   : > { %v1273_v29 = vmul.f32 0.5, %v1272_v30  ;;  %v1127_v46 = vpop.xlane.xlu2 %1126  ;;  %v1211_v15 = vpop.xlane.xlu1 %1210  ;;  %1220 = vadd.xlane.f32.xlu1 %v1197_v24 }
 0x30f   : > { %v1150_v34 = vmul.f32 0.03125, %v1127_v46  ;;  %v1240_v58 = vmul.f32 0.03125, %v1211_v15 }
 0x310   : > { %v1274_v59 = vsub.f32 1.5, %v1273_v29 }
 0x311   : > { %v3423_v14 = vpop.eup %3422  ;;  %v1166_v61 = vsub.f32 %v4289_v31, %v1150_v34  ;;  %v4377_v13 = vadd.f32 1e-05, %v1240_v58 }
 0x312   : > { %v1275_v35 = vmul.f32 %v3421_v38, %v1274_v59  ;;  %v1281_v25 = vmul.f32 %v3423_v14, %v1255_v16  ;;  %vm1287_vm7 = vweird.f32 %v3423_v14 }
 0x313   : > { %3424 = vrsqrt.f32 %v4377_v13  ;;  %v4382_v1 = vsel %vm614_vm0, %v1166_v61, 0.0  ;;  %vm1288_vm9 = vmor %vm1286_vm8, %vm1287_vm7  ;;  %vm1296_vm11 = vweird.f32 %v4377_v13 }
 0x314   : > { %v1282_v18 = vmul.f32 %v3423_v14, %v1281_v25  ;;  %v1198_v43 = vmul.f32 %v4382_v1, %v4382_v1  ;;  %v1279_v27 = vsel %vm1278_vm6, %v3421_v38, %v1275_v35 }
 0x315   : > { %v1430_v49 = vmul.f32 %v1279_v27, %v4264_v26  ;;  %v4407_v26 = vsel %vm614_vm0, %v1172_v10, 0.0 }
 0x316   : > { %v1283_v52 = vmul.f32 0.5, %v1282_v18  ;;  %v1129_v17 = vpop.xlane.xlu2 %1128  ;;  %v1213_v53 = vpop.xlane.xlu1 %1212  ;;  %1222 = vadd.xlane.f32.xlu0 %v1198_v43  ;;  %1232 = vadd.xlane.f32.xlu1 %v1203_v8  ;;  %v1204_v34 = vmul.f32 %v4407_v26, %v4407_v26 }
 0x317   : > { %v1151_v56 = vmul.f32 0.03125, %v1129_v17  ;;  %v1241_v50 = vmul.f32 0.03125, %v1213_v53  ;;  %v1449_v51 = vmul.f32 %v4391_v62, %v1430_v49 }
 0x318   : > { %v1284_v44 = vsub.f32 1.5, %v1283_v52 }
 0x319   : > { %v3425_v38 = vpop.eup %3424  ;;  %v1167_v7 = vsub.f32 %v4303_v57, %v1151_v56  ;;  %v1257_v60 = vadd.f32 1e-05, %v1241_v50  ;;  %v1468_v22 = vadd.f32 %v4402_v40, %v1449_v51 }
 0x31a   : > { %v1285_v30 = vmul.f32 %v3423_v14, %v1284_v44  ;;  %v1291_v24 = vmul.f32 %v3425_v38, %v4377_v13  ;;  %vm1297_vm10 = vweird.f32 %v3425_v38 }
 0x31b   : > { %3426 = vrsqrt.f32 %v1257_v60  ;;  %1520 = vmatmul.f32.vlgmr.msra.gmra.mxu1 %v1468_v22  ;;  %v4414_v29 = vsel %vm614_vm0, %v1167_v7, 0.0  ;;  %vm1298_vm12 = vmor %vm1296_vm11, %vm1297_vm10  ;;  %vm1306_vm14 = vweird.f32 %v1257_v60 }
 0x31c   : > { %v1292_v46 = vmul.f32 %v3425_v38, %v1291_v24  ;;  %v1199_v15 = vmul.f32 %v4414_v29, %v4414_v29  ;;  %v1289_v58 = vsel %vm1288_vm9, %v3423_v14, %v1285_v30 }
 0x31d   : > { %v1431_v16 = vmul.f32 %v1289_v58, %v4272_v4  ;;  %v4427_v4 = vsel %vm614_vm0, %v1173_v63, 0.0 }
 0x31e   : > { %v1293_v59 = vmul.f32 0.5, %v1292_v46  ;;  %v1131_v61 = vpop.xlane.xlu2 %1130  ;;  %v1215_v35 = vpop.xlane.xlu1 %1214  ;;  %1224 = vadd.xlane.f32.xlu2 %v1199_v15  ;;  %1234 = vadd.xlane.f32.xlu0 %v1204_v34  ;;  %v1205_v50 = vmul.f32 %v4427_v4, %v4427_v4 }
 0x31f   : > { %v1152_v25 = vmul.f32 0.03125, %v1131_v61  ;;  %v1242_v8 = vmul.f32 0.03125, %v1215_v35  ;;  %v1450_v10 = vmul.f32 %v4391_v62, %v1431_v16 }
 0x320   : > { %v1294_v18 = vsub.f32 1.5, %v1293_v59 }
 0x321   : > { %v3427_v43 = vpop.eup %3426  ;;  %v1168_v27 = vsub.f32 %v4317_v48, %v1152_v25  ;;  %v1258_v0 = vadd.f32 1e-05, %v1242_v8  ;;  %v1469_v14 = vadd.f32 %v4402_v40, %v1450_v10 }
 0x322   : > { %v1295_v49 = vmul.f32 %v3425_v38, %v1294_v18  ;;  %v1301_v52 = vmul.f32 %v3427_v43, %v1257_v60  ;;  %vm1307_vm13 = vweird.f32 %v3427_v43 }
 0x323   : > { %3428 = vrsqrt.f32 %v1258_v0  ;;  %1523 = vmatmul.f32.gmra.mxu1 %v1469_v14  ;;  %v4432_v17 = vsel %vm614_vm0, %v1168_v27, 0.0  ;;  %vm1308_vm15 = vmor %vm1306_vm14, %vm1307_vm13 }
 0x324   : > { %v1302_v53 = vmul.f32 %v3427_v43, %v1301_v52  ;;  %v1200_v56 = vmul.f32 %v4432_v17, %v4432_v17  ;;  %v1299_v51 = vsel %vm1298_vm12, %v3425_v38, %v1295_v49 }
 0x325   : > { %v1432_v44 = vmul.f32 %v1299_v51, %v4286_v42 }
 0x326   : > { %v1303_v6 = vmul.f32 0.5, %v1302_v53  ;;  %v1133_v13 = vpop.xlane.xlu2 %1132  ;;  %v1217_v7 = vpop.xlane.xlu1 %1216  ;;  %1226 = vadd.xlane.f32.xlu1 %v1200_v56  ;;  %1236 = vadd.xlane.f32.xlu2 %v1205_v50 }
 0x327   : > { %v1153_v22 = vmul.f32 0.03125, %v1133_v13  ;;  %v1243_v30 = vmul.f32 0.03125, %v1217_v7  ;;  %v1451_v24 = vmul.f32 %v4391_v62, %v1432_v44 }
 0x328   : > { %v1304_v46 = vsub.f32 1.5, %v1303_v6 }
 0x329   : > { %v3429_v15 = vpop.eup %3428  ;;  %v1169_v34 = vsub.f32 %v4325_v19, %v1153_v22  ;;  %v1259_v58 = vadd.f32 1e-05, %v1243_v30  ;;  %v1470_v63 = vadd.f32 %v4402_v40, %v1451_v24 }
 0x32a   : > { %v1305_v38 = vmul.f32 %v3427_v43, %v1304_v46  ;;  %v1311_v42 = vmul.f32 %v3429_v15, %v1258_v0  ;;  %vm1317_vm1 = vweird.f32 %v3429_v15 }
 0x32b   : > { %3430 = vrsqrt.f32 %v1259_v58  ;;  %1526 = vmatmul.f32.gmra.mxu1 %v1470_v63  ;;  %v4444_v16 = vsel %vm614_vm0, %v1169_v34, 0.0  ;;  %vm1316_vm0 = vweird.f32 %v1258_v0  ;;  %vm1326_vm4 = vweird.f32 %v1259_v58 }
 0x32c   : > { %v1312_v59 = vmul.f32 %v3429_v15, %v1311_v42  ;;  %v1201_v61 = vmul.f32 %v4444_v16, %v4444_v16  ;;  %v1309_v35 = vsel %vm1308_vm15, %v3427_v43, %v1305_v38  ;;  %vm1318_vm2 = vmor %vm1316_vm0, %vm1317_vm1 }
 0x32d   : > { %v1433_v25 = vmul.f32 %v1309_v35, %v4300_v21 }
 0x32e   : > { %v1313_v8 = vmul.f32 0.5, %v1312_v59  ;;  %1228 = vadd.xlane.f32.xlu0 %v1201_v61  ;;  %v1219_v10 = vpop.xlane.xlu0 %1218 }
 0x32f   : > { %v1244_v18 = vmul.f32 0.03125, %v1219_v10  ;;  %v1452_v60 = vmul.f32 %v4391_v62, %v1433_v25 }
 0x330   : > { %v1314_v27 = vsub.f32 1.5, %v1313_v8 }
 0x331   : > { %v3431_v14 = vpop.eup %3430  ;;  %v1260_v49 = vadd.f32 1e-05, %v1244_v18  ;;  %v1471_v32 = vadd.f32 %v4402_v40, %v1452_v60 }
 0x332   : > { %v1315_v52 = vmul.f32 %v3429_v15, %v1314_v27  ;;  %v1321_v53 = vmul.f32 %v3431_v14, %v1259_v58  ;;  %vm1327_vm3 = vweird.f32 %v3431_v14 }
 0x333   : > { %3432 = vrsqrt.f32 %v1260_v49  ;;  %1529 = vmatmul.f32.gmra.mxu1 %v1471_v32  ;;  %vm1328_vm5 = vmor %vm1326_vm4, %vm1327_vm3  ;;  %vm1336_vm7 = vweird.f32 %v1260_v49 }
 0x334   : > { %v1322_v43 = vmul.f32 %v3431_v14, %v1321_v53  ;;  %v1319_v21 = vsel %vm1318_vm2, %v3429_v15, %v1315_v52 }
 0x335   : > { %v1434_v56 = vmul.f32 %v1319_v21, %v4314_v54 }
 0x336   : > { %v1323_v50 = vmul.f32 0.5, %v1322_v43  ;;  %v1231_v51 = vpop.xlane.xlu2 %1230 }
 0x337   : > { %v1250_v44 = vmul.f32 0.03125, %v1231_v51  ;;  %v1453_v6 = vmul.f32 %v4391_v62, %v1434_v56 }
 0x338   : > { %v1324_v13 = vsub.f32 1.5, %v1323_v50 }
 0x339   : > { %v3433_v7 = vpop.eup %3432  ;;  %v1266_v22 = vadd.f32 1e-05, %v1250_v44  ;;  %v1472_v30 = vadd.f32 %v4402_v40, %v1453_v6 }
 0x33a   : > { %v1325_v0 = vmul.f32 %v3431_v14, %v1324_v13  ;;  %v1331_v24 = vmul.f32 %v3433_v7, %v1260_v49  ;;  %vm1337_vm6 = vweird.f32 %v3433_v7 }
 0x33b   : > { %3434 = vrsqrt.f32 %v1266_v22  ;;  %1532 = vmatmul.f32.gmra.mxu1 %v1472_v30  ;;  %vm1338_vm8 = vmor %vm1336_vm7, %vm1337_vm6  ;;  %vm1396_vm10 = vweird.f32 %v1266_v22 }
 0x33c   : > { %v1332_v46 = vmul.f32 %v3433_v7, %v1331_v24  ;;  %v1329_v15 = vsel %vm1328_vm5, %v3431_v14, %v1325_v0 }
 0x33d   : > { %v1435_v54 = vmul.f32 %v1329_v15, %v4329_v9 }
 0x33e   : > { %v1333_v34 = vmul.f32 0.5, %v1332_v46 }
 0x33f   : > { %v1454_v63 = vmul.f32 %v4391_v62, %v1435_v54 }
 0x340   : > { %v1334_v38 = vsub.f32 1.5, %v1333_v34 }
 0x341   : > { %v3435_v42 = vpop.eup %3434  ;;  %v1473_v59 = vadd.f32 %v4402_v40, %v1454_v63 }
 0x342   : > { %v1335_v61 = vmul.f32 %v3433_v7, %v1334_v38  ;;  %v1391_v35 = vmul.f32 %v3435_v42, %v1266_v22  ;;  %vm1397_vm9 = vweird.f32 %v3435_v42  ;;  %v2288_v38 = vld [vmem:[%s3665_s3 + $0x78] sm:$0xff] }
 0x343   : > { %1535 = vmatmul.f32.gmra.mxu1 %v1473_v59  ;;  %vm1398_vm11 = vmor %vm1396_vm10, %vm1397_vm9  ;;  %2293 = vmatpush.msra.mxu2 %v2288_v38 }
 0x344   : > { %v1392_v58 = vmul.f32 %v3435_v42, %v1391_v35  ;;  %v1339_v25 = vsel %vm1338_vm8, %v3433_v7, %v1335_v61  ;;  %v4481_v35 = vld [vmem:[%s3660_s12] ss:$0 sm:$0xff]  ;;  %3341 = vmatpush.msra.mxu3 %v2288_v38 }
 0x345   : > { %v1436_v8 = vmul.f32 %v1339_v25, %v4339_v47  ;;  %v2287_v25 = vld [vmem:[%s3665_s3 + $0x70] sm:$0xff] }
 0x346   : > { %v1393_v10 = vmul.f32 0.5, %v1392_v58  ;;  %2294 = vmatpush.msra.mxu2 %v2287_v25  ;;  %3342 = vmatpush.msra.mxu3 %v2287_v25 }
 0x347   : > { %v1455_v9 = vmul.f32 %v4391_v62, %v1436_v8 }
 0x348   : > { %v1394_v18 = vsub.f32 1.5, %v1393_v10 }
 0x349   : > { %v1474_v60 = vadd.f32 %v4402_v40, %v1455_v9 }
 0x34a   : > { %v1395_v27 = vmul.f32 %v3435_v42, %v1394_v18 }
 0x34b   : > { %1538 = vmatmul.f32.gmra.mxu1 %v1474_v60 }
 0x34c   : > { %v1399_v14 = vsel %vm1398_vm11, %v3435_v42, %v1395_v27  ;;  %v2286_v27 = vld [vmem:[%s3665_s3 + $0x68] sm:$0xff] }
 0x34d   : > { %v1442_v49 = vmul.f32 %v1399_v14, %v4346_v28  ;;  %2295 = vmatpush.msra.mxu2 %v2286_v27  ;;  %3343 = vmatpush.msra.mxu3 %v2286_v27 }
 0x34f   : > { %v1461_v32 = vmul.f32 %v4391_v62, %v1442_v49 }
 0x351   : > { %v1480_v52 = vadd.f32 %v4402_v40, %v1461_v32 }
 0x353   : > { %1556 = vmatmul.f32.vlgmr.msrb.gmra.mxu3 %v1480_v52 }
 0x381   : > { %v1221_v47 = vpop.xlane.xlu1 %1220 }
 0x382   : > { %v1245_v53 = vmul.f32 0.03125, %v1221_v47 }
 0x384   : > { %v1261_v43 = vadd.f32 1e-05, %v1245_v53 }
 0x386   : > { %3436 = vrsqrt.f32 %v1261_v43  ;;  %vm1346_vm13 = vweird.f32 %v1261_v43 }
 0x389   : > { %v1233_v21 = vpop.xlane.xlu1 %1232  ;;  %v1223_v56 = vpop.xlane.xlu0 %1222 }
 0x38a   : > { %v1251_v50 = vmul.f32 0.03125, %v1233_v21  ;;  %v1246_v51 = vmul.f32 0.03125, %v1223_v56  ;;  %v2285_v56 = vld [vmem:[%s3665_s3 + $0x60] sm:$0xff] }
 0x38b   : > { %2296 = vmatpush.msra.mxu2 %v2285_v56  ;;  %3344 = vmatpush.msra.mxu3 %v2285_v56 }
 0x38c   : > { %v3437_v44 = vpop.eup %3436  ;;  %v4463_v6 = vadd.f32 1e-05, %v1251_v50  ;;  %v4465_v13 = vadd.f32 1e-05, %v1246_v51 }
 0x38d   : > { %v1341_v28 = vmul.f32 %v3437_v44, %v1261_v43  ;;  %vm1347_vm12 = vweird.f32 %v3437_v44 }
 0x38e   : > { %3438 = vrsqrt.f32 %v4463_v6  ;;  %vm1348_vm14 = vmor %vm1346_vm13, %vm1347_vm12  ;;  %vm1406_vm0 = vweird.f32 %v4463_v6  ;;  %vm1356_vm3 = vweird.f32 %v4465_v13 }
 0x38f   : > { %v1342_v7 = vmul.f32 %v3437_v44, %v1341_v28  ;;  %3440 = vrsqrt.f32 %v4465_v13 }
 0x391   : > { %v1343_v22 = vmul.f32 0.5, %v1342_v7  ;;  %v1225_v30 = vpop.xlane.xlu2 %1224  ;;  %v1235_v0 = vpop.xlane.xlu0 %1234 }
 0x392   : > { %v1247_v24 = vmul.f32 0.03125, %v1225_v30  ;;  %v1252_v46 = vmul.f32 0.03125, %v1235_v0  ;;  %v2284_v30 = vld [vmem:[%s3665_s3 + $0x58] sm:$0xff] }
 0x393   : > { %v1344_v15 = vsub.f32 1.5, %v1343_v22  ;;  %2297 = vmatpush.msra.mxu2 %v2284_v30  ;;  %3345 = vmatpush.msra.mxu3 %v2284_v30 }
 0x394   : > { %v4469_v54 = vpop.eup %3438  ;;  %v4471_v34 = vadd.f32 1e-05, %v1247_v24  ;;  %v4473_v63 = vadd.f32 1e-05, %v1252_v46 }
 0x395   : > { %v4476_v42 = vpop.eup %3440  ;;  %v1345_v59 = vmul.f32 %v3437_v44, %v1344_v15  ;;  %v1401_v61 = vmul.f32 %v4469_v54, %v4463_v6  ;;  %vm1407_vm15 = vweird.f32 %v4469_v54 }
 0x396   : > { %v1351_v58 = vmul.f32 %v4476_v42, %v4465_v13  ;;  %3442 = vrsqrt.f32 %v4471_v34  ;;  %vm1357_vm1 = vweird.f32 %v4476_v42  ;;  %vm4520_vm2 = vmor %vm1406_vm0, %vm1407_vm15  ;;  %vm1366_vm7 = vweird.f32 %v4471_v34 }
 0x397   : > { %v1402_v8 = vmul.f32 %v4469_v54, %v1401_v61  ;;  %3444 = vrsqrt.f32 %v4473_v63  ;;  %v1349_v10 = vsel %vm1348_vm14, %v3437_v44, %v1345_v59  ;;  %v2283_v61 = vld [vmem:[%s3665_s3 + $0x50] sm:$0xff]  ;;  %vm1358_vm4 = vmor %vm1356_vm3, %vm1357_vm1  ;;  %vm1416_vm8 = vweird.f32 %v4473_v63 }
 0x398   : > { %v1352_v9 = vmul.f32 %v4476_v42, %v1351_v58  ;;  %v1521_v18 = vpop.f32.mrf.mxu1  ;;  %v1437_v60 = vmul.f32 %v1349_v10, %v4367_v23  ;;  %2298 = vmatpush.msra.mxu2 %v2283_v61  ;;  %3346 = vmatpush.msra.mxu3 %v2283_v61 }
 0x399   : > { %v1403_v14 = vmul.f32 0.5, %v1402_v8  ;;  %v4493_v49 = vadd.f32 %v4481_v35, %v1521_v18  ;;  %v1227_v32 = vpop.xlane.xlu1 %1226  ;;  %v1237_v52 = vpop.xlane.xlu2 %1236 }
 0x39a   : > { %v1353_v47 = vmul.f32 0.5, %v1352_v9  ;;  %v1248_v53 = vmul.f32 0.03125, %v1227_v32  ;;  %v1253_v43 = vmul.f32 0.03125, %v1237_v52  ;;  %v1456_v21 = vmul.f32 %v4391_v62, %v1437_v60  ;;  %v2282_v9 = vld [vmem:[%s3665_s3 + $0x48] sm:$0xff] }
 0x39b   : > { %v1404_v50 = vsub.f32 1.5, %v1403_v14  ;;  %v4500_v23 = vmul.f32 0.70710677, %v4493_v49  ;;  %2299 = vmatpush.msra.mxu2 %v2282_v9  ;;  %3347 = vmatpush.msra.mxu3 %v2282_v9 }
 0x39c   : > { %v4502_v51 = vpop.eup %3442  ;;  %v1354_v44 = vsub.f32 1.5, %v1353_v47  ;;  %v4504_v28 = vadd.f32 1e-05, %v1248_v53  ;;  %v4506_v7 = vadd.f32 1e-05, %v1253_v43  ;;  %v1475_v22 = vadd.f32 %v4402_v40, %v1456_v21  ;;  %v2281_v53 = vld [vmem:[%s3665_s3 + $0x40] sm:$0xff] }
 0x39d   : > { %v4510_v0 = vpop.eup %3444  ;;  %v1405_v24 = vmul.f32 %v4469_v54, %v1404_v50  ;;  %v1361_v46 = vmul.f32 %v4502_v51, %v4471_v34  ;;  %v1601_v15 = vmul.f32 %v4500_v23, %v4500_v23  ;;  %2300 = vmatpush.msra.mxu2 %v2281_v53  ;;  %3348 = vmatpush.msra.mxu3 %v2281_v53  ;;  %vm1367_vm5 = vweird.f32 %v4502_v51 }
 0x39e   : > { %v1355_v59 = vmul.f32 %v4476_v42, %v1354_v44  ;;  %v1411_v6 = vmul.f32 %v4510_v0, %v4473_v63  ;;  %3446 = vrsqrt.f32 %v4504_v28  ;;  %1541 = vmatmul.f32.gmra.mxu1 %v1475_v22  ;;  %v2280_v22 = vld [vmem:[%s3665_s3 + $0x38] sm:$0xff]  ;;  %vm1417_vm6 = vweird.f32 %v4510_v0  ;;  %vm4578_vm9 = vmor %vm1366_vm7, %vm1367_vm5 }
 0x39f   : > { %v1362_v58 = vmul.f32 %v4502_v51, %v1361_v46  ;;  %3448 = vrsqrt.f32 %v4506_v7  ;;  %v1409_v10 = vsel %vm4520_vm2, %v4469_v54, %v1405_v24  ;;  %v4540_v60 = vmin.f32 %v1601_v15, 16.0  ;;  %2301 = vmatpush.msra.mxu2 %v2280_v22  ;;  %3349 = vmatpush.msra.mxu3 %v2280_v22  ;;  %vm4590_vm10 = vmor %vm1416_vm8, %vm1417_vm6 }
 0x3a0   : > { %v1412_v25 = vmul.f32 %v4510_v0, %v1411_v6  ;;  %v1524_v13 = vpop.f32.mrf.mxu1  ;;  %v1359_v8 = vsel %vm1358_vm4, %v4476_v42, %v1355_v59  ;;  %v1443_v42 = vmul.f32 %v1409_v10, %v4374_v36  ;;  %v2279_v6 = vld [vmem:[%s3665_s3 + $0x30] sm:$0xff]  ;;  %v2278_v10 = vld [vmem:[%s3665_s3 + $0x28] sm:$0xff]  ;;  %vm1376_vm13 = vweird.f32 %v4504_v28 }
 0x3a1   : > { %v1363_v18 = vmul.f32 0.5, %v1362_v58  ;;  %v4543_v27 = vadd.f32 %v4481_v35, %v1524_v13  ;;  %v1229_v14 = vpop.xlane.xlu0 %1228  ;;  %v1438_v32 = vmul.f32 %v1359_v8, %v4382_v1  ;;  %v1603_v24 = vmul.f32 2.1237322e-06, %v4540_v60  ;;  %2302 = vmatpush.msra.mxu2 %v2279_v6  ;;  %3350 = vmatpush.msra.mxu3 %v2279_v6 }
 0x3a2   : > { %v1413_v52 = vmul.f32 0.5, %v1412_v25  ;;  %v1249_v47 = vmul.f32 0.03125, %v1229_v14  ;;  %v1462_v44 = vmul.f32 %v4391_v62, %v1443_v42  ;;  %vm1426_vm14 = vweird.f32 %v4506_v7 }
 0x3a3   : > { %v1364_v43 = vsub.f32 1.5, %v1363_v18  ;;  %v4549_v54 = vmul.f32 0.70710677, %v4543_v27  ;;  %v1457_v1 = vmul.f32 %v4391_v62, %v1438_v32  ;;  %v1604_v18 = vadd.f32 0.00028619796, %v1603_v24  ;;  %2303 = vmatpush.msra.mxu2 %v2278_v10  ;;  %3351 = vmatpush.msra.mxu3 %v2278_v10 }
 0x3a4   : > { %v4551_v21 = vpop.eup %3446  ;;  %v1414_v56 = vsub.f32 1.5, %v1413_v52  ;;  %v4553_v50 = vadd.f32 1e-05, %v1249_v47  ;;  %v1481_v63 = vadd.f32 %v4402_v40, %v1462_v44  ;;  %v1614_v44 = vmul.f32 3.8918573e-05, %v4540_v60 }
 0x3a5   : > { %v4558_v30 = vpop.eup %3448  ;;  %v1365_v36 = vmul.f32 %v4502_v51, %v1364_v43  ;;  %v1371_v46 = vmul.f32 %v4551_v21, %v4504_v28  ;;  %v1641_v59 = vmul.f32 %v4549_v54, %v4549_v54  ;;  %v1476_v34 = vadd.f32 %v4402_v40, %v1457_v1 }
 0x3a6   : > { %v1415_v15 = vmul.f32 %v4510_v0, %v1414_v56  ;;  %v1421_v38 = vmul.f32 %v4558_v30, %v4506_v7  ;;  %3450 = vrsqrt.f32 %v4553_v50  ;;  %1559 = vmatmul.f32.gmra.mxu3 %v1481_v63  ;;  %v2277_v56 = vld [vmem:[%s3665_s3 + $0x20] sm:$0xff]  ;;  %vm1377_vm11 = vweird.f32 %v4551_v21  ;;  %v2275_v7 = vld [vmem:[%s3665_s3 + $0x10] sm:$0xff] }
 0x3a7   : > { %v1372_v61 = vmul.f32 %v4551_v21, %v1371_v46  ;;  %v4583_v13 = vmin.f32 %v1641_v59, 16.0  ;;  %v1369_v52 = vsel %vm4578_vm9, %v4502_v51, %v1365_v36  ;;  %1544 = vmatmul.f32.gmra.mxu1 %v1476_v34  ;;  %2304 = vmatpush.msra.mxu2 %v2277_v56  ;;  %vm1427_vm12 = vweird.f32 %v4558_v30  ;;  %vm4625_vm15 = vmor %vm1376_vm13, %vm1377_vm11 }
 0x3a8   : > { %v1422_v25 = vmul.f32 %v4558_v30, %v1421_v38  ;;  %v1527_v8 = vpop.f32.mrf.mxu1  ;;  %v1439_v53 = vmul.f32 %v1369_v52, %v4414_v29  ;;  %v1419_v43 = vsel %vm4590_vm10, %v4510_v0, %v1415_v15  ;;  %3352 = vmatpush.msra.mxu3 %v2277_v56  ;;  %v2276_v0 = vld [vmem:[%s3665_s3 + $0x18] sm:$0xff]  ;;  %v1605_v38 = vmul.f32 %v1604_v18, %v4540_v60  ;;  %vm4635_vm1 = vmor %vm1426_vm14, %vm1427_vm12  ;;  %v2273_v56 = vld [vmem:[%s3665_s3] sm:$0xff] }
 0x3a9   : > { %v1373_v14 = vmul.f32 0.5, %v1372_v61  ;;  %v4595_v32 = vadd.f32 %v4481_v35, %v1527_v8  ;;  %v1643_v42 = vmul.f32 2.1237322e-06, %v4583_v13  ;;  %v1444_v36 = vmul.f32 %v1419_v43, %v4407_v26  ;;  %2305 = vmatpush.msra.mxu2 %v2276_v0 }
 0x3aa   : > { %v1423_v47 = vmul.f32 0.5, %v1422_v25  ;;  %v1458_v29 = vmul.f32 %v4391_v62, %v1439_v53  ;;  %3353 = vmatpush.msra.mxu3 %v2276_v0  ;;  %v1615_v63 = vadd.f32 0.001143296, %v1614_v44  ;;  %vm1386_vm2 = vweird.f32 %v4553_v50 }
 0x3ab   : > { %v1374_v1 = vsub.f32 1.5, %v1373_v14  ;;  %v4608_v51 = vmul.f32 0.70710677, %v4595_v32  ;;  %v1644_v6 = vadd.f32 0.00028619796, %v1643_v42  ;;  %v1463_v34 = vmul.f32 %v4391_v62, %v1444_v36  ;;  %2306 = vmatpush.msra.mxu2 %v2275_v7  ;;  %v2274_v14 = vld [vmem:[%s3665_s3 + $0x8] sm:$0xff] }
 0x3ac   : > { %v1424_v22 = vsub.f32 1.5, %v1423_v47  ;;  %v4615_v24 = vpop.eup %3450  ;;  %v1477_v25 = vadd.f32 %v4402_v40, %v1458_v29  ;;  %3354 = vmatpush.msra.mxu3 %v2275_v7  ;;  %v1654_v7 = vmul.f32 3.8918573e-05, %v4583_v13 }
 0x3ad   : > { %v1375_v46 = vmul.f32 %v4551_v21, %v1374_v1  ;;  %v1681_v15 = vmul.f32 %v4608_v51, %v4608_v51  ;;  %v1381_v28 = vmul.f32 %v4615_v24, %v4553_v50  ;;  %v1482_v47 = vadd.f32 %v4402_v40, %v1463_v34  ;;  %2307 = vmatpush.msra.mxu2 %v2274_v14 }
 0x3ae   : > { %v1425_v59 = vmul.f32 %v4558_v30, %v1424_v22  ;;  %3355 = vmatpush.msra.mxu3 %v2274_v14  ;;  %v1606_v1 = vadd.f32 0.0036580483, %v1605_v38  ;;  %v1616_v22 = vmul.f32 %v1615_v63, %v4540_v60  ;;  %vm1387_vm0 = vweird.f32 %v4615_v24 }
 0x3af   : > { %v4639_v58 = vmin.f32 %v1681_v15, 16.0  ;;  %v1382_v8 = vmul.f32 %v4615_v24, %v1381_v28  ;;  %v1379_v9 = vsel %vm4625_vm15, %v4551_v21, %v1375_v46  ;;  %1547 = vmatmul.f32.gmra.mxu1 %v1477_v25  ;;  %1562 = vmatmul.f32.gmra.mxu3 %v1482_v47  ;;  %vm1388_vm3 = vmor %vm1386_vm2, %vm1387_vm0 }
 0x3b0   : > { %v1530_v10 = vpop.f32.mrf.mxu1  ;;  %v1429_v18 = vsel %vm4635_vm1, %v4558_v30, %v1425_v59  ;;  %v1440_v43 = vmul.f32 %v1379_v9, %v4432_v17  ;;  %v1645_v30 = vmul.f32 %v1644_v6, %v4583_v13  ;;  %2308 = vmatpush.msra.mxu2 %v2273_v56  ;;  %3356 = vmatpush.msra.mxu3 %v2273_v56  ;;  %v1617_v46 = vadd.f32 0.014752088, %v1616_v22 }
 0x3b1   : > { %v1683_v52 = vmul.f32 2.1237322e-06, %v4639_v58  ;;  %v4654_v42 = vadd.f32 %v4481_v35, %v1530_v10  ;;  %v1383_v53 = vmul.f32 0.5, %v1382_v8  ;;  %v1445_v21 = vmul.f32 %v1429_v18, %v4427_v4 }
 0x3b2   : > { %v1459_v0 = vmul.f32 %v4391_v62, %v1440_v43  ;;  %v1607_v59 = vmul.f32 %v1606_v1, %v4540_v60  ;;  %v1618_v28 = vmul.f32 %v1617_v46, %v4540_v60  ;;  %v1646_v61 = vadd.f32 0.0036580483, %v1645_v30 }
 0x3b3   : > { %v1684_v44 = vadd.f32 0.00028619796, %v1683_v52  ;;  %v1384_v29 = vsub.f32 1.5, %v1383_v53  ;;  %v4663_v36 = vmul.f32 0.70710677, %v4654_v42  ;;  %v1464_v17 = vmul.f32 %v4391_v62, %v1445_v21 }
 0x3b4   : > { %v1478_v26 = vadd.f32 %v4402_v40, %v1459_v0  ;;  %v1694_v63 = vmul.f32 3.8918573e-05, %v4639_v58  ;;  %v1619_v18 = vadd.f32 0.112945676, %v1618_v28  ;;  %v1655_v52 = vadd.f32 0.001143296, %v1654_v7 }
 0x3b5   : > { %v1685_v4 = vmul.f32 %v1684_v44, %v4639_v58  ;;  %v1385_v15 = vmul.f32 %v4615_v24, %v1384_v29  ;;  %v1721_v38 = vmul.f32 %v4663_v36, %v4663_v36  ;;  %v1483_v6 = vadd.f32 %v4402_v40, %v1464_v17 }
 0x3b6   : > { %v1695_v47 = vadd.f32 0.001143296, %v1694_v63  ;;  %v1608_v53 = vadd.f32 0.05243302, %v1607_v59  ;;  %v1620_v21 = vmul.f32 %v1619_v18, %v4540_v60  ;;  %v1656_v56 = vmul.f32 %v1655_v52, %v4583_v13 }
 0x3b7   : > { %v4677_v25 = vmin.f32 %v1721_v38, 16.0  ;;  %v1389_v50 = vsel %vm1388_vm3, %v4615_v24, %v1385_v15  ;;  %v1686_v8 = vadd.f32 0.0036580483, %v1685_v4  ;;  %1550 = vmatmul.f32.gmra.mxu1 %v1478_v26  ;;  %1565 = vmatmul.f32.gmra.mxu3 %v1483_v6  ;;  %v1647_v1 = vmul.f32 %v1646_v61, %v4583_v13 }
 0x3b8   : > { %v1533_v34 = vpop.f32.mrf.mxu1  ;;  %v1441_v9 = vmul.f32 %v1389_v50, %v4444_v16  ;;  %v1696_v30 = vmul.f32 %v1695_v47, %v4639_v58  ;;  %v1621_v29 = vadd.f32 0.4994258, %v1620_v21  ;;  %v1657_v0 = vadd.f32 0.014752088, %v1656_v56 }
 0x3b9   : > { %v4682_v10 = vadd.f32 %v4481_v35, %v1533_v34  ;;  %v1723_v14 = vmul.f32 2.1237322e-06, %v4677_v25  ;;  %v1687_v16 = vmul.f32 %v1686_v8, %v4639_v58  ;;  %v1609_v4 = vmul.f32 %v1608_v53, %v4540_v60 }
 0x3ba   : > { %v1460_v24 = vmul.f32 %v4391_v62, %v1441_v9  ;;  %v1697_v17 = vadd.f32 0.014752088, %v1696_v30  ;;  %v1622_v15 = vmul.f32 %v1621_v29, %v4540_v60  ;;  %v1658_v38 = vmul.f32 %v1657_v0, %v4583_v13 }
 0x3bb   : > { %v4687_v43 = vmul.f32 0.70710677, %v4682_v10  ;;  %v1724_v44 = vadd.f32 0.00028619796, %v1723_v14  ;;  %v1734_v26 = vmul.f32 3.8918573e-05, %v4677_v25 }
 0x3bc   : > { %v1479_v22 = vadd.f32 %v4402_v40, %v1460_v24  ;;  %v1648_v59 = vadd.f32 0.05243302, %v1647_v1  ;;  %v1688_v6 = vadd.f32 0.05243302, %v1687_v16  ;;  %v4706_v7 = vadd.f32 1.0, %v1622_v15 }
 0x3bd   : > { %v1761_v62 = vmul.f32 %v4687_v43, %v4687_v43  ;;  %v1725_v40 = vmul.f32 %v1724_v44, %v4677_v25  ;;  %v1659_v61 = vadd.f32 0.112945676, %v1658_v38  ;;  %v1698_v34 = vmul.f32 %v1697_v17, %v4639_v58 }
 0x3be   : > { %v1610_v50 = vadd.f32 0.18741608, %v1609_v4  ;;  %3452 = vrcp.f32 %v4706_v7  ;;  %v1735_v9 = vadd.f32 0.001143296, %v1734_v26  ;;  %v1649_v18 = vmul.f32 %v1648_v59, %v4583_v13 }
 0x3bf   : > { %1553 = vmatmul.f32.gmra.mxu1 %v1479_v22  ;;  %v4709_v63 = vmin.f32 %v1761_v62, 16.0  ;;  %v1689_v14 = vmul.f32 %v1688_v6, %v4639_v58  ;;  %v1726_v52 = vadd.f32 0.0036580483, %v1725_v40  ;;  %v1660_v53 = vmul.f32 %v1659_v61, %v4583_v13 }
 0x3c0   : > { %v1536_v46 = vpop.f32.mrf.mxu1  ;;  %v1699_v24 = vadd.f32 0.112945676, %v1698_v34  ;;  %v1611_v21 = vmul.f32 %v1610_v50, %v4540_v60  ;;  %v1736_v22 = vmul.f32 %v1735_v9, %v4677_v25  ;;  %v1650_v29 = vadd.f32 0.18741608, %v1649_v18 }
 0x3c1   : > { %v4703_v28 = vadd.f32 %v4481_v35, %v1536_v46  ;;  %v1763_v56 = vmul.f32 2.1237322e-06, %v4709_v63  ;;  %v1661_v30 = vadd.f32 0.4994258, %v1660_v53  ;;  %v1690_v62 = vadd.f32 0.18741608, %v1689_v14 }
 0x3c2   : > { %v1700_v44 = vmul.f32 %v1699_v24, %v4639_v58  ;;  %v1727_v17 = vmul.f32 %v1726_v52, %v4677_v25  ;;  %v1612_v15 = vadd.f32 1.1283791, %v1611_v21  ;;  %v1737_v40 = vadd.f32 0.014752088, %v1736_v22 }
 0x3c3   : > { %v4712_v8 = vmul.f32 0.70710677, %v4703_v28  ;;  %v1662_v60 = vmul.f32 %v1661_v30, %v4583_v13  ;;  %v1764_v38 = vadd.f32 0.00028619796, %v1763_v56  ;;  %v1651_v61 = vmul.f32 %v1650_v29, %v4583_v13 }
 0x3c4   : > { %v3453_v4 = vpop.eup %3452  ;;  %v1701_v46 = vadd.f32 0.4994258, %v1700_v44  ;;  %v1691_v18 = vmul.f32 %v1690_v62, %v4639_v58  ;;  %v1728_v14 = vadd.f32 0.05243302, %v1727_v17  ;;  %v1635_v52 = vand.u32 2147483648, %v4706_v7 }
 0x3c5   : > { %v1801_v47 = vmul.f32 %v4712_v8, %v4712_v8  ;;  %v1625_v26 = vmul.f32 %v3453_v4, %v4706_v7  ;;  %v4733_v6 = vadd.f32 1.0, %v1662_v60  ;;  %vm1630_vm4 = vweird.f32 %v3453_v4 }
 0x3c6   : > { %v1702_v9 = vmul.f32 %v1701_v46, %v4639_v58  ;;  %v1633_v24 = vand.u32 2147483647, %v4706_v7  ;;  %v1569_v13 = vmul.f32 0.5, %v4493_v49  ;;  %v1652_v30 = vadd.f32 1.1283791, %v1651_v61 }
 0x3c7   : > { %v4722_v1 = vmin.f32 %v1801_v47, 16.0  ;;  %v1626_v50 = vsub.f32 1.0, %v1625_v26  ;;  %3454 = vrcp.f32 %v4733_v6  ;;  %v1765_v47 = vmul.f32 %v1764_v38, %v4709_v63 }
 0x3c8   : > { %v1539_v16 = vpop.f32.mrf.mxu1  ;;  %v4746_v56 = vadd.f32 1.0, %v1702_v9  ;;  %vm1629_vm5 = vweird.f32 %v4706_v7  ;;  %v1692_v22 = vadd.f32 1.1283791, %v1691_v18  ;;  %v1729_v29 = vmul.f32 %v1728_v14, %v4677_v25 }
 0x3c9   : > { %v4727_v0 = vadd.f32 %v4481_v35, %v1539_v16  ;;  %v1803_v59 = vmul.f32 2.1237322e-06, %v4722_v1  ;;  %v1627_v53 = vmul.f32 %v3453_v4, %v1626_v50  ;;  %v1738_v16 = vmul.f32 %v1737_v40, %v4677_v25  ;;  %vm1631_vm6 = vmor %vm1629_vm5, %vm1630_vm4 }
 0x3ca   : > { %v1636_v62 = vor.u32 1.1754944e-38, %v1635_v52  ;;  %3456 = vrcp.f32 %v4746_v56  ;;  %v1613_v49 = vmul.f32 %v1612_v15, %v4500_v23  ;;  %v1766_v17 = vadd.f32 0.0036580483, %v1765_v47 }
 0x3cb   : > { %v4737_v34 = vmul.f32 0.70710677, %v4727_v0  ;;  %v1804_v21 = vadd.f32 0.00028619796, %v1803_v59  ;;  %v1628_v44 = vadd.f32 %v3453_v4, %v1627_v53  ;;  %vm1634_vm7 = vcmp.eq.f32.partialorder %v1633_v24, 8.507059e+37 }
 0x3cc   : > { %v1739_v59 = vadd.f32 0.112945676, %v1738_v16  ;;  %v1774_v40 = vmul.f32 3.8918573e-05, %v4709_v63  ;;  %v4758_v7 = vmul.f32 0.5, %v4543_v27  ;;  %v1653_v23 = vmul.f32 %v1652_v30, %v4549_v54 }
 0x3cd   : > { %v1841_v58 = vmul.f32 %v4737_v34, %v4737_v34  ;;  %v1632_v60 = vsel %vm1631_vm6, %v3453_v4, %v1628_v44  ;;  %v3455_v46 = vpop.eup %3454  ;;  %v1805_v38 = vmul.f32 %v1804_v21, %v4722_v1  ;;  %v4765_v4 = vmul.f32 %v1692_v22, %v4608_v51 }
 0x3ce   : > { %v1637_v26 = vsel %vm1634_vm7, %v1636_v62, %v1632_v60  ;;  %v1665_v9 = vmul.f32 %v3455_v46, %v4733_v6  ;;  %v1730_v15 = vadd.f32 0.18741608, %v1729_v29  ;;  %v1673_v14 = vand.u32 2147483647, %v4733_v6 }
 0x3cf   : > { %v4760_v61 = vmin.f32 %v1841_v58, 16.0  ;;  %v1638_v50 = vmul.f32 %v1637_v26, %v1613_v49  ;;  %v1767_v52 = vmul.f32 %v1766_v17, %v4709_v63  ;;  %v1806_v21 = vadd.f32 0.0036580483, %v1805_v38 }
 0x3d0   : > { %v1666_v53 = vsub.f32 1.0, %v1665_v9  ;;  %v3457_v24 = vpop.eup %3456  ;;  %v1675_v16 = vand.u32 2147483648, %v4733_v6  ;;  %v1740_v54 = vmul.f32 %v1739_v59, %v4677_v25  ;;  %v1775_v30 = vadd.f32 0.001143296, %v1774_v40 }
 0x3d1   : > { %v3270_v47 = vclamps-f32 %v1638_v50, 1.0  ;;  %v1843_v51 = vmul.f32 2.1237322e-06, %v4760_v61  ;;  %vm1669_vm8 = vweird.f32 %v4733_v6  ;;  %vm1670_vm9 = vweird.f32 %v3455_v46 }
 0x3d2   : > { %v1667_v22 = vmul.f32 %v3455_v46, %v1666_v53  ;;  %vm4779_vm10 = vcmp.eq.f32.partialorder %v1673_v14, 8.507059e+37  ;;  %v1705_v29 = vmul.f32 %v3457_v24, %v4746_v56  ;;  %v1741_v17 = vadd.f32 0.4994258, %v1740_v54  ;;  %vm1671_vm11 = vmor %vm1669_vm8, %vm1670_vm9 }
 0x3d3   : > { %v2241_v58 = vadd.f32 1.0, %v3270_v47  ;;  %v1814_v60 = vmul.f32 3.8918573e-05, %v4722_v1  ;;  %v1676_v26 = vor.u32 1.1754944e-38, %v1675_v16  ;;  %v1776_v40 = vmul.f32 %v1775_v30, %v4709_v63 }
 0x3d4   : > { %v1668_v38 = vadd.f32 %v3455_v46, %v1667_v22  ;;  %v1706_v59 = vsub.f32 1.0, %v1705_v29  ;;  %v1713_v9 = vand.u32 2147483647, %v4746_v56  ;;  %vm1710_vm12 = vweird.f32 %v3457_v24 }
 0x3d5   : > { %v2257_v62 = vmul.f32 %v2241_v58, %v1569_v13  ;;  %v1715_v13 = vand.u32 2147483648, %v4746_v56  ;;  %v1777_v53 = vadd.f32 0.014752088, %v1776_v40  ;;  %v1815_v58 = vadd.f32 0.001143296, %v1814_v60 }
 0x3d6   : > { %v1557_v18 = vpop.f32.mrf.mxu3  ;;  %v1672_v14 = vsel %vm1671_vm11, %v3455_v46, %v1668_v38  ;;  %v1707_v47 = vmul.f32 %v3457_v24, %v1706_v59  ;;  %vm1709_vm13 = vweird.f32 %v4746_v56  ;;  %vm1714_vm15 = vcmp.eq.f32.partialorder %v1713_v9, 8.507059e+37 }
 0x3d7   : > { %v4770_v27 = vadd.f32 %v4481_v35, %v1557_v18  ;;  %2309 = vmatmul.f32.vlgmr.msra.gmra.mxu2 %v2257_v62  ;;  %v1742_v18 = vmul.f32 %v1741_v17, %v4677_v25  ;;  %v1677_v30 = vsel %vm4779_vm10, %v1676_v26, %v1672_v14  ;;  %vm1711_vm14 = vmor %vm1709_vm13, %vm1710_vm12  ;;  %v1716_v46 = vor.u32 1.1754944e-38, %v1715_v13 }
 0x3d8   : > { %v1678_v6 = vmul.f32 %v1677_v30, %v1653_v23  ;;  %v1708_v22 = vadd.f32 %v3457_v24, %v1707_v47  ;;  %v1778_v17 = vmul.f32 %v1777_v53, %v4709_v63  ;;  %v1816_v56 = vmul.f32 %v1815_v58, %v4722_v1 }
 0x3d9   : > { %v4776_v44 = vmul.f32 0.70710677, %v4770_v27  ;;  %v4800_v29 = vadd.f32 1.0, %v1742_v18  ;;  %v1731_v26 = vmul.f32 %v1730_v15, %v4677_v25  ;;  %v1768_v40 = vadd.f32 0.05243302, %v1767_v52 }
 0x3da   : > { %v3271_v38 = vclamps-f32 %v1678_v6, 1.0  ;;  %v1712_v59 = vsel %vm1711_vm14, %v3457_v24, %v1708_v22  ;;  %v1807_v14 = vmul.f32 %v1806_v21, %v4722_v1  ;;  %v1779_v9 = vadd.f32 0.112945676, %v1778_v17 }
 0x3db   : > { %v2081_v49 = vmul.f32 %v4776_v44, %v4776_v44  ;;  %3458 = vrcp.f32 %v4800_v29  ;;  %v1717_v60 = vsel %vm1714_vm15, %v1716_v46, %v1712_v59  ;;  %v1844_v53 = vadd.f32 0.00028619796, %v1843_v51 }
 0x3dc   : > { %v2242_v18 = vadd.f32 1.0, %v3271_v38  ;;  %v1718_v13 = vmul.f32 %v1717_v60, %v4765_v4  ;;  %v1571_v30 = vmul.f32 0.5, %v4595_v32  ;;  %v1780_v58 = vmul.f32 %v1779_v9, %v4709_v63 }
 0x3dd   : > { %v4788_v50 = vmin.f32 %v2081_v49, 16.0  ;;  %v1817_v25 = vadd.f32 0.014752088, %v1816_v56  ;;  %v1732_v52 = vadd.f32 1.1283791, %v1731_v26  ;;  %v1769_v4 = vmul.f32 %v1768_v40, %v4709_v63 }
 0x3de   : > { %v1854_v22 = vmul.f32 3.8918573e-05, %v4760_v61  ;;  %v1845_v32 = vmul.f32 %v1844_v53, %v4760_v61  ;;  %v1781_v46 = vadd.f32 0.4994258, %v1780_v58  ;;  %v1755_v60 = vand.u32 2147483648, %v4800_v29 }
 0x3df   : > { %v2083_v16 = vmul.f32 2.1237322e-06, %v4788_v50  ;;  %v2094_v54 = vmul.f32 3.8918573e-05, %v4788_v50  ;;  %v1818_v17 = vmul.f32 %v1817_v25, %v4722_v1  ;;  %vm1749_vm0 = vweird.f32 %v4800_v29 }
 0x3e0   : > { %v1855_v38 = vadd.f32 0.001143296, %v1854_v22  ;;  %v1782_v26 = vmul.f32 %v1781_v46, %v4709_v63  ;;  %v1846_v58 = vadd.f32 0.0036580483, %v1845_v32  ;;  %v1756_v25 = vor.u32 1.1754944e-38, %v1755_v60 }
 0x3e1   : > { %v2084_v62 = vadd.f32 0.00028619796, %v2083_v16  ;;  %v2095_v49 = vadd.f32 0.001143296, %v2094_v54  ;;  %v2258_v16 = vmul.f32 %v2242_v18, %v4758_v7  ;;  %v3272_v54 = vclamps-f32 %v1718_v13, 1.0  ;;  %v3459_v15 = vpop.eup %3458 }
 0x3e2   : > { %v1819_v40 = vadd.f32 0.112945676, %v1818_v17  ;;  %v1856_v18 = vmul.f32 %v1855_v38, %v4760_v61  ;;  %vm1750_vm1 = vweird.f32 %v3459_v15  ;;  %v4825_v9 = vadd.f32 1.0, %v1782_v26 }
 0x3e3   : > { %v2085_v35 = vmul.f32 %v2084_v62, %v4788_v50  ;;  %v2096_v23 = vmul.f32 %v2095_v49, %v4788_v50  ;;  %2312 = vmatmul.f32.gmra.mxu2 %v2258_v16  ;;  %v2243_v21 = vadd.f32 1.0, %v3272_v54  ;;  %v1808_v62 = vadd.f32 0.05243302, %v1807_v14  ;;  %vm1751_vm2 = vmor %vm1749_vm0, %vm1750_vm1 }
 0x3e4   : > { %v1745_v49 = vmul.f32 %v3459_v15, %v4800_v29  ;;  %v1820_v53 = vmul.f32 %v1819_v40, %v4722_v1  ;;  %v1857_v16 = vadd.f32 0.014752088, %v1856_v18  ;;  %3460 = vrcp.f32 %v4825_v9 }
 0x3e5   : > { %v2086_v47 = vadd.f32 0.0036580483, %v2085_v35  ;;  %v2097_v24 = vadd.f32 0.014752088, %v2096_v23  ;;  %v1753_v23 = vand.u32 2147483647, %v4800_v29  ;;  %v2259_v56 = vmul.f32 %v2243_v21, %v1571_v30 }
 0x3e6   : > { %v1746_v35 = vsub.f32 1.0, %v1745_v49  ;;  %v1809_v54 = vmul.f32 %v1808_v62, %v4722_v1  ;;  %v1733_v62 = vmul.f32 %v1732_v52, %v4663_v36  ;;  %v1858_v29 = vmul.f32 %v1857_v16, %v4760_v61 }
 0x3e7   : > { %v2098_v6 = vmul.f32 %v2097_v24, %v4788_v50  ;;  %v2087_v51 = vmul.f32 %v2086_v47, %v4788_v50  ;;  %v1770_v24 = vadd.f32 0.18741608, %v1769_v4  ;;  %vm1754_vm3 = vcmp.eq.f32.partialorder %v1753_v23, 8.507059e+37 }
 0x3e8   : > { %v1747_v47 = vmul.f32 %v3459_v15, %v1746_v35  ;;  %v1810_v32 = vadd.f32 0.18741608, %v1809_v54  ;;  %v1847_v46 = vmul.f32 %v1846_v58, %v4760_v61  ;;  %vm1789_vm5 = vweird.f32 %v4825_v9 }
 0x3e9   : > { %v2099_v7 = vadd.f32 0.112945676, %v2098_v6  ;;  %v2088_v13 = vadd.f32 0.05243302, %v2087_v51  ;;  %v1821_v51 = vadd.f32 0.4994258, %v1820_v53 }
 0x3ea   : > { %v1748_v30 = vadd.f32 %v3459_v15, %v1747_v47  ;;  %v3461_v23 = vpop.eup %3460  ;;  %v1811_v26 = vmul.f32 %v1810_v32, %v4722_v1  ;;  %v1848_v40 = vadd.f32 0.05243302, %v1847_v46 }
 0x3eb   : > { %v2100_v59 = vmul.f32 %v2099_v7, %v4788_v50  ;;  %2315 = vmatmul.f32.gmra.mxu2 %v2259_v56  ;;  %v2089_v4 = vmul.f32 %v2088_v13, %v4788_v50  ;;  %v1771_v7 = vmul.f32 %v1770_v24, %v4709_v63  ;;  %v1822_v38 = vmul.f32 %v1821_v51, %v4722_v1 }
 0x3ec   : > { %v1752_v22 = vsel %vm1751_vm2, %v3459_v15, %v1748_v30  ;;  %v1572_v63 = vmul.f32 0.5, %v4654_v42  ;;  %v1785_v52 = vmul.f32 %v3461_v23, %v4825_v9  ;;  %v1795_v42 = vand.u32 2147483648, %v4825_v9 }
 0x3ed   : > { %v2101_v14 = vadd.f32 0.4994258, %v2100_v59  ;;  %v1757_v49 = vsel %vm1754_vm3, %v1756_v25, %v1752_v22  ;;  %v1859_v59 = vadd.f32 0.112945676, %v1858_v29  ;;  %v2090_v35 = vadd.f32 0.18741608, %v2089_v4 }
 0x3ee   : > { %v1758_v17 = vmul.f32 %v1757_v49, %v1733_v62  ;;  %v1772_v15 = vadd.f32 1.1283791, %v1771_v7  ;;  %v4841_v56 = vadd.f32 1.0, %v1822_v38  ;;  %v1786_v47 = vsub.f32 1.0, %v1785_v52 }
 0x3ef   : > { %v2102_v6 = vmul.f32 %v2101_v14, %v4788_v50  ;;  %v1860_v36 = vmul.f32 %v1859_v59, %v4760_v61  ;;  %v2091_v14 = vmul.f32 %v2090_v35, %v4788_v50  ;;  %vm1790_vm4 = vweird.f32 %v3461_v23 }
 0x3f0   : > { %v3273_v60 = vclamps-f32 %v1758_v17, 1.0  ;;  %v1773_v53 = vmul.f32 %v1772_v15, %v4687_v43  ;;  %v1793_v1 = vand.u32 2147483647, %v4825_v9  ;;  %v1812_v58 = vadd.f32 1.1283791, %v1811_v26  ;;  %vm1791_vm7 = vmor %vm1789_vm5, %vm1790_vm4 }
 0x3f1   : > { %v4833_v21 = vadd.f32 1.0, %v2102_v6  ;;  %v1861_v24 = vadd.f32 0.4994258, %v1860_v36  ;;  %v1787_v6 = vmul.f32 %v3461_v23, %v1786_v47  ;;  %v1849_v25 = vmul.f32 %v1848_v40, %v4760_v61 }
 0x3f2   : > { %v2244_v18 = vadd.f32 1.0, %v3273_v60  ;;  %v2092_v50 = vadd.f32 1.1283791, %v2091_v14  ;;  %v1796_v29 = vor.u32 1.1754944e-38, %v1795_v42  ;;  %vm1794_vm8 = vcmp.eq.f32.partialorder %v1793_v1, 8.507059e+37 }
 0x3f3   : > { %3462 = vrcp.f32 %v4833_v21  ;;  %v1862_v30 = vmul.f32 %v1861_v24, %v4760_v61  ;;  %v2115_v43 = vand.u32 2147483648, %v4833_v21  ;;  %v1788_v22 = vadd.f32 %v3461_v23, %v1787_v6 }
 0x3f4   : > { %3464 = vrcp.f32 %v4841_v56  ;;  %v2260_v54 = vmul.f32 %v2244_v18, %v1572_v63  ;;  %v2113_v49 = vand.u32 2147483647, %v4833_v21  ;;  %v1850_v9 = vadd.f32 0.18741608, %v1849_v25 }
 0x3f5   : > { %v4857_v51 = vadd.f32 1.0, %v1862_v30  ;;  %v1792_v32 = vsel %vm1791_vm7, %v3461_v23, %v1788_v22  ;;  %vm2109_vm9 = vweird.f32 %v4833_v21  ;;  %v2093_v59 = vmul.f32 %v2092_v50, %v4776_v44 }
 0x3f6   : > { %2318 = vmatmul.f32.gmra.mxu2 %v2260_v54  ;;  %v1797_v38 = vsel %vm1794_vm8, %v1796_v29, %v1792_v32  ;;  %v2116_v35 = vor.u32 1.1754944e-38, %v2115_v43  ;;  %vm2114_vm11 = vcmp.eq.f32.partialorder %v2113_v49, 8.507059e+37  ;;  %v1833_v23 = vand.u32 2147483647, %v4841_v56 }
 0x3f7   : > { %3466 = vrcp.f32 %v4857_v51  ;;  %v1798_v15 = vmul.f32 %v1797_v38, %v1773_v53  ;;  %v1835_v63 = vand.u32 2147483648, %v4841_v56  ;;  %v1573_v18 = vmul.f32 0.5, %v4682_v10 }
 0x3f8   : > { %v1851_v44 = vmul.f32 %v1850_v9, %v4760_v61  ;;  %vm1829_vm13 = vweird.f32 %v4841_v56  ;;  %v1813_v54 = vmul.f32 %v1812_v58, %v4712_v8  ;;  %vm1834_vm15 = vcmp.eq.f32.partialorder %v1833_v23, 8.507059e+37 }
 0x3f9   : > { %v3463_v13 = vpop.eup %3462  ;;  %v3274_v26 = vclamps-f32 %v1798_v15, 1.0  ;;  %v1836_v53 = vor.u32 1.1754944e-38, %v1835_v63  ;;  %v1581_v10 = vmul.f32 0.5, %v4770_v27  ;;  %v1873_v22 = vand.u32 2147483647, %v4857_v51 }
 0x3fa   : > { %v2105_v16 = vmul.f32 %v3463_v13, %v4833_v21  ;;  %v3465_v62 = vpop.eup %3464  ;;  %vm2110_vm6 = vweird.f32 %v3463_v13  ;;  %v1852_v61 = vadd.f32 1.1283791, %v1851_v44  ;;  %vm1869_vm0 = vweird.f32 %v4857_v51 }
 0x3fb   : > { %v1825_v46 = vmul.f32 %v3465_v62, %v4841_v56  ;;  %vm2111_vm10 = vmor %vm2109_vm9, %vm2110_vm6  ;;  %vm1830_vm12 = vweird.f32 %v3465_v62  ;;  %v2245_v47 = vadd.f32 1.0, %v3274_v26  ;;  %v1875_v56 = vand.u32 2147483648, %v4857_v51 }
 0x3fc   : > { %v2106_v4 = vsub.f32 1.0, %v2105_v16  ;;  %vm1831_vm14 = vmor %vm1829_vm13, %vm1830_vm12  ;;  %v1574_v27 = vmul.f32 0.5, %v4703_v28  ;;  %v1853_v49 = vmul.f32 %v1852_v61, %v4737_v34  ;;  %vm1874_vm3 = vcmp.eq.f32.partialorder %v1873_v22, 8.507059e+37  ;;  %v4880_v28 = vld [vmem:[%s3660_s12] ss:$0 sm:$0xff] }
 0x3fd   : > { %v1826_v60 = vsub.f32 1.0, %v1825_v46  ;;  %v3467_v14 = vpop.eup %3466  ;;  %v2261_v42 = vmul.f32 %v2245_v47, %v1573_v18  ;;  %v1575_v38 = vmul.f32 0.5, %v4727_v0 }
 0x3fe   : > { %v2107_v7 = vmul.f32 %v3463_v13, %v2106_v4  ;;  %v1865_v16 = vmul.f32 %v3467_v14, %v4857_v51  ;;  %vm1870_vm1 = vweird.f32 %v3467_v14 }
 0x3ff   : > { %v1827_v40 = vmul.f32 %v3465_v62, %v1826_v60  ;;  %2321 = vmatmul.f32.gmra.mxu2 %v2261_v42  ;;  %vm1871_vm2 = vmor %vm1869_vm0, %vm1870_vm1 }
 0x400   : > { %v2108_v17 = vadd.f32 %v3463_v13, %v2107_v7  ;;  %v1866_v25 = vsub.f32 1.0, %v1865_v16 }
 0x401   : > { %v1828_v24 = vadd.f32 %v3465_v62, %v1827_v40 }
 0x402   : > { %v2112_v36 = vsel %vm2111_vm10, %v3463_v13, %v2108_v17  ;;  %v1867_v43 = vmul.f32 %v3467_v14, %v1866_v25 }
 0x403   : > { %v2117_v52 = vsel %vm2114_vm11, %v2116_v35, %v2112_v36  ;;  %v1832_v6 = vsel %vm1831_vm14, %v3465_v62, %v1828_v24  ;;  %v1876_v62 = vor.u32 1.1754944e-38, %v1875_v56 }
 0x404   : > { %v2118_v21 = vmul.f32 %v2117_v52, %v2093_v59  ;;  %v1837_v30 = vsel %vm1834_vm15, %v1836_v53, %v1832_v6  ;;  %v1868_v8 = vadd.f32 %v3467_v14, %v1867_v43 }
 0x405   : > { %v1838_v4 = vmul.f32 %v1837_v30, %v1813_v54 }
 0x406   : > { %v3282_v13 = vclamps-f32 %v2118_v21, 1.0  ;;  %v1872_v29 = vsel %vm1871_vm2, %v3467_v14, %v1868_v8 }
 0x407   : > { %v3275_v7 = vclamps-f32 %v1838_v4, 1.0  ;;  %v1877_v46 = vsel %vm1874_vm3, %v1876_v62, %v1872_v29 }
 0x408   : > { %v2253_v1 = vadd.f32 1.0, %v3282_v13  ;;  %v1878_v9 = vmul.f32 %v1877_v46, %v1853_v49 }
 0x409   : > { %v2246_v58 = vadd.f32 1.0, %v3275_v7 }
 0x40a   : > { %v2269_v50 = vmul.f32 %v2253_v1, %v1581_v10  ;;  %v3276_v17 = vclamps-f32 %v1878_v9, 1.0 }
 0x40b   : > { %v2262_v32 = vmul.f32 %v2246_v58, %v1574_v27 }
 0x40c   : > { %2345 = vmatmul.f32.vlgmr.msra.gmra.mxu3 %v2269_v50  ;;  %v2247_v59 = vadd.f32 1.0, %v3276_v17 }
 0x40d   : > { %2324 = vmatmul.f32.gmra.mxu2 %v2262_v32 }
 0x40e   : > { %v2263_v51 = vmul.f32 %v2247_v59, %v1575_v38 }
 0x415   : > { %2327 = vmatmul.f32.gmra.mxu2 %v2263_v51 }
 0x41b   : > { %v1542_v35 = vpop.f32.mrf.mxu1 }
 0x41c   : > { %v4883_v15 = vadd.f32 %v4880_v28, %v1542_v35 }
 0x41e   : > { %v4886_v34 = vmul.f32 0.70710677, %v4883_v15 }
 0x420   : > { %v1881_v60 = vmul.f32 %v4886_v34, %v4886_v34 }
 0x422   : > { %v4890_v36 = vmin.f32 %v1881_v60, 16.0 }
 0x424   : > { %v1894_v23 = vmul.f32 3.8918573e-05, %v4890_v36  ;;  %v1883_v0 = vmul.f32 2.1237322e-06, %v4890_v36  ;;  %v1545_v52 = vpop.f32.mrf.mxu1 }
 0x425   : > { %v4895_v26 = vadd.f32 %v4880_v28, %v1545_v52 }
 0x426   : > { %v1895_v63 = vadd.f32 0.001143296, %v1894_v23  ;;  %v1884_v18 = vadd.f32 0.00028619796, %v1883_v0 }
 0x427   : > { %v4899_v21 = vmul.f32 0.70710677, %v4895_v26 }
 0x428   : > { %v1896_v40 = vmul.f32 %v1895_v63, %v4890_v36  ;;  %v1885_v47 = vmul.f32 %v1884_v18, %v4890_v36 }
 0x429   : > { %v1921_v44 = vmul.f32 %v4899_v21, %v4899_v21  ;;  %v1560_v24 = vpop.f32.mrf.mxu3 }
 0x42a   : > { %v1897_v14 = vadd.f32 0.014752088, %v1896_v40  ;;  %v4908_v16 = vadd.f32 %v4880_v28, %v1560_v24  ;;  %v1886_v1 = vadd.f32 0.0036580483, %v1885_v47 }
 0x42b   : > { %v4905_v53 = vmin.f32 %v1921_v44, 16.0 }
 0x42c   : > { %v1898_v13 = vmul.f32 %v1897_v14, %v4890_v36  ;;  %v1548_v54 = vpop.f32.mrf.mxu1  ;;  %v4912_v10 = vmul.f32 0.70710677, %v4908_v16  ;;  %v1887_v7 = vmul.f32 %v1886_v1, %v4890_v36 }
 0x42d   : > { %v1923_v6 = vmul.f32 2.1237322e-06, %v4905_v53  ;;  %v4915_v30 = vadd.f32 %v4880_v28, %v1548_v54  ;;  %v1934_v22 = vmul.f32 3.8918573e-05, %v4905_v53 }
 0x42e   : > { %v1899_v42 = vadd.f32 0.112945676, %v1898_v13  ;;  %v2121_v4 = vmul.f32 %v4912_v10, %v4912_v10  ;;  %v1888_v51 = vadd.f32 0.05243302, %v1887_v7 }
 0x42f   : > { %v1924_v61 = vadd.f32 0.00028619796, %v1923_v6  ;;  %v4921_v56 = vmul.f32 0.70710677, %v4915_v30  ;;  %v1935_v59 = vadd.f32 0.001143296, %v1934_v22 }
 0x430   : > { %v1900_v25 = vmul.f32 %v1899_v42, %v4890_v36  ;;  %v4923_v43 = vmin.f32 %v2121_v4, 16.0  ;;  %v1889_v44 = vmul.f32 %v1888_v51, %v4890_v36 }
 0x431   : > { %v1961_v8 = vmul.f32 %v4921_v56, %v4921_v56  ;;  %v1925_v58 = vmul.f32 %v1924_v61, %v4905_v53  ;;  %v1936_v14 = vmul.f32 %v1935_v59, %v4905_v53 }
 0x432   : > { %v1901_v50 = vadd.f32 0.4994258, %v1900_v25  ;;  %v2123_v62 = vmul.f32 2.1237322e-06, %v4923_v43  ;;  %v1563_v49 = vpop.f32.mrf.mxu3  ;;  %v1890_v7 = vadd.f32 0.18741608, %v1889_v44 }
 0x433   : > { %v4932_v29 = vmin.f32 %v1961_v8, 16.0  ;;  %v4935_v32 = vadd.f32 %v4880_v28, %v1563_v49  ;;  %v1926_v23 = vadd.f32 0.0036580483, %v1925_v58 }
 0x434   : > { %v1902_v27 = vmul.f32 %v1901_v50, %v4890_v36  ;;  %v1551_v46 = vpop.f32.mrf.mxu1  ;;  %v2124_v17 = vadd.f32 0.00028619796, %v2123_v62  ;;  %v1937_v50 = vadd.f32 0.014752088, %v1936_v14  ;;  %v2134_v14 = vmul.f32 3.8918573e-05, %v4923_v43 }
 0x435   : > { %v4940_v38 = vadd.f32 %v4880_v28, %v1551_v46  ;;  %v1963_v35 = vmul.f32 2.1237322e-06, %v4932_v29  ;;  %v4944_v60 = vmul.f32 0.70710677, %v4935_v32  ;;  %v1927_v24 = vmul.f32 %v1926_v23, %v4905_v53 }
 0x436   : > { %v4937_v9 = vadd.f32 1.0, %v1902_v27  ;;  %v2125_v63 = vmul.f32 %v2124_v17, %v4923_v43  ;;  %v1891_v23 = vmul.f32 %v1890_v7, %v4890_v36 }
 0x437   : > { %v4947_v0 = vmul.f32 0.70710677, %v4940_v38  ;;  %v1964_v52 = vadd.f32 0.00028619796, %v1963_v35  ;;  %v2161_v40 = vmul.f32 %v4944_v60, %v4944_v60  ;;  %v1928_v58 = vadd.f32 0.05243302, %v1927_v24 }
 0x438   : > { %3468 = vrcp.f32 %v4937_v9  ;;  %v2126_v42 = vadd.f32 0.0036580483, %v2125_v63  ;;  %v1938_v35 = vmul.f32 %v1937_v50, %v4905_v53  ;;  %vm1909_vm5 = vweird.f32 %v4937_v9 }
 0x439   : > { %v2001_v18 = vmul.f32 %v4947_v0, %v4947_v0  ;;  %v4957_v47 = vmin.f32 %v2161_v40, 16.0  ;;  %v1965_v6 = vmul.f32 %v1964_v52, %v4932_v29  ;;  %v1929_v52 = vmul.f32 %v1928_v58, %v4905_v53 }
 0x43a   : > { %v1566_v54 = vpop.f32.mrf.mxu3  ;;  %v2127_v62 = vmul.f32 %v2126_v42, %v4923_v43 }
 0x43b   : > { %v4960_v13 = vmin.f32 %v2001_v18, 16.0  ;;  %v2163_v1 = vmul.f32 2.1237322e-06, %v4957_v47  ;;  %v4965_v25 = vadd.f32 %v4880_v28, %v1566_v54  ;;  %v1966_v49 = vadd.f32 0.0036580483, %v1965_v6 }
 0x43c   : > { %v1554_v4 = vpop.f32.mrf.mxu1  ;;  %v1915_v18 = vand.u32 2147483648, %v4937_v9  ;;  %v1939_v6 = vadd.f32 0.112945676, %v1938_v35  ;;  %v1930_v50 = vadd.f32 0.18741608, %v1929_v52 }
 0x43d   : > { %v2003_v61 = vmul.f32 2.1237322e-06, %v4960_v13  ;;  %v2164_v8 = vadd.f32 0.00028619796, %v2163_v1  ;;  %v4969_v27 = vmul.f32 0.70710677, %v4965_v25  ;;  %v4973_v17 = vadd.f32 %v4880_v28, %v1554_v4 }
 0x43e   : > { %v3469_v22 = vpop.eup %3468  ;;  %v2128_v28 = vadd.f32 0.05243302, %v2127_v62  ;;  %v1967_v44 = vmul.f32 %v1966_v49, %v4932_v29  ;;  %v1892_v1 = vadd.f32 1.1283791, %v1891_v23  ;;  %v1913_v4 = vand.u32 2147483647, %v4937_v9 }
 0x43f   : > { %v2004_v46 = vadd.f32 0.00028619796, %v2003_v61  ;;  %v2165_v59 = vmul.f32 %v2164_v8, %v4957_v47  ;;  %v1905_v51 = vmul.f32 %v3469_v22, %v4937_v9  ;;  %v2201_v63 = vmul.f32 %v4969_v27, %v4969_v27 }
 0x440   : > { %v4987_v54 = vmul.f32 0.70710677, %v4973_v17  ;;  %vm1910_vm4 = vweird.f32 %v3469_v22  ;;  %v1916_v8 = vor.u32 1.1754944e-38, %v1915_v18  ;;  %v1940_v58 = vmul.f32 %v1939_v6, %v4905_v53 }
 0x441   : > { %v1906_v40 = vsub.f32 1.0, %v1905_v51  ;;  %v2005_v24 = vmul.f32 %v2004_v46, %v4960_v13  ;;  %v2166_v42 = vadd.f32 0.0036580483, %v2165_v59  ;;  %v4989_v61 = vmin.f32 %v2201_v63, 16.0  ;;  %vm1911_vm6 = vmor %vm1909_vm5, %vm1910_vm4 }
 0x442   : > { %v2129_v62 = vmul.f32 %v2128_v28, %v4923_v43  ;;  %v1968_v49 = vadd.f32 0.05243302, %v1967_v44  ;;  %v2041_v59 = vmul.f32 %v4987_v54, %v4987_v54  ;;  %v1941_v23 = vadd.f32 0.4994258, %v1940_v58 }
 0x443   : > { %v1907_v36 = vmul.f32 %v3469_v22, %v1906_v40  ;;  %v2006_v46 = vadd.f32 0.0036580483, %v2005_v24  ;;  %v2167_v51 = vmul.f32 %v2166_v42, %v4957_v47  ;;  %v2135_v63 = vadd.f32 0.001143296, %v2134_v14 }
 0x444   : > { %v1893_v9 = vmul.f32 %v1892_v1, %v4886_v34  ;;  %v2203_v52 = vmul.f32 2.1237322e-06, %v4989_v61  ;;  %vm1914_vm7 = vcmp.eq.f32.partialorder %v1913_v4, 8.507059e+37  ;;  %v1931_v40 = vmul.f32 %v1930_v50, %v4905_v53 }
 0x445   : > { %v1908_v7 = vadd.f32 %v3469_v22, %v1907_v36  ;;  %v1942_v28 = vmul.f32 %v1941_v23, %v4905_v53  ;;  %v2136_v44 = vmul.f32 %v2135_v63, %v4923_v43  ;;  %v2130_v24 = vadd.f32 0.18741608, %v2129_v62 }
 0x446   : > { %v1969_v36 = vmul.f32 %v1968_v49, %v4932_v29  ;;  %v5004_v6 = vmin.f32 %v2041_v59, 16.0  ;;  %v2168_v42 = vadd.f32 0.05243302, %v2167_v51  ;;  %v2007_v14 = vmul.f32 %v2006_v46, %v4960_v13 }
 0x447   : > { %v1912_v35 = vsel %vm1911_vm6, %v3469_v22, %v1908_v7  ;;  %v5007_v34 = vadd.f32 1.0, %v1942_v28  ;;  %v2137_v1 = vadd.f32 0.014752088, %v2136_v44  ;;  %v2204_v4 = vadd.f32 0.00028619796, %v2203_v52 }
 0x448   : > { %v1917_v18 = vsel %vm1914_vm7, %v1916_v8, %v1912_v35  ;;  %v1974_v50 = vmul.f32 3.8918573e-05, %v4932_v29  ;;  %v1576_v53 = vmul.f32 0.5, %v4883_v15  ;;  %v5012_v8 = vmul.f32 0.5, %v4895_v26 }
 0x449   : > { %v1918_v22 = vmul.f32 %v1917_v18, %v1893_v9  ;;  %3470 = vrcp.f32 %v5007_v34  ;;  %v1932_v58 = vadd.f32 1.1283791, %v1931_v40  ;;  %v5016_v62 = vmul.f32 0.5, %v4908_v16 }
 0x44a   : > { %v2043_v49 = vmul.f32 2.1237322e-06, %v5004_v6  ;;  %v2131_v59 = vmul.f32 %v2130_v24, %v4923_v43  ;;  %v1970_v51 = vadd.f32 0.18741608, %v1969_v36  ;;  %v2008_v35 = vadd.f32 0.05243302, %v2007_v14 }
 0x44b   : > { %v3277_v7 = vclamps-f32 %v1918_v22, 1.0  ;;  %v2138_v23 = vmul.f32 %v2137_v1, %v4923_v43  ;;  %v2169_v15 = vmul.f32 %v2168_v42, %v4957_v47  ;;  %v2205_v26 = vmul.f32 %v2204_v4, %v4989_v61 }
 0x44c   : > { %v1975_v9 = vadd.f32 0.001143296, %v1974_v50  ;;  %v5024_v52 = vmul.f32 0.5, %v4915_v30  ;;  %v5027_v16 = vmul.f32 0.5, %v4935_v32  ;;  %v2174_v18 = vmul.f32 3.8918573e-05, %v4957_v47 }
 0x44d   : > { %v2248_v46 = vadd.f32 1.0, %v3277_v7  ;;  %v2139_v40 = vadd.f32 0.112945676, %v2138_v23  ;;  %v1933_v28 = vmul.f32 %v1932_v58, %v4899_v21  ;;  %v2044_v44 = vadd.f32 0.00028619796, %v2043_v49 }
 0x44e   : > { %v1976_v24 = vmul.f32 %v1975_v9, %v4932_v29  ;;  %v2014_v36 = vmul.f32 3.8918573e-05, %v4960_v13  ;;  %v2132_v42 = vadd.f32 1.1283791, %v2131_v59  ;;  %v1971_v14 = vmul.f32 %v1970_v51, %v4932_v29 }
 0x44f   : > { %v2264_v63 = vmul.f32 %v2248_v46, %v1576_v53  ;;  %v3471_v22 = vpop.eup %3470  ;;  %v2140_v30 = vmul.f32 %v2139_v40, %v4923_v43  ;;  %v2175_v1 = vadd.f32 0.001143296, %v2174_v18  ;;  %v2170_v32 = vadd.f32 0.18741608, %v2169_v15  ;;  %v5046_v18 = vld [vmem:[%s3671_s20] ss:$0 sm:$0xff] }
 0x450   : > { %v2009_v4 = vmul.f32 %v2008_v35, %v4960_v13  ;;  %v2206_v7 = vadd.f32 0.0036580483, %v2205_v26  ;;  %v1945_v21 = vmul.f32 %v3471_v22, %v5007_v34  ;;  %v1977_v53 = vadd.f32 0.014752088, %v1976_v24 }
 0x451   : > { %2330 = vmatmul.f32.gmra.mxu2 %v2264_v63  ;;  %v2141_v50 = vadd.f32 0.4994258, %v2140_v30  ;;  %v2176_v58 = vmul.f32 %v2175_v1, %v4957_v47  ;;  %v2015_v49 = vadd.f32 0.001143296, %v2014_v36  ;;  %v2045_v46 = vmul.f32 %v2044_v44, %v5004_v6 }
 0x452   : > { %v1946_v59 = vsub.f32 1.0, %v1945_v21  ;;  %v1953_v51 = vand.u32 2147483647, %v5007_v34  ;;  %v1955_v23 = vand.u32 2147483648, %v5007_v34  ;;  %v1978_v35 = vmul.f32 %v1977_v53, %v4932_v29 }
 0x453   : > { %v2142_v15 = vmul.f32 %v2141_v50, %v4923_v43  ;;  %v2177_v26 = vadd.f32 0.014752088, %v2176_v58  ;;  %v2016_v63 = vmul.f32 %v2015_v49, %v4960_v13  ;;  %v2171_v9 = vmul.f32 %v2170_v32, %v4957_v47 }
 0x454   : > { %v2010_v40 = vadd.f32 0.18741608, %v2009_v4  ;;  %v1947_v24 = vmul.f32 %v3471_v22, %v1946_v59  ;;  %vm1950_vm8 = vweird.f32 %v3471_v22  ;;  %v1979_v36 = vadd.f32 0.112945676, %v1978_v35 }
 0x455   : > { %v5048_v44 = vadd.f32 1.0, %v2142_v15  ;;  %v2178_v30 = vmul.f32 %v2177_v26, %v4957_v47  ;;  %v2017_v1 = vadd.f32 0.014752088, %v2016_v63  ;;  %v1972_v21 = vadd.f32 1.1283791, %v1971_v14 }
 0x456   : > { %v2207_v43 = vmul.f32 %v2206_v7, %v4989_v61  ;;  %v1948_v50 = vadd.f32 %v3471_v22, %v1947_v24  ;;  %vm1949_vm9 = vweird.f32 %v5007_v34  ;;  %v2046_v53 = vadd.f32 0.0036580483, %v2045_v46 }
 0x457   : > { %vm1951_vm10 = vmor %vm1949_vm9, %vm1950_vm8  ;;  %vm1954_vm11 = vcmp.eq.f32.partialorder %v1953_v51, 8.507059e+37  ;;  %v1956_v32 = vor.u32 1.1754944e-38, %v1955_v23  ;;  %3472 = vrcp.f32 %v5048_v44  ;;  %v1980_v59 = vmul.f32 %v1979_v36, %v4932_v29 }
 0x458   : > { %v1952_v49 = vsel %vm1951_vm10, %v3471_v22, %v1948_v50  ;;  %v2179_v15 = vadd.f32 0.112945676, %v2178_v30  ;;  %v2172_v14 = vadd.f32 1.1283791, %v2171_v9  ;;  %v2011_v7 = vmul.f32 %v2010_v40, %v4960_v13 }
 0x459   : > { %v1957_v35 = vsel %vm1954_vm11, %v1956_v32, %v1952_v49  ;;  %v2018_v34 = vmul.f32 %v2017_v1, %v4960_v13  ;;  %v2208_v46 = vadd.f32 0.05243302, %v2207_v43  ;;  %v1981_v23 = vadd.f32 0.4994258, %v1980_v59 }
 0x45a   : > { %v2310_v58 = vpop.f32.mrf.mxu2  ;;  %v1958_v51 = vmul.f32 %v1957_v35, %v1933_v28  ;;  %v5064_v63 = vmul.f32 0.5, %v4940_v38  ;;  %v2047_v22 = vmul.f32 %v2046_v53, %v5004_v6  ;;  %v2180_v24 = vmul.f32 %v2179_v15, %v4957_v47 }
 0x45b   : > { %v5055_v4 = vadd.f32 %v5046_v18, %v2310_v58  ;;  %v2019_v36 = vadd.f32 0.112945676, %v2018_v34  ;;  %v2133_v9 = vmul.f32 %v2132_v42, %v4912_v10  ;;  %v1982_v1 = vmul.f32 %v1981_v23, %v4932_v29 }
 0x45c   : > { %v3278_v30 = vclamps-f32 %v1958_v51, 1.0  ;;  %v5073_v28 = vmul.f32 %v1972_v21, %v4921_v56  ;;  %v5076_v38 = vmul.f32 %v2172_v14, %v4944_v60  ;;  %v5078_v50 = vadd.f32 1.1283791, %v2011_v7 }
 0x45d   : > { %v5061_v26 = vmul.f32 0.70710677, %v5055_v4  ;;  %v3473_v43 = vpop.eup %3472  ;;  %v2181_v53 = vadd.f32 0.4994258, %v2180_v24  ;;  %v5081_v58 = vmul.f32 %v2208_v46, %v4989_v61  ;;  %v5086_v49 = vadd.f32 0.05243302, %v2047_v22 }
 0x45e   : > { %v2249_v42 = vadd.f32 1.0, %v3278_v30  ;;  %v2145_v32 = vmul.f32 %v3473_v43, %v5048_v44  ;;  %v5088_v29 = vadd.f32 1.0, %v1982_v1  ;;  %v2020_v60 = vmul.f32 %v2019_v36, %v4960_v13 }
 0x45f   : > { %v2390_v40 = vmul.f32 %v5061_v26, %v5061_v26  ;;  %v2182_v56 = vmul.f32 %v2181_v53, %v4957_v47  ;;  %vm2150_vm12 = vweird.f32 %v3473_v43  ;;  %v2153_v7 = vand.u32 2147483647, %v5048_v44 }
 0x460   : > { %v2265_v15 = vmul.f32 %v2249_v42, %v5012_v8  ;;  %v2146_v14 = vsub.f32 1.0, %v2145_v32  ;;  %v2155_v35 = vand.u32 2147483648, %v5048_v44  ;;  %3474 = vrcp.f32 %v5088_v29 }
 0x461   : > { %v5083_v10 = vmin.f32 %v2390_v40, 16.0  ;;  %v5098_v23 = vadd.f32 1.0, %v2182_v56  ;;  %vm2149_vm13 = vweird.f32 %v5048_v44  ;;  %v1995_v8 = vand.u32 2147483648, %v5088_v29 }
 0x462   : > { %2333 = vmatmul.f32.gmra.mxu2 %v2265_v15  ;;  %v2147_v47 = vmul.f32 %v3473_v43, %v2146_v14  ;;  %v2021_v24 = vadd.f32 0.4994258, %v2020_v60  ;;  %vm2151_vm14 = vmor %vm2149_vm13, %vm2150_vm12  ;;  %vm2154_vm15 = vcmp.eq.f32.partialorder %v2153_v7, 8.507059e+37  ;;  %v2156_v53 = vor.u32 1.1754944e-38, %v2155_v35 }
 0x463   : > { %v2392_v21 = vmul.f32 2.1237322e-06, %v5083_v10  ;;  %v2403_v59 = vmul.f32 3.8918573e-05, %v5083_v10  ;;  %3476 = vrcp.f32 %v5098_v23  ;;  %v1993_v42 = vand.u32 2147483647, %v5088_v29 }
 0x464   : > { %v2148_v30 = vadd.f32 %v3473_v43, %v2147_v47  ;;  %v5114_v60 = vmul.f32 3.8918573e-05, %v4989_v61  ;;  %vm1989_vm1 = vweird.f32 %v5088_v29  ;;  %v1996_v14 = vor.u32 1.1754944e-38, %v1995_v8 }
 0x465   : > { %v2393_v34 = vadd.f32 0.00028619796, %v2392_v21  ;;  %v2404_v46 = vadd.f32 0.001143296, %v2403_v59  ;;  %vm5125_vm0 = vcmp.eq.f32.partialorder %v1993_v42, 8.507059e+37  ;;  %vm2189_vm2 = vweird.f32 %v5098_v23 }
 0x466   : > { %v2313_v51 = vpop.f32.mrf.mxu2  ;;  %v2152_v56 = vsel %vm2151_vm14, %v3473_v43, %v2148_v30  ;;  %v3475_v21 = vpop.eup %3474  ;;  %v2195_v8 = vand.u32 2147483648, %v5098_v23 }
 0x467   : > { %v5101_v22 = vadd.f32 %v5046_v18, %v2313_v51  ;;  %v2394_v36 = vmul.f32 %v2393_v34, %v5083_v10  ;;  %v2405_v40 = vmul.f32 %v2404_v46, %v5083_v10  ;;  %v2157_v15 = vsel %vm2154_vm15, %v2156_v53, %v2152_v56 }
 0x468   : > { %v2022_v34 = vmul.f32 %v2021_v24, %v4960_v13  ;;  %v2158_v46 = vmul.f32 %v2157_v15, %v2133_v9  ;;  %v1985_v43 = vmul.f32 %v3475_v21, %v5088_v29  ;;  %vm1990_vm3 = vweird.f32 %v3475_v21 }
 0x469   : > { %v5109_v1 = vmul.f32 0.70710677, %v5101_v22  ;;  %v2395_v44 = vadd.f32 0.0036580483, %v2394_v36  ;;  %v2406_v32 = vadd.f32 0.014752088, %v2405_v40  ;;  %v3477_v13 = vpop.eup %3476  ;;  %vm1991_vm4 = vmor %vm1989_vm1, %vm1990_vm3 }
 0x46a   : > { %v2193_v36 = vand.u32 2147483647, %v5098_v23  ;;  %v3283_v30 = vclamps-f32 %v2158_v46, 1.0  ;;  %v1986_v9 = vsub.f32 1.0, %v1985_v43  ;;  %v2185_v56 = vmul.f32 %v3477_v13, %v5098_v23 }
 0x46b   : > { %v2430_v59 = vmul.f32 %v5109_v1, %v5109_v1  ;;  %v2396_v7 = vmul.f32 %v2395_v44, %v5083_v10  ;;  %v2407_v35 = vmul.f32 %v2406_v32, %v5083_v10  ;;  %v5139_v11 = vadd.f32 1.0, %v2022_v34 }
 0x46c   : > { %v2254_v15 = vadd.f32 1.0, %v3283_v30  ;;  %v1987_v19 = vmul.f32 %v3475_v21, %v1986_v9  ;;  %v2186_v46 = vsub.f32 1.0, %v2185_v56  ;;  %vm2190_vm5 = vweird.f32 %v3477_v13 }
 0x46d   : > { %v5123_v51 = vmin.f32 %v2430_v59, 16.0  ;;  %v2397_v24 = vadd.f32 0.05243302, %v2396_v7  ;;  %v2408_v40 = vadd.f32 0.112945676, %v2407_v35  ;;  %3478 = vrcp.f32 %v5139_v11  ;;  %vm5162_vm6 = vmor %vm2189_vm2, %vm2190_vm5 }
 0x46e   : > { %v2316_v53 = vpop.f32.mrf.mxu2  ;;  %v2270_v37 = vmul.f32 %v2254_v15, %v5016_v62  ;;  %v1988_v30 = vadd.f32 %v3475_v21, %v1987_v19  ;;  %v2187_v9 = vmul.f32 %v3477_v13, %v2186_v46  ;;  %v2196_v23 = vor.u32 1.1754944e-38, %v2195_v8 }
 0x46f   : > { %v2432_v44 = vmul.f32 2.1237322e-06, %v5123_v51  ;;  %v2443_v32 = vmul.f32 3.8918573e-05, %v5123_v51  ;;  %v5135_v42 = vadd.f32 %v5046_v18, %v2316_v53  ;;  %v2409_v59 = vmul.f32 %v2408_v40, %v5083_v10 }
 0x470   : > { %v2398_v43 = vmul.f32 %v2397_v24, %v5083_v10  ;;  %2348 = vmatmul.f32.gmra.mxu3 %v2270_v37  ;;  %v2188_v56 = vadd.f32 %v3477_v13, %v2187_v9  ;;  %vm2194_vm7 = vcmp.eq.f32.partialorder %v2193_v36, 8.507059e+37  ;;  %v2215_v8 = vadd.f32 0.001143296, %v5114_v60 }
 0x471   : > { %v2433_v7 = vadd.f32 0.00028619796, %v2432_v44  ;;  %v2444_v35 = vadd.f32 0.001143296, %v2443_v32  ;;  %v2410_v48 = vadd.f32 0.4994258, %v2409_v59  ;;  %v1992_v32 = vsel %vm1991_vm4, %v3475_v21, %v1988_v30 }
 0x472   : > { %v5144_v53 = vmul.f32 0.70710677, %v5135_v42  ;;  %v2399_v59 = vadd.f32 0.18741608, %v2398_v43  ;;  %v1997_v37 = vsel %vm5125_vm0, %v1996_v14, %v1992_v32  ;;  %v5176_v14 = vadd.f32 0.18741608, %v5081_v58 }
 0x473   : > { %v2434_v57 = vmul.f32 %v2433_v7, %v5123_v51  ;;  %v2445_v40 = vmul.f32 %v2444_v35, %v5123_v51  ;;  %v2411_v34 = vmul.f32 %v2410_v48, %v5083_v10  ;;  %v1998_v21 = vmul.f32 %v1997_v37, %v5073_v28 }
 0x474   : > { %v2470_v44 = vmul.f32 %v5144_v53, %v5144_v53  ;;  %v2192_v7 = vsel %vm5162_vm6, %v3477_v13, %v2188_v56  ;;  %v5173_v35 = vmul.f32 %v5078_v50, %v4947_v0  ;;  %v2400_v28 = vmul.f32 %v2399_v59, %v5083_v10 }
 0x475   : > { %v2435_v62 = vadd.f32 0.0036580483, %v2434_v57  ;;  %v2446_v24 = vadd.f32 0.014752088, %v2445_v40  ;;  %v5154_v15 = vadd.f32 1.0, %v2411_v34  ;;  %v3279_v43 = vclamps-f32 %v1998_v21, 1.0  ;;  %v5179_v40 = vpop.eup %3478 }
 0x476   : > { %v5156_v19 = vmin.f32 %v2470_v44, 16.0  ;;  %v2197_v0 = vsel %vm2194_vm7, %v2196_v23, %v2192_v7  ;;  %v2025_v59 = vmul.f32 %v5179_v40, %v5139_v11  ;;  %v2401_v48 = vadd.f32 1.1283791, %v2400_v28 }
 0x477   : > { %v2436_v29 = vmul.f32 %v2435_v62, %v5123_v51  ;;  %v2447_v57 = vmul.f32 %v2446_v24, %v5123_v51  ;;  %3480 = vrcp.f32 %v5154_v15  ;;  %v2250_v34 = vadd.f32 1.0, %v3279_v43 }
 0x478   : > { %v2472_v13 = vmul.f32 2.1237322e-06, %v5156_v19  ;;  %v2483_v30 = vmul.f32 3.8918573e-05, %v5156_v19  ;;  %v2198_v36 = vmul.f32 %v2197_v0, %v5076_v38  ;;  %v2422_v38 = vand.u32 2147483647, %v5154_v15 }
 0x479   : > { %v2437_v47 = vadd.f32 0.05243302, %v2436_v29  ;;  %v2448_v46 = vadd.f32 0.112945676, %v2447_v57  ;;  %v2319_v50 = vpop.f32.mrf.mxu2  ;;  %v2266_v56 = vmul.f32 %v2250_v34, %v5024_v52  ;;  %v2424_v52 = vand.u32 2147483648, %v5154_v15 }
 0x47a   : > { %v2473_v44 = vadd.f32 0.00028619796, %v2472_v13  ;;  %v2484_v62 = vadd.f32 0.001143296, %v2483_v30  ;;  %v5189_v24 = vadd.f32 %v5046_v18, %v2319_v50  ;;  %v3284_v57 = vclamps-f32 %v2198_v36, 1.0 }
 0x47b   : > { %v2438_v58 = vmul.f32 %v2437_v47, %v5123_v51  ;;  %v2449_v9 = vmul.f32 %v2448_v46, %v5123_v51  ;;  %2336 = vmatmul.f32.gmra.mxu2 %v2266_v56  ;;  %v2026_v0 = vsub.f32 1.0, %v2025_v59  ;;  %v2358_v34 = vmul.f32 0.5, %v5055_v4 }
 0x47c   : > { %v2474_v29 = vmul.f32 %v2473_v44, %v5156_v19  ;;  %v2485_v60 = vmul.f32 %v2484_v62, %v5156_v19  ;;  %v2255_v43 = vadd.f32 1.0, %v3284_v57  ;;  %v5204_v30 = vmul.f32 0.70710677, %v5189_v24 }
 0x47d   : > { %v2439_v10 = vadd.f32 0.18741608, %v2438_v58  ;;  %v2450_v32 = vadd.f32 0.4994258, %v2449_v9  ;;  %v3481_v37 = vpop.eup %3480  ;;  %v2402_v62 = vmul.f32 %v2401_v48, %v5061_v26  ;;  %vm2418_vm9 = vweird.f32 %v5154_v15 }
 0x47e   : > { %v2414_v21 = vmul.f32 %v3481_v37, %v5154_v15  ;;  %v2475_v47 = vadd.f32 0.0036580483, %v2474_v29  ;;  %v2486_v46 = vadd.f32 0.014752088, %v2485_v60  ;;  %vm2419_vm8 = vweird.f32 %v3481_v37 }
 0x47f   : > { %v2440_v7 = vmul.f32 %v2439_v10, %v5123_v51  ;;  %v2451_v23 = vmul.f32 %v2450_v32, %v5123_v51  ;;  %v2271_v51 = vmul.f32 %v2255_v43, %v5027_v16  ;;  %v2510_v10 = vmul.f32 %v5204_v30, %v5204_v30  ;;  %vm2420_vm10 = vmor %vm2418_vm9, %vm2419_vm8 }
 0x480   : > { %v2415_v28 = vsub.f32 1.0, %v2414_v21  ;;  %v2476_v58 = vmul.f32 %v2475_v47, %v5156_v19  ;;  %v2487_v9 = vmul.f32 %v2486_v46, %v5156_v19  ;;  %v2216_v32 = vmul.f32 %v2215_v8, %v4989_v61 }
 0x481   : > { %v5201_v13 = vadd.f32 1.0, %v2451_v23  ;;  %v2441_v50 = vadd.f32 1.1283791, %v2440_v7  ;;  %2351 = vmatmul.f32.gmra.mxu3 %v2271_v51  ;;  %v2027_v16 = vmul.f32 %v5179_v40, %v2026_v0  ;;  %vm2423_vm11 = vcmp.eq.f32.partialorder %v2422_v38, 8.507059e+37 }
 0x482   : > { %v2416_v44 = vmul.f32 %v3481_v37, %v2415_v28  ;;  %v2477_v36 = vadd.f32 0.05243302, %v2476_v58  ;;  %v2488_v59 = vadd.f32 0.112945676, %v2487_v9  ;;  %v2425_v4 = vor.u32 1.1754944e-38, %v2424_v52 }
 0x483   : > { %3482 = vrcp.f32 %v5201_v13  ;;  %v2442_v29 = vmul.f32 %v2441_v50, %v5109_v1  ;;  %v5218_v60 = vmin.f32 %v2510_v10, 16.0  ;;  %v2462_v48 = vand.u32 2147483647, %v5201_v13 }
 0x484   : > { %v2417_v56 = vadd.f32 %v3481_v37, %v2416_v44  ;;  %v2464_v57 = vand.u32 2147483648, %v5201_v13  ;;  %v2489_v8 = vmul.f32 %v2488_v59, %v5156_v19  ;;  %v2478_v15 = vmul.f32 %v2477_v36, %v5156_v19 }
 0x485   : > { %v2512_v7 = vmul.f32 2.1237322e-06, %v5218_v60  ;;  %v2523_v23 = vmul.f32 3.8918573e-05, %v5218_v60  ;;  %v2028_v1 = vadd.f32 %v5179_v40, %v2027_v16  ;;  %vm2030_vm12 = vweird.f32 %v5179_v40 }
 0x486   : > { %v2421_v26 = vsel %vm2420_vm10, %v3481_v37, %v2417_v56  ;;  %v2490_v47 = vadd.f32 0.4994258, %v2489_v8  ;;  %vm2029_vm13 = vweird.f32 %v5139_v11  ;;  %v2033_v43 = vand.u32 2147483647, %v5139_v11 }
 0x487   : > { %v2426_v21 = vsel %vm2423_vm11, %v2425_v4, %v2421_v26  ;;  %v2513_v46 = vadd.f32 0.00028619796, %v2512_v7  ;;  %v2524_v50 = vadd.f32 0.001143296, %v2523_v23  ;;  %v2035_v58 = vand.u32 2147483648, %v5139_v11  ;;  %vm5234_vm14 = vmor %vm2029_vm13, %vm2030_vm12 }
 0x488   : > { %v2427_v52 = vmul.f32 %v2426_v21, %v2402_v62  ;;  %v2491_v0 = vmul.f32 %v2490_v47, %v5156_v19  ;;  %v2479_v51 = vadd.f32 0.18741608, %v2478_v15  ;;  %v2217_v36 = vadd.f32 0.014752088, %v2216_v32 }
 0x489   : > { %v3483_v38 = vpop.eup %3482  ;;  %v2514_v44 = vmul.f32 %v2513_v46, %v5218_v60  ;;  %v2525_v59 = vmul.f32 %v2524_v50, %v5218_v60  ;;  %v2032_v16 = vsel %vm5234_vm14, %v5179_v40, %v2028_v1  ;;  %vm2458_vm1 = vweird.f32 %v5201_v13 }
 0x48a   : > { %v2454_v37 = vmul.f32 %v3483_v38, %v5201_v13  ;;  %v3286_v28 = vclamps-f32 %v2427_v52, 1.0  ;;  %v5238_v56 = vadd.f32 1.0, %v2491_v0  ;;  %vm2459_vm15 = vweird.f32 %v3483_v38 }
 0x48b   : > { %v2515_v11 = vadd.f32 0.0036580483, %v2514_v44  ;;  %v2218_v26 = vmul.f32 %v2217_v36, %v4989_v61  ;;  %v2036_v32 = vor.u32 1.1754944e-38, %v2035_v58  ;;  %v2526_v7 = vadd.f32 0.014752088, %v2525_v59  ;;  %vm2460_vm2 = vmor %vm2458_vm1, %vm2459_vm15 }
 0x48c   : > { %v2455_v9 = vsub.f32 1.0, %v2454_v37  ;;  %v3030_v10 = vadd.f32 1.0, %v3286_v28  ;;  %3484 = vrcp.f32 %v5238_v56  ;;  %vm2034_vm0 = vcmp.eq.f32.partialorder %v2033_v43, 8.507059e+37 }
 0x48d   : > { %v2516_v15 = vmul.f32 %v2515_v11, %v5218_v60  ;;  %v2465_v40 = vor.u32 1.1754944e-38, %v2464_v57  ;;  %v2037_v52 = vsel %vm2034_vm0, %v2036_v32, %v2032_v16  ;;  %v2219_v47 = vadd.f32 0.112945676, %v2218_v26 }
 0x48e   : > { %v2456_v4 = vmul.f32 %v3483_v38, %v2455_v9  ;;  %v3046_v8 = vmul.f32 %v3030_v10, %v2358_v34  ;;  %vm2463_vm3 = vcmp.eq.f32.partialorder %v2462_v48, 8.507059e+37  ;;  %v2480_v34 = vmul.f32 %v2479_v51, %v5156_v19 }
 0x48f   : > { %v2527_v13 = vmul.f32 %v2526_v7, %v5218_v60  ;;  %v2038_v46 = vmul.f32 %v2037_v52, %v5173_v35  ;;  %v2220_v43 = vmul.f32 %v2219_v47, %v4989_v61  ;;  %v2211_v57 = vmul.f32 %v5176_v14, %v4989_v61 }
 0x490   : > { %v2457_v21 = vadd.f32 %v3483_v38, %v2456_v4  ;;  %v3062_v23 = vadd.f32 %v3046_v8, %v4205_v5  ;;  %v2054_v5 = vmul.f32 3.8918573e-05, %v5004_v6  ;;  %v2517_v48 = vadd.f32 0.05243302, %v2516_v15 }
 0x491   : > { %v2528_v28 = vadd.f32 0.112945676, %v2527_v13  ;;  %v2359_v0 = vmul.f32 0.5, %v5101_v22  ;;  %v3280_v50 = vclamps-f32 %v2038_v46, 1.0  ;;  %v2221_v58 = vadd.f32 0.4994258, %v2220_v43 }
 0x492   : > { %v2461_v1 = vsel %vm2460_vm2, %v3483_v38, %v2457_v21  ;;  %3078 = vst [vmem:[%s5652_s11] sm:$0xff] %v3062_v23  ;;  %v3485_v19 = vpop.eup %3484  ;;  %v2055_v9 = vadd.f32 0.001143296, %v2054_v5  ;;  %v2481_v44 = vadd.f32 1.1283791, %v2480_v34  ;;  %v2504_v62 = vand.u32 2147483648, %v5238_v56 }
 0x493   : > { %v2466_v37 = vsel %vm2463_vm3, %v2465_v40, %v2461_v1  ;;  %v2494_v35 = vmul.f32 %v3485_v19, %v5238_v56  ;;  %v2529_v36 = vmul.f32 %v2528_v28, %v5218_v60  ;;  %v2251_v10 = vadd.f32 1.0, %v3280_v50 }
 0x494   : > { %v2467_v38 = vmul.f32 %v2466_v37, %v2442_v29  ;;  %v2222_v14 = vmul.f32 %v2221_v58, %v4989_v61  ;;  %v2322_v29 = vpop.f32.mrf.mxu2  ;;  %v2056_v59 = vmul.f32 %v2055_v9, %v5004_v6  ;;  %v2518_v22 = vmul.f32 %v2517_v48, %v5218_v60 }
 0x495   : > { %v2495_v4 = vsub.f32 1.0, %v2494_v35  ;;  %v5267_v11 = vadd.f32 %v5046_v18, %v2322_v29  ;;  %v2530_v26 = vadd.f32 0.4994258, %v2529_v36  ;;  %v2267_v8 = vmul.f32 %v2251_v10, %v5064_v63 }
 0x496   : > { %v3287_v51 = vclamps-f32 %v2467_v38, 1.0  ;;  %v2223_v32 = vadd.f32 1.0, %v2222_v14  ;;  %v2057_v21 = vadd.f32 0.014752088, %v2056_v59  ;;  %vm2499_vm4 = vweird.f32 %v3485_v19 }
 0x497   : > { %v2496_v7 = vmul.f32 %v3485_v19, %v2495_v4  ;;  %v2502_v61 = vand.u32 2147483647, %v5238_v56  ;;  %v2049_v23 = vmul.f32 %v5086_v49, %v5004_v6  ;;  %v2531_v40 = vmul.f32 %v2530_v26, %v5218_v60  ;;  %2339 = vmatmul.f32.gmra.mxu2 %v2267_v8 }
 0x498   : > { %v3031_v16 = vadd.f32 1.0, %v3287_v51  ;;  %3486 = vrcp.f32 %v2223_v32  ;;  %vm2498_vm5 = vweird.f32 %v5238_v56  ;;  %v2519_v63 = vadd.f32 0.18741608, %v2518_v22 }
 0x499   : > { %v2497_v47 = vadd.f32 %v3485_v19, %v2496_v7  ;;  %vm2500_vm6 = vmor %vm2498_vm5, %vm2499_vm4  ;;  %v2505_v1 = vor.u32 1.1754944e-38, %v2504_v62  ;;  %v5276_v34 = vadd.f32 1.0, %v2531_v40  ;;  %v5279_v13 = vmul.f32 0.70710677, %v5267_v11 }
 0x49a   : > { %v3047_v15 = vmul.f32 %v3031_v16, %v2359_v0  ;;  %v2058_v37 = vmul.f32 %v2057_v21, %v5004_v6  ;;  %v2212_v49 = vadd.f32 1.1283791, %v2211_v57  ;;  %vm2503_vm7 = vcmp.eq.f32.partialorder %v2502_v61, 8.507059e+37 }
 0x49b   : > { %v2501_v46 = vsel %vm2500_vm6, %v3485_v19, %v2497_v47  ;;  %3488 = vrcp.f32 %v5276_v34  ;;  %v2520_v5 = vmul.f32 %v2519_v63, %v5218_v60  ;;  %v2550_v38 = vmul.f32 %v5279_v13, %v5279_v13 }
 0x49c   : > { %v3063_v52 = vadd.f32 %v3047_v15, %v4210_v55  ;;  %v2482_v55 = vmul.f32 %v2481_v44, %v5144_v53  ;;  %v2506_v56 = vsel %vm2503_vm7, %v2505_v1, %v2501_v46  ;;  %v2059_v48 = vadd.f32 0.112945676, %v2058_v37 }
 0x49d   : > { %v2213_v57 = vmul.f32 %v2212_v49, %v4969_v27  ;;  %v2050_v0 = vadd.f32 0.18741608, %v2049_v23  ;;  %v2360_v53 = vmul.f32 0.5, %v5135_v42  ;;  %v2233_v19 = vand.u32 2147483647, %v2223_v32 }
 0x49e   : > { %3079 = vst [vmem:[%s5652_s11 + $0x8] sm:$0xff] %v3063_v52  ;;  %v2507_v43 = vmul.f32 %v2506_v56, %v2482_v55  ;;  %v3487_v28 = vpop.eup %3486  ;;  %v5292_v9 = vmin.f32 %v2550_v38, 16.0  ;;  %v2060_v51 = vmul.f32 %v2059_v48, %v5004_v6  ;;  %v2521_v35 = vadd.f32 1.1283791, %v2520_v5 }
 0x49f   : > { %v2225_v58 = vmul.f32 %v3487_v28, %v2223_v32  ;;  %v2235_v62 = vand.u32 2147483648, %v2223_v32  ;;  %vm2229_vm8 = vweird.f32 %v2223_v32  ;;  %vm2230_vm9 = vweird.f32 %v3487_v28 }
 0x4a0   : > { %v3288_v50 = vclamps-f32 %v2507_v43, 1.0  ;;  %v2552_v10 = vmul.f32 2.1237322e-06, %v5292_v9  ;;  %v2563_v27 = vmul.f32 3.8918573e-05, %v5292_v9  ;;  %vm5298_vm10 = vcmp.eq.f32.partialorder %v2233_v19, 8.507059e+37  ;;  %vm2231_vm11 = vmor %vm2229_vm8, %vm2230_vm9 }
 0x4a1   : > { %v2226_v60 = vsub.f32 1.0, %v2225_v58  ;;  %v3489_v36 = vpop.eup %3488  ;;  %v2061_v14 = vadd.f32 0.4994258, %v2060_v51  ;;  %v2236_v7 = vor.u32 1.1754944e-38, %v2235_v62  ;;  %v2544_v61 = vand.u32 2147483648, %v5276_v34 }
 0x4a2   : > { %v3032_v44 = vadd.f32 1.0, %v3288_v50  ;;  %v2534_v59 = vmul.f32 %v3489_v36, %v5276_v34  ;;  %v2553_v4 = vadd.f32 0.00028619796, %v2552_v10  ;;  %v2564_v22 = vadd.f32 0.001143296, %v2563_v27 }
 0x4a3   : > { %v2227_v42 = vmul.f32 %v3487_v28, %v2226_v60  ;;  %v2062_v26 = vmul.f32 %v2061_v14, %v5004_v6  ;;  %vm2539_vm12 = vweird.f32 %v3489_v36  ;;  %vm2538_vm13 = vweird.f32 %v5276_v34 }
 0x4a4   : > { %v3048_v29 = vmul.f32 %v3032_v44, %v2360_v53  ;;  %v2535_v21 = vsub.f32 1.0, %v2534_v59  ;;  %v2554_v23 = vmul.f32 %v2553_v4, %v5292_v9  ;;  %v2565_v40 = vmul.f32 %v2564_v22, %v5292_v9  ;;  %vm2540_vm14 = vmor %vm2538_vm13, %vm2539_vm12 }
 0x4a5   : > { %v2228_v15 = vadd.f32 %v3487_v28, %v2227_v42  ;;  %v5308_v52 = vadd.f32 1.0, %v2062_v26  ;;  %v2545_v46 = vor.u32 1.1754944e-38, %v2544_v61  ;;  %v2522_v5 = vmul.f32 %v2521_v35, %v5204_v30 }
 0x4a6   : > { %v3064_v8 = vadd.f32 %v3048_v29, %v4215_v45  ;;  %v2536_v47 = vmul.f32 %v3489_v36, %v2535_v21  ;;  %v2542_v45 = vand.u32 2147483647, %v5276_v34  ;;  %v2555_v32 = vadd.f32 0.0036580483, %v2554_v23 }
 0x4a7   : > { %v2232_v63 = vsel %vm2231_vm11, %v3487_v28, %v2228_v15  ;;  %v2566_v37 = vadd.f32 0.014752088, %v2565_v40  ;;  %3490 = vrcp.f32 %v5308_v52  ;;  %v2325_v28 = vpop.f32.mrf.mxu2  ;;  %v2051_v50 = vmul.f32 %v2050_v0, %v5004_v6 }
 0x4a8   : > { %3080 = vst [vmem:[%s5652_s11 + $0x10] sm:$0xff] %v3064_v8  ;;  %v2237_v1 = vsel %vm5298_vm10, %v2236_v7, %v2232_v63  ;;  %v2537_v49 = vadd.f32 %v3489_v36, %v2536_v47  ;;  %v2556_v56 = vmul.f32 %v2555_v32, %v5292_v9  ;;  %vm2543_vm15 = vcmp.eq.f32.partialorder %v2542_v45, 8.507059e+37 }
 0x4a9   : > { %v2238_v55 = vmul.f32 %v2237_v1, %v2213_v57  ;;  %v2567_v43 = vmul.f32 %v2566_v37, %v5292_v9  ;;  %v1584_v19 = vmul.f32 0.5, %v4965_v25  ;;  %v5324_v51 = vadd.f32 %v5046_v18, %v2325_v28 }
 0x4aa   : > { %v2541_v38 = vsel %vm2540_vm14, %v3489_v36, %v2537_v49  ;;  %v2557_v60 = vadd.f32 0.05243302, %v2556_v56  ;;  %v2052_v10 = vadd.f32 1.1283791, %v2051_v50  ;;  %v2361_v6 = vmul.f32 0.5, %v5189_v24 }
 0x4ab   : > { %v3285_v48 = vclamps-f32 %v2238_v55, 1.0  ;;  %v2546_v58 = vsel %vm2543_vm15, %v2545_v46, %v2541_v38  ;;  %v2568_v53 = vadd.f32 0.112945676, %v2567_v43  ;;  %v5330_v14 = vmul.f32 0.70710677, %v5324_v51 }
 0x4ac   : > { %v2547_v34 = vmul.f32 %v2546_v58, %v2522_v5  ;;  %v2558_v29 = vmul.f32 %v2557_v60, %v5292_v9  ;;  %v2073_v42 = vand.u32 2147483647, %v5308_v52  ;;  %v2075_v16 = vand.u32 2147483648, %v5308_v52 }
 0x4ad   : > { %v2256_v57 = vadd.f32 1.0, %v3285_v48  ;;  %v3491_v44 = vpop.eup %3490  ;;  %v2569_v62 = vmul.f32 %v2568_v53, %v5292_v9  ;;  %v2590_v24 = vmul.f32 %v5330_v14, %v5330_v14  ;;  %vm2069_vm0 = vweird.f32 %v5308_v52 }
 0x4ae   : > { %v3289_v30 = vclamps-f32 %v2547_v34, 1.0  ;;  %v2065_v36 = vmul.f32 %v3491_v44, %v5308_v52  ;;  %vm2070_vm1 = vweird.f32 %v3491_v44  ;;  %v2053_v23 = vmul.f32 %v2052_v10, %v4987_v54 }
 0x4af   : > { %v2272_v35 = vmul.f32 %v2256_v57, %v1584_v19  ;;  %v2570_v27 = vadd.f32 0.4994258, %v2569_v62  ;;  %v2328_v26 = vpop.f32.mrf.mxu2  ;;  %v5343_v61 = vmin.f32 %v2590_v24, 16.0  ;;  %v2559_v40 = vadd.f32 0.18741608, %v2558_v29  ;;  %vm2071_vm2 = vmor %vm2069_vm0, %vm2070_vm1 }
 0x4b0   : > { %v3033_v0 = vadd.f32 1.0, %v3289_v30  ;;  %v2066_v25 = vsub.f32 1.0, %v2065_v36  ;;  %v5339_v21 = vadd.f32 %v5046_v18, %v2328_v26  ;;  %v2076_v47 = vor.u32 1.1754944e-38, %v2075_v16 }
 0x4b1   : > { %2354 = vmatmul.f32.gmra.mxu3 %v2272_v35  ;;  %v2571_v59 = vmul.f32 %v2570_v27, %v5292_v9  ;;  %vm2074_vm3 = vcmp.eq.f32.partialorder %v2073_v42, 8.507059e+37  ;;  %v2592_v63 = vmul.f32 2.1237322e-06, %v5343_v61  ;;  %v2560_v55 = vmul.f32 %v2559_v40, %v5292_v9  ;;  %v2346_v27 = vpop.f32.mrf.mxu3 }
 0x4b2   : > { %v3049_v4 = vmul.f32 %v3033_v0, %v2361_v6  ;;  %v2067_v22 = vmul.f32 %v3491_v44, %v2066_v25  ;;  %v5352_v52 = vmul.f32 0.70710677, %v5339_v21  ;;  %v1580_v48 = vmul.f32 0.5, %v4973_v17 }
 0x4b3   : > { %v2572_v8 = vadd.f32 1.0, %v2571_v59  ;;  %v2593_v54 = vadd.f32 0.00028619796, %v2592_v63  ;;  %v2561_v57 = vadd.f32 1.1283791, %v2560_v55  ;;  %v5369_v29 = vadd.f32 %v5046_v18, %v2346_v27 }
 0x4b4   : > { %v3065_v15 = vadd.f32 %v3049_v4, %v4220_v2  ;;  %v2068_v7 = vadd.f32 %v3491_v44, %v2067_v22  ;;  %v2603_v2 = vmul.f32 3.8918573e-05, %v5343_v61  ;;  %v2630_v49 = vmul.f32 %v5352_v52, %v5352_v52 }
 0x4b5   : > { %3492 = vrcp.f32 %v2572_v8  ;;  %v2594_v56 = vmul.f32 %v2593_v54, %v5343_v61  ;;  %v2584_v60 = vand.u32 2147483648, %v2572_v8  ;;  %v2582_v10 = vand.u32 2147483647, %v2572_v8 }
 0x4b6   : > { %3081 = vst [vmem:[%s5652_s11 + $0x18] sm:$0xff] %v3065_v15  ;;  %v2072_v45 = vsel %vm2071_vm2, %v3491_v44, %v2068_v7  ;;  %v2604_v37 = vadd.f32 0.001143296, %v2603_v2  ;;  %v5359_v38 = vmin.f32 %v2630_v49, 16.0  ;;  %vm2578_vm5 = vweird.f32 %v2572_v8 }
 0x4b7   : > { %v2077_v1 = vsel %vm2074_vm3, %v2076_v47, %v2072_v45  ;;  %v2595_v58 = vadd.f32 0.0036580483, %v2594_v56  ;;  %v2562_v42 = vmul.f32 %v2561_v57, %v5279_v13  ;;  %v2585_v16 = vor.u32 1.1754944e-38, %v2584_v60 }
 0x4b8   : > { %v2078_v32 = vmul.f32 %v2077_v1, %v2053_v23  ;;  %v2605_v43 = vmul.f32 %v2604_v37, %v5343_v61  ;;  %v2632_v19 = vmul.f32 2.1237322e-06, %v5359_v38  ;;  %v2643_v34 = vmul.f32 3.8918573e-05, %v5359_v38 }
 0x4b9   : > { %v2596_v17 = vmul.f32 %v2595_v58, %v5343_v61  ;;  %vm2583_vm7 = vcmp.eq.f32.partialorder %v2582_v10, 8.507059e+37  ;;  %v5374_v15 = vmul.f32 0.70710677, %v5369_v29  ;;  %v2362_v49 = vmul.f32 0.5, %v5267_v11 }
 0x4ba   : > { %v3281_v46 = vclamps-f32 %v2078_v32, 1.0  ;;  %v2606_v53 = vadd.f32 0.014752088, %v2605_v43  ;;  %v2633_v30 = vadd.f32 0.00028619796, %v2632_v19 }
 0x4bb   : > { %v3493_v5 = vpop.eup %3492  ;;  %v2644_v35 = vadd.f32 0.001143296, %v2643_v34  ;;  %v2597_v26 = vadd.f32 0.05243302, %v2596_v17  ;;  %v2870_v13 = vmul.f32 %v5374_v15, %v5374_v15 }
 0x4bc   : > { %v2574_v28 = vmul.f32 %v3493_v5, %v2572_v8  ;;  %v2252_v50 = vadd.f32 1.0, %v3281_v46  ;;  %v2607_v62 = vmul.f32 %v2606_v53, %v5343_v61  ;;  %vm2579_vm4 = vweird.f32 %v3493_v5 }
 0x4bd   : > { %v2634_v0 = vmul.f32 %v2633_v30, %v5359_v38  ;;  %v2645_v25 = vmul.f32 %v2644_v35, %v5359_v38  ;;  %vm2580_vm6 = vmor %vm2578_vm5, %vm2579_vm4  ;;  %v2598_v2 = vmul.f32 %v2597_v26, %v5343_v61  ;;  %v5381_v1 = vmin.f32 %v2870_v13, 16.0 }
 0x4be   : > { %v2575_v9 = vsub.f32 1.0, %v2574_v28  ;;  %v2268_v44 = vmul.f32 %v2252_v50, %v1580_v48  ;;  %v2608_v6 = vadd.f32 0.112945676, %v2607_v62 }
 0x4bf   : > { %v2646_v22 = vadd.f32 0.014752088, %v2645_v25  ;;  %v2635_v40 = vadd.f32 0.0036580483, %v2634_v0  ;;  %v2872_v46 = vmul.f32 2.1237322e-06, %v5381_v1 }
 0x4c0   : > { %v2576_v36 = vmul.f32 %v3493_v5, %v2575_v9  ;;  %2342 = vmatmul.f32.gmra.mxu2 %v2268_v44  ;;  %v2609_v4 = vmul.f32 %v2608_v6, %v5343_v61  ;;  %v2883_v56 = vmul.f32 3.8918573e-05, %v5381_v1 }
 0x4c1   : > { %v2647_v18 = vmul.f32 %v2646_v22, %v5359_v38  ;;  %v2636_v54 = vmul.f32 %v2635_v40, %v5359_v38  ;;  %v2873_v28 = vadd.f32 0.00028619796, %v2872_v46 }
 0x4c2   : > { %v2577_v59 = vadd.f32 %v3493_v5, %v2576_v36  ;;  %v2610_v23 = vadd.f32 0.4994258, %v2609_v4  ;;  %v2884_v58 = vadd.f32 0.001143296, %v2883_v56 }
 0x4c3   : > { %v2648_v45 = vadd.f32 0.112945676, %v2647_v18  ;;  %v2637_v50 = vadd.f32 0.05243302, %v2636_v54  ;;  %v2874_v34 = vmul.f32 %v2873_v28, %v5381_v1 }
 0x4c4   : > { %v2581_v24 = vsel %vm2580_vm6, %v3493_v5, %v2577_v59  ;;  %v2611_v8 = vmul.f32 %v2610_v23, %v5343_v61  ;;  %v2599_v5 = vadd.f32 0.18741608, %v2598_v2  ;;  %v2885_v11 = vmul.f32 %v2884_v58, %v5381_v1  ;;  %v5404_v2 = vld [vmem:[%s3671_s20] ss:$0 sm:$0xff] }
 0x4c5   : > { %v2586_v7 = vsel %vm2583_vm7, %v2585_v16, %v2581_v24  ;;  %v2649_v37 = vmul.f32 %v2648_v45, %v5359_v38  ;;  %v2638_v60 = vmul.f32 %v2637_v50, %v5359_v38 }
 0x4c6   : > { %v2587_v47 = vmul.f32 %v2586_v7, %v2562_v42  ;;  %v2612_v32 = vadd.f32 1.0, %v2611_v8  ;;  %v2600_v57 = vmul.f32 %v2599_v5, %v5343_v61  ;;  %v2886_v62 = vadd.f32 0.014752088, %v2885_v11 }
 0x4c7   : > { %v2650_v48 = vadd.f32 0.4994258, %v2649_v37  ;;  %v2639_v6 = vadd.f32 0.18741608, %v2638_v60 }
 0x4c8   : > { %v3290_v63 = vclamps-f32 %v2587_v47, 1.0  ;;  %3494 = vrcp.f32 %v2612_v32  ;;  %v2601_v35 = vadd.f32 1.1283791, %v2600_v57  ;;  %v2887_v10 = vmul.f32 %v2886_v62, %v5381_v1 }
 0x4c9   : > { %v2651_v19 = vmul.f32 %v2650_v48, %v5359_v38  ;;  %v2622_v17 = vand.u32 2147483647, %v2612_v32  ;;  %v2624_v27 = vand.u32 2147483648, %v2612_v32  ;;  %vm2618_vm9 = vweird.f32 %v2612_v32 }
 0x4ca   : > { %v3034_v55 = vadd.f32 1.0, %v3290_v63  ;;  %v2888_v61 = vadd.f32 0.112945676, %v2887_v10  ;;  %v2602_v4 = vmul.f32 %v2601_v35, %v5330_v14  ;;  %v2640_v24 = vmul.f32 %v2639_v6, %v5359_v38 }
 0x4cb   : > { %v2652_v9 = vadd.f32 1.0, %v2651_v19  ;;  %v2625_v22 = vor.u32 1.1754944e-38, %v2624_v27  ;;  %vm2623_vm11 = vcmp.eq.f32.partialorder %v2622_v17, 8.507059e+37 }
 0x4cc   : > { %v3050_v43 = vmul.f32 %v3034_v55, %v2362_v49  ;;  %v2889_v16 = vmul.f32 %v2888_v61, %v5381_v1 }
 0x4cd   : > { %3496 = vrcp.f32 %v2652_v9  ;;  %v2664_v45 = vand.u32 2147483648, %v2652_v9  ;;  %v2662_v38 = vand.u32 2147483647, %v2652_v9  ;;  %vm2658_vm13 = vweird.f32 %v2652_v9 }
 0x4ce   : > { %v3066_v53 = vadd.f32 %v3050_v43, %v4228_v20  ;;  %v3495_v44 = vpop.eup %3494  ;;  %v2875_v20 = vadd.f32 0.0036580483, %v2874_v34  ;;  %v2890_v40 = vadd.f32 0.4994258, %v2889_v16  ;;  %v2363_v43 = vmul.f32 0.5, %v5324_v51 }
 0x4cf   : > { %v2614_v30 = vmul.f32 %v3495_v44, %v2612_v32  ;;  %vm2619_vm8 = vweird.f32 %v3495_v44  ;;  %v2641_v32 = vadd.f32 1.1283791, %v2640_v24  ;;  %v2665_v48 = vor.u32 1.1754944e-38, %v2664_v45 }
 0x4d0   : > { %3082 = vst [vmem:[%s5652_s11 + $0x20] sm:$0xff] %v3066_v53  ;;  %v2876_v25 = vmul.f32 %v2875_v20, %v5381_v1  ;;  %vm2620_vm10 = vmor %vm2618_vm9, %vm2619_vm8  ;;  %v2891_v63 = vmul.f32 %v2890_v40, %v5381_v1  ;;  %vm2663_vm15 = vcmp.eq.f32.partialorder %v2662_v38, 8.507059e+37  ;;  %v2370_v45 = vmul.f32 0.5, %v5369_v29 }
 0x4d1   : > { %v2615_v36 = vsub.f32 1.0, %v2614_v30  ;;  %v2642_v28 = vmul.f32 %v2641_v32, %v5352_v52  ;;  %v2364_v30 = vmul.f32 0.5, %v5339_v21 }
 0x4d2   : > { %v2877_v23 = vadd.f32 0.05243302, %v2876_v25  ;;  %v2892_v55 = vadd.f32 1.0, %v2891_v63 }
 0x4d3   : > { %v2616_v0 = vmul.f32 %v3495_v44, %v2615_v36  ;;  %v3497_v59 = vpop.eup %3496 }
 0x4d4   : > { %v2654_v26 = vmul.f32 %v3497_v59, %v2652_v9  ;;  %v2331_v13 = vpop.f32.mrf.mxu2  ;;  %vm2659_vm12 = vweird.f32 %v3497_v59  ;;  %v2878_v49 = vmul.f32 %v2877_v23, %v5381_v1  ;;  %3498 = vrcp.f32 %v2892_v55 }
 0x4d5   : > { %v2617_v42 = vadd.f32 %v3495_v44, %v2616_v0  ;;  %v5407_v14 = vadd.f32 %v5404_v2, %v2331_v13  ;;  %vm2660_vm14 = vmor %vm2658_vm13, %vm2659_vm12  ;;  %v2904_v0 = vand.u32 2147483648, %v2892_v55  ;;  %vm2898_vm0 = vweird.f32 %v2892_v55 }
 0x4d6   : > { %v2655_v47 = vsub.f32 1.0, %v2654_v26  ;;  %v2879_v34 = vadd.f32 0.18741608, %v2878_v49 }
 0x4d7   : > { %v2621_v7 = vsel %vm2620_vm10, %v3495_v44, %v2617_v42  ;;  %v5411_v46 = vmul.f32 0.70710677, %v5407_v14  ;;  %v2902_v42 = vand.u32 2147483647, %v2892_v55 }
 0x4d8   : > { %v2626_v18 = vsel %vm2623_vm11, %v2625_v22, %v2621_v7  ;;  %v2656_v54 = vmul.f32 %v3497_v59, %v2655_v47  ;;  %v2880_v52 = vmul.f32 %v2879_v34, %v5381_v1  ;;  %v2905_v1 = vor.u32 1.1754944e-38, %v2904_v0 }
 0x4d9   : > { %v2627_v8 = vmul.f32 %v2626_v18, %v2602_v4  ;;  %v2670_v58 = vmul.f32 %v5411_v46, %v5411_v46  ;;  %vm2903_vm3 = vcmp.eq.f32.partialorder %v2902_v42, 8.507059e+37 }
 0x4da   : > { %v2657_v56 = vadd.f32 %v3497_v59, %v2656_v54  ;;  %v3499_v62 = vpop.eup %3498 }
 0x4db   : > { %v3291_v37 = vclamps-f32 %v2627_v8, 1.0  ;;  %v2671_v57 = vmin.f32 %v2670_v58, 16.0  ;;  %v2894_v35 = vmul.f32 %v3499_v62, %v2892_v55  ;;  %vm2899_vm1 = vweird.f32 %v3499_v62 }
 0x4dc   : > { %v2661_v50 = vsel %vm2660_vm14, %v3497_v59, %v2657_v56  ;;  %vm2900_vm2 = vmor %vm2898_vm0, %vm2899_vm1 }
 0x4dd   : > { %v3035_v5 = vadd.f32 1.0, %v3291_v37  ;;  %v2666_v19 = vsel %vm2663_vm15, %v2665_v48, %v2661_v50  ;;  %v2672_v51 = vmul.f32 2.1237322e-06, %v2671_v57  ;;  %v2683_v60 = vmul.f32 3.8918573e-05, %v2671_v57 }
 0x4de   : > { %v2667_v11 = vmul.f32 %v2666_v19, %v2642_v28  ;;  %v2895_v27 = vsub.f32 1.0, %v2894_v35 }
 0x4df   : > { %v3051_v53 = vmul.f32 %v3035_v5, %v2363_v43  ;;  %v2673_v36 = vadd.f32 0.00028619796, %v2672_v51  ;;  %v2684_v10 = vadd.f32 0.001143296, %v2683_v60 }
 0x4e0   : > { %v3292_v44 = vclamps-f32 %v2667_v11, 1.0  ;;  %v2896_v59 = vmul.f32 %v3499_v62, %v2895_v27 }
 0x4e1   : > { %v3067_v9 = vadd.f32 %v3051_v53, %v4233_v3  ;;  %v2674_v6 = vmul.f32 %v2673_v36, %v2671_v57  ;;  %v2881_v3 = vadd.f32 1.1283791, %v2880_v52  ;;  %v2685_v25 = vmul.f32 %v2684_v10, %v2671_v57 }
 0x4e2   : > { %v3036_v20 = vadd.f32 1.0, %v3292_v44  ;;  %v2897_v21 = vadd.f32 %v3499_v62, %v2896_v59 }
 0x4e3   : > { %3083 = vst [vmem:[%s5652_s11 + $0x28] sm:$0xff] %v3067_v9  ;;  %v2675_v16 = vadd.f32 0.0036580483, %v2674_v6  ;;  %v2686_v4 = vadd.f32 0.014752088, %v2685_v25  ;;  %v2882_v24 = vmul.f32 %v2881_v3, %v5374_v15 }
 0x4e4   : > { %v3052_v17 = vmul.f32 %v3036_v20, %v2364_v30  ;;  %v2901_v26 = vsel %vm2900_vm2, %v3499_v62, %v2897_v21 }
 0x4e5   : > { %v2687_v22 = vmul.f32 %v2686_v4, %v2671_v57  ;;  %v2906_v7 = vsel %vm2903_vm3, %v2905_v1, %v2901_v26  ;;  %v2334_v32 = vpop.f32.mrf.mxu2  ;;  %v2365_v4 = vmul.f32 0.5, %v5407_v14 }
 0x4e6   : > { %v3068_v61 = vadd.f32 %v3052_v17, %v4238_v39  ;;  %v2676_v39 = vmul.f32 %v2675_v16, %v2671_v57  ;;  %v2907_v40 = vmul.f32 %v2906_v7, %v2882_v24  ;;  %v5430_v38 = vadd.f32 %v5404_v2, %v2334_v32 }
 0x4e7   : > { %v2688_v23 = vadd.f32 0.112945676, %v2687_v22 }
 0x4e8   : > { %3084 = vst [vmem:[%s5652_s11 + $0x30] sm:$0xff] %v3068_v61  ;;  %v3298_v47 = vclamps-f32 %v2907_v40, 1.0  ;;  %v2677_v13 = vadd.f32 0.05243302, %v2676_v39  ;;  %v5433_v55 = vmul.f32 0.70710677, %v5430_v38 }
 0x4e9   : > { %v2689_v18 = vmul.f32 %v2688_v23, %v2671_v57 }
 0x4ea   : > { %v3042_v63 = vadd.f32 1.0, %v3298_v47  ;;  %v2678_v15 = vmul.f32 %v2677_v13, %v2671_v57  ;;  %v2710_v29 = vmul.f32 %v5433_v55, %v5433_v55 }
 0x4eb   : > { %v2690_v8 = vadd.f32 0.4994258, %v2689_v18 }
 0x4ec   : > { %v3058_v37 = vmul.f32 %v3042_v63, %v2370_v45  ;;  %v2679_v43 = vadd.f32 0.18741608, %v2678_v15  ;;  %v2711_v5 = vmin.f32 %v2710_v29, 16.0 }
 0x4ed   : > { %v2691_v54 = vmul.f32 %v2690_v8, %v2671_v57 }
 0x4ee   : > { %v3074_v56 = vadd.f32 %v3058_v37, %v4243_v12  ;;  %v2712_v48 = vmul.f32 2.1237322e-06, %v2711_v5  ;;  %v2723_v28 = vmul.f32 3.8918573e-05, %v2711_v5  ;;  %v2680_v58 = vmul.f32 %v2679_v43, %v2671_v57 }
 0x4ef   : > { %v2692_v49 = vadd.f32 1.0, %v2691_v54 }
 0x4f0   : > { %3090 = vst [vmem:[%s5652_s11 + $0x60] sm:$0xff] %v3074_v56  ;;  %v2713_v19 = vadd.f32 0.00028619796, %v2712_v48  ;;  %v2724_v34 = vadd.f32 0.001143296, %v2723_v28 }
 0x4f1   : > { %3500 = vrcp.f32 %v2692_v49  ;;  %v2681_v44 = vadd.f32 1.1283791, %v2680_v58  ;;  %v2702_v51 = vand.u32 2147483647, %v2692_v49  ;;  %v2704_v60 = vand.u32 2147483648, %v2692_v49 }
 0x4f2   : > { %v2714_v9 = vmul.f32 %v2713_v19, %v2711_v5  ;;  %v2725_v12 = vmul.f32 %v2724_v34, %v2711_v5  ;;  %vm2698_vm5 = vweird.f32 %v2692_v49 }
 0x4f3   : > { %v2682_v10 = vmul.f32 %v2681_v44, %v5411_v46  ;;  %v2705_v57 = vor.u32 1.1754944e-38, %v2704_v60  ;;  %vm2703_vm7 = vcmp.eq.f32.partialorder %v2702_v51, 8.507059e+37  ;;  %v2349_v16 = vpop.f32.mrf.mxu3 }
 0x4f4   : > { %v2715_v52 = vadd.f32 0.0036580483, %v2714_v9  ;;  %v2726_v30 = vadd.f32 0.014752088, %v2725_v12  ;;  %v5444_v22 = vadd.f32 %v5404_v2, %v2349_v16 }
 0x4f6   : > { %v2716_v35 = vmul.f32 %v2715_v52, %v2711_v5  ;;  %v2727_v36 = vmul.f32 %v2726_v30, %v2711_v5  ;;  %v5447_v7 = vmul.f32 0.70710677, %v5444_v22 }
 0x4f7   : > { %v3501_v50 = vpop.eup %3500 }
 0x4f8   : > { %v2694_v53 = vmul.f32 %v3501_v50, %v2692_v49  ;;  %vm2699_vm4 = vweird.f32 %v3501_v50  ;;  %v2717_v27 = vadd.f32 0.05243302, %v2716_v35  ;;  %v2728_v6 = vadd.f32 0.112945676, %v2727_v36 }
 0x4f9   : > { %vm2700_vm6 = vmor %vm2698_vm5, %vm2699_vm4  ;;  %v2910_v23 = vmul.f32 %v5447_v7, %v5447_v7 }
 0x4fa   : > { %v2695_v11 = vsub.f32 1.0, %v2694_v53  ;;  %v2729_v25 = vmul.f32 %v2728_v6, %v2711_v5  ;;  %v2718_v59 = vmul.f32 %v2717_v27, %v2711_v5 }
 0x4fb   : > { %v5455_v18 = vmin.f32 %v2910_v23, 16.0 }
 0x4fc   : > { %v2696_v62 = vmul.f32 %v3501_v50, %v2695_v11  ;;  %v2730_v42 = vadd.f32 0.4994258, %v2729_v25  ;;  %v2719_v24 = vadd.f32 0.18741608, %v2718_v59 }
 0x4fd   : > { %v2912_v13 = vmul.f32 2.1237322e-06, %v5455_v18  ;;  %v2923_v8 = vmul.f32 3.8918573e-05, %v5455_v18 }
 0x4fe   : > { %v2697_v20 = vadd.f32 %v3501_v50, %v2696_v62  ;;  %v2731_v1 = vmul.f32 %v2730_v42, %v2711_v5  ;;  %v2720_v14 = vmul.f32 %v2719_v24, %v2711_v5  ;;  %v2337_v40 = vpop.f32.mrf.mxu2 }
 0x4ff   : > { %v5458_v47 = vadd.f32 %v5404_v2, %v2337_v40  ;;  %v2913_v54 = vadd.f32 0.00028619796, %v2912_v13  ;;  %v2924_v37 = vadd.f32 0.001143296, %v2923_v8  ;;  %v2366_v40 = vmul.f32 0.5, %v5430_v38 }
 0x500   : > { %v2701_v17 = vsel %vm2700_vm6, %v3501_v50, %v2697_v20  ;;  %v2732_v26 = vadd.f32 1.0, %v2731_v1  ;;  %v2721_v45 = vadd.f32 1.1283791, %v2720_v14 }
 0x501   : > { %v2706_v3 = vsel %vm2703_vm7, %v2705_v57, %v2701_v17  ;;  %v5463_v63 = vmul.f32 0.70710677, %v5458_v47  ;;  %v2914_v43 = vmul.f32 %v2913_v54, %v5455_v18  ;;  %v2925_v5 = vmul.f32 %v2924_v37, %v5455_v18 }
 0x502   : > { %v2707_v0 = vmul.f32 %v2706_v3, %v2682_v10  ;;  %3502 = vrcp.f32 %v2732_v26  ;;  %v2742_v15 = vand.u32 2147483647, %v2732_v26  ;;  %v2722_v28 = vmul.f32 %v2721_v45, %v5433_v55 }
 0x503   : > { %v2750_v49 = vmul.f32 %v5463_v63, %v5463_v63  ;;  %vm2738_vm8 = vweird.f32 %v2732_v26  ;;  %v2744_v50 = vand.u32 2147483648, %v2732_v26  ;;  %v2915_v34 = vadd.f32 0.0036580483, %v2914_v43 }
 0x504   : > { %v3293_v61 = vclamps-f32 %v2707_v0, 1.0  ;;  %v2352_v56 = vpop.f32.mrf.mxu3  ;;  %v2926_v11 = vadd.f32 0.014752088, %v2925_v5  ;;  %vm2743_vm10 = vcmp.eq.f32.partialorder %v2742_v15, 8.507059e+37 }
 0x505   : > { %v5470_v48 = vadd.f32 %v5404_v2, %v2352_v56  ;;  %v5473_v58 = vmin.f32 %v2750_v49, 16.0  ;;  %v2916_v60 = vmul.f32 %v2915_v34, %v5455_v18  ;;  %v2745_v52 = vor.u32 1.1754944e-38, %v2744_v50 }
 0x506   : > { %v3037_v21 = vadd.f32 1.0, %v3293_v61  ;;  %v2927_v62 = vmul.f32 %v2926_v11, %v5455_v18 }
 0x507   : > { %v2752_v9 = vmul.f32 2.1237322e-06, %v5473_v58  ;;  %v2763_v12 = vmul.f32 3.8918573e-05, %v5473_v58  ;;  %v5478_v44 = vmul.f32 0.70710677, %v5470_v48 }
 0x508   : > { %v3053_v46 = vmul.f32 %v3037_v21, %v2365_v4  ;;  %v2917_v10 = vadd.f32 0.05243302, %v2916_v60  ;;  %v2928_v57 = vadd.f32 0.112945676, %v2927_v62 }
 0x509   : > { %v2753_v30 = vadd.f32 0.00028619796, %v2752_v9  ;;  %v2764_v20 = vadd.f32 0.001143296, %v2763_v12  ;;  %v2950_v35 = vmul.f32 %v5478_v44, %v5478_v44 }
 0x50a   : > { %v3069_v39 = vadd.f32 %v3053_v46, %v4275_v33  ;;  %v3503_v33 = vpop.eup %3502  ;;  %v2929_v61 = vmul.f32 %v2928_v57, %v5455_v18  ;;  %v2918_v1 = vmul.f32 %v2917_v10, %v5455_v18  ;;  %v2371_v57 = vmul.f32 0.5, %v5444_v22 }
 0x50b   : > { %v2734_v32 = vmul.f32 %v3503_v33, %v2732_v26  ;;  %vm2739_vm9 = vweird.f32 %v3503_v33  ;;  %v2754_v6 = vmul.f32 %v2753_v30, %v5473_v58  ;;  %v2765_v3 = vmul.f32 %v2764_v20, %v5473_v58 }
 0x50c   : > { %3085 = vst [vmem:[%s5652_s11 + $0x38] sm:$0xff] %v3069_v39  ;;  %vm2740_vm11 = vmor %vm2738_vm8, %vm2739_vm9  ;;  %v5493_v0 = vmin.f32 %v2950_v35, 16.0  ;;  %v2930_v46 = vadd.f32 0.4994258, %v2929_v61  ;;  %v2919_v49 = vadd.f32 0.18741608, %v2918_v1 }
 0x50d   : > { %v2735_v29 = vsub.f32 1.0, %v2734_v32  ;;  %v2755_v42 = vadd.f32 0.0036580483, %v2754_v6  ;;  %v2766_v16 = vadd.f32 0.014752088, %v2765_v3 }
 0x50e   : > { %v2952_v4 = vmul.f32 2.1237322e-06, %v5493_v0  ;;  %v2963_v14 = vmul.f32 3.8918573e-05, %v5493_v0  ;;  %v2931_v8 = vmul.f32 %v2930_v46, %v5455_v18 }
 0x50f   : > { %v2736_v19 = vmul.f32 %v3503_v33, %v2735_v29  ;;  %v2756_v26 = vmul.f32 %v2755_v42, %v5473_v58  ;;  %v2767_v39 = vmul.f32 %v2766_v16, %v5473_v58 }
 0x510   : > { %v2953_v23 = vadd.f32 0.00028619796, %v2952_v4  ;;  %v2964_v32 = vadd.f32 0.001143296, %v2963_v14  ;;  %v2932_v15 = vadd.f32 1.0, %v2931_v8 }
 0x511   : > { %v2737_v55 = vadd.f32 %v3503_v33, %v2736_v19  ;;  %v2757_v56 = vadd.f32 0.05243302, %v2756_v26  ;;  %v2920_v19 = vmul.f32 %v2919_v49, %v5455_v18 }
 0x512   : > { %v2954_v45 = vmul.f32 %v2953_v23, %v5493_v0  ;;  %v2965_v43 = vmul.f32 %v2964_v32, %v5493_v0  ;;  %3504 = vrcp.f32 %v2932_v15  ;;  %v2942_v6 = vand.u32 2147483647, %v2932_v15 }
 0x513   : > { %v2741_v36 = vsel %vm2740_vm11, %v3503_v33, %v2737_v55  ;;  %v2768_v33 = vadd.f32 0.112945676, %v2767_v39  ;;  %v2758_v34 = vmul.f32 %v2757_v56, %v5473_v58  ;;  %vm2938_vm13 = vweird.f32 %v2932_v15 }
 0x514   : > { %v2746_v27 = vsel %vm2743_vm10, %v2745_v52, %v2741_v36  ;;  %v2955_v38 = vadd.f32 0.0036580483, %v2954_v45  ;;  %v2921_v36 = vadd.f32 1.1283791, %v2920_v19  ;;  %vm2943_vm14 = vcmp.eq.f32.partialorder %v2942_v6, 8.507059e+37 }
 0x515   : > { %v2747_v25 = vmul.f32 %v2746_v27, %v2722_v28  ;;  %v2769_v29 = vmul.f32 %v2768_v33, %v5473_v58  ;;  %v2759_v35 = vadd.f32 0.18741608, %v2758_v34 }
 0x516   : > { %v2956_v9 = vmul.f32 %v2955_v38, %v5493_v0  ;;  %v2922_v1 = vmul.f32 %v2921_v36, %v5447_v7 }
 0x517   : > { %v3294_v21 = vclamps-f32 %v2747_v25, 1.0  ;;  %v2770_v50 = vadd.f32 0.4994258, %v2769_v29  ;;  %v2944_v25 = vand.u32 2147483648, %v2932_v15  ;;  %v2760_v4 = vmul.f32 %v2759_v35, %v5473_v58 }
 0x518   : > { %v3505_v55 = vpop.eup %3504  ;;  %v2957_v10 = vadd.f32 0.05243302, %v2956_v9 }
 0x519   : > { %v3038_v13 = vadd.f32 1.0, %v3294_v21  ;;  %v2771_v11 = vmul.f32 %v2770_v50, %v5473_v58  ;;  %v2934_v20 = vmul.f32 %v3505_v55, %v2932_v15  ;;  %vm2939_vm12 = vweird.f32 %v3505_v55 }
 0x51a   : > { %v2340_v53 = vpop.f32.mrf.mxu2  ;;  %v2958_v22 = vmul.f32 %v2957_v10, %v5493_v0  ;;  %vm2940_vm15 = vmor %vm2938_vm13, %vm2939_vm12  ;;  %v2761_v33 = vadd.f32 1.1283791, %v2760_v4 }
 0x51b   : > { %v5481_v51 = vadd.f32 %v5404_v2, %v2340_v53  ;;  %v3054_v37 = vmul.f32 %v3038_v13, %v2366_v40  ;;  %v2966_v53 = vadd.f32 0.014752088, %v2965_v43  ;;  %v5521_v60 = vadd.f32 1.0, %v2771_v11 }
 0x51c   : > { %v2935_v27 = vsub.f32 1.0, %v2934_v20  ;;  %v2945_v40 = vor.u32 1.1754944e-38, %v2944_v25  ;;  %v2762_v11 = vmul.f32 %v2761_v33, %v5463_v63 }
 0x51d   : > { %v5489_v17 = vmul.f32 0.70710677, %v5481_v51  ;;  %v3070_v5 = vadd.f32 %v3054_v37, %v4289_v31  ;;  %v2967_v12 = vmul.f32 %v2966_v53, %v5493_v0  ;;  %3506 = vrcp.f32 %v5521_v60 }
 0x51e   : > { %v2936_v16 = vmul.f32 %v3505_v55, %v2935_v27  ;;  %v2959_v37 = vadd.f32 0.18741608, %v2958_v22  ;;  %v2782_v43 = vand.u32 2147483647, %v5521_v60  ;;  %vm2778_vm0 = vweird.f32 %v5521_v60 }
 0x51f   : > { %v2790_v59 = vmul.f32 %v5489_v17, %v5489_v17  ;;  %3086 = vst [vmem:[%s5652_s11 + $0x40] sm:$0xff] %v3070_v5  ;;  %v2968_v62 = vadd.f32 0.112945676, %v2967_v12  ;;  %v2784_v5 = vand.u32 2147483648, %v5521_v60 }
 0x520   : > { %v2937_v39 = vadd.f32 %v3505_v55, %v2936_v16  ;;  %v2960_v9 = vmul.f32 %v2959_v37, %v5493_v0  ;;  %vm2783_vm3 = vcmp.eq.f32.partialorder %v2782_v43, 8.507059e+37 }
 0x521   : > { %v5500_v24 = vmin.f32 %v2790_v59, 16.0  ;;  %v2969_v3 = vmul.f32 %v2968_v62, %v5493_v0 }
 0x522   : > { %v2941_v8 = vsel %vm2940_vm15, %v3505_v55, %v2937_v39  ;;  %v2961_v16 = vadd.f32 1.1283791, %v2960_v9 }
 0x523   : > { %v2792_v54 = vmul.f32 2.1237322e-06, %v5500_v24  ;;  %v2803_v31 = vmul.f32 3.8918573e-05, %v5500_v24  ;;  %v2970_v21 = vadd.f32 0.4994258, %v2969_v3  ;;  %v3507_v14 = vpop.eup %3506 }
 0x524   : > { %v2774_v45 = vmul.f32 %v3507_v14, %v5521_v60  ;;  %vm2779_vm1 = vweird.f32 %v3507_v14 }
 0x525   : > { %v2793_v28 = vadd.f32 0.00028619796, %v2792_v54  ;;  %v2804_v30 = vadd.f32 0.001143296, %v2803_v31  ;;  %v2971_v23 = vmul.f32 %v2970_v21, %v5493_v0  ;;  %v2946_v54 = vsel %vm2943_vm14, %v2945_v40, %v2941_v8  ;;  %vm2780_vm2 = vmor %vm2778_vm0, %vm2779_vm1 }
 0x526   : > { %v2947_v56 = vmul.f32 %v2946_v54, %v2922_v1  ;;  %v2775_v29 = vsub.f32 1.0, %v2774_v45 }
 0x527   : > { %v2794_v52 = vmul.f32 %v2793_v28, %v5500_v24  ;;  %v2805_v59 = vmul.f32 %v2804_v30, %v5500_v24  ;;  %v5543_v32 = vadd.f32 1.0, %v2971_v23  ;;  %v2785_v30 = vor.u32 1.1754944e-38, %v2784_v5 }
 0x528   : > { %v3299_v50 = vclamps-f32 %v2947_v56, 1.0  ;;  %v2776_v53 = vmul.f32 %v3507_v14, %v2775_v29  ;;  %v5706_v56 = vld [vmem:[#allocation6_spill] sm:$0xff] }
 0x529   : > { %v2795_v61 = vadd.f32 0.0036580483, %v2794_v52  ;;  %v2806_v46 = vadd.f32 0.014752088, %v2805_v59  ;;  %3508 = vrcp.f32 %v5543_v32  ;;  %v2984_v1 = vand.u32 2147483648, %v5543_v32 }
 0x52a   : > { %v3043_v31 = vadd.f32 1.0, %v3299_v50  ;;  %v2777_v55 = vadd.f32 %v3507_v14, %v2776_v53  ;;  %vm2978_vm5 = vweird.f32 %v5543_v32 }
 0x52b   : > { %v2796_v13 = vmul.f32 %v2795_v61, %v5500_v24  ;;  %v2807_v58 = vmul.f32 %v2806_v46, %v5500_v24  ;;  %v2985_v45 = vor.u32 1.1754944e-38, %v2984_v1 }
 0x52c   : > { %v3059_v36 = vmul.f32 %v3043_v31, %v2371_v57  ;;  %v2781_v63 = vsel %vm2780_vm2, %v3507_v14, %v2777_v55  ;;  %v2367_v14 = vmul.f32 0.5, %v5458_v47  ;;  %v2962_v47 = vmul.f32 %v2961_v16, %v5478_v44 }
 0x52d   : > { %v2808_v15 = vadd.f32 0.112945676, %v2807_v58  ;;  %v2797_v38 = vadd.f32 0.05243302, %v2796_v13  ;;  %v2786_v10 = vsel %vm2783_vm3, %v2785_v30, %v2781_v63  ;;  %v2372_v44 = vmul.f32 0.5, %v5470_v48 }
 0x52e   : > { %v3075_v3 = vadd.f32 %v3059_v36, %v4248_v41  ;;  %v2787_v25 = vmul.f32 %v2786_v10, %v2762_v11  ;;  %v2982_v41 = vand.u32 2147483647, %v5543_v32 }
 0x52f   : > { %v2809_v28 = vmul.f32 %v2808_v15, %v5500_v24  ;;  %v2798_v20 = vmul.f32 %v2797_v38, %v5500_v24 }
 0x530   : > { %3091 = vst [vmem:[%s5652_s11 + $0x68] sm:$0xff] %v3075_v3  ;;  %v3295_v21 = vclamps-f32 %v2787_v25, 1.0  ;;  %vm2983_vm7 = vcmp.eq.f32.partialorder %v2982_v41, 8.507059e+37 }
 0x531   : > { %v2810_v12 = vadd.f32 0.4994258, %v2809_v28  ;;  %v2799_v22 = vadd.f32 0.18741608, %v2798_v20 }
 0x532   : > { %v3039_v40 = vadd.f32 1.0, %v3295_v21 }
 0x533   : > { %v2811_v35 = vmul.f32 %v2810_v12, %v5500_v24  ;;  %v2800_v54 = vmul.f32 %v2799_v22, %v5500_v24  ;;  %v2368_v22 = vmul.f32 0.5, %v5481_v51 }
 0x534   : > { %v2355_v18 = vpop.f32.mrf.mxu3  ;;  %v3055_v33 = vmul.f32 %v3039_v40, %v2367_v14 }
 0x535   : > { %v5529_v42 = vadd.f32 %v5404_v2, %v2355_v18  ;;  %v3509_v18 = vpop.eup %3508  ;;  %v5562_v6 = vadd.f32 1.0, %v2811_v35  ;;  %v2801_v24 = vadd.f32 1.1283791, %v2800_v54 }
 0x536   : > { %v2974_v27 = vmul.f32 %v3509_v18, %v5543_v32  ;;  %vm2979_vm4 = vweird.f32 %v3509_v18  ;;  %v3071_v29 = vadd.f32 %v3055_v33, %v5706_v56 }
 0x537   : > { %v5535_v26 = vmul.f32 0.70710677, %v5529_v42  ;;  %3510 = vrcp.f32 %v5562_v6  ;;  %vm2980_vm6 = vmor %vm2978_vm5, %vm2979_vm4  ;;  %v2824_v11 = vand.u32 2147483648, %v5562_v6  ;;  %v2822_v55 = vand.u32 2147483647, %v5562_v6 }
 0x538   : > { %v2975_v4 = vsub.f32 1.0, %v2974_v27  ;;  %3087 = vst [vmem:[%s5652_s11 + $0x48] sm:$0xff] %v3071_v29  ;;  %vm2818_vm9 = vweird.f32 %v5562_v6  ;;  %v5707_v27 = vld [vmem:[#allocation4_spill] sm:$0xff] }
 0x539   : > { %v2990_v7 = vmul.f32 %v5535_v26, %v5535_v26  ;;  %v2825_v63 = vor.u32 1.1754944e-38, %v2824_v11  ;;  %vm2823_vm11 = vcmp.eq.f32.partialorder %v2822_v55, 8.507059e+37 }
 0x53a   : > { %v2976_v39 = vmul.f32 %v3509_v18, %v2975_v4 }
 0x53b   : > { %v5545_v49 = vmin.f32 %v2990_v7, 16.0 }
 0x53c   : > { %v2977_v58 = vadd.f32 %v3509_v18, %v2976_v39 }
 0x53d   : > { %v2992_v19 = vmul.f32 2.1237322e-06, %v5545_v49  ;;  %v3003_v34 = vmul.f32 3.8918573e-05, %v5545_v49  ;;  %v3511_v37 = vpop.eup %3510 }
 0x53e   : > { %v2981_v15 = vsel %vm2980_vm6, %v3509_v18, %v2977_v58  ;;  %v2814_v5 = vmul.f32 %v3511_v37, %v5562_v6  ;;  %vm2819_vm8 = vweird.f32 %v3511_v37 }
 0x53f   : > { %v2993_v62 = vadd.f32 0.00028619796, %v2992_v19  ;;  %v3004_v52 = vadd.f32 0.001143296, %v3003_v34  ;;  %v2986_v43 = vsel %vm2983_vm7, %v2985_v45, %v2981_v15  ;;  %vm2820_vm10 = vmor %vm2818_vm9, %vm2819_vm8  ;;  %v5708_v45 = vld [vmem:[#allocation7_spill] sm:$0xff] }
 0x540   : > { %v2987_v38 = vmul.f32 %v2986_v43, %v2962_v47  ;;  %v2815_v19 = vsub.f32 1.0, %v2814_v5 }
 0x541   : > { %v2994_v60 = vmul.f32 %v2993_v62, %v5545_v49  ;;  %v3005_v0 = vmul.f32 %v3004_v52, %v5545_v49 }
 0x542   : > { %v3300_v34 = vclamps-f32 %v2987_v38, 1.0  ;;  %v2816_v31 = vmul.f32 %v3511_v37, %v2815_v19 }
 0x543   : > { %v3006_v61 = vadd.f32 0.014752088, %v3005_v0  ;;  %v2343_v59 = vpop.f32.mrf.mxu2  ;;  %v2995_v57 = vadd.f32 0.0036580483, %v2994_v60  ;;  %v2802_v60 = vmul.f32 %v2801_v24, %v5489_v17 }
 0x544   : > { %v5573_v23 = vadd.f32 %v5404_v2, %v2343_v59  ;;  %v3044_v52 = vadd.f32 1.0, %v3300_v34  ;;  %v2817_v35 = vadd.f32 %v3511_v37, %v2816_v31 }
 0x545   : > { %v3007_v46 = vmul.f32 %v3006_v61, %v5545_v49  ;;  %v2996_v7 = vmul.f32 %v2995_v57, %v5545_v49 }
 0x546   : > { %v5579_v8 = vmul.f32 0.70710677, %v5573_v23  ;;  %v3060_v36 = vmul.f32 %v3044_v52, %v2372_v44  ;;  %v2821_v0 = vsel %vm2820_vm10, %v3511_v37, %v2817_v35  ;;  %v2373_v44 = vmul.f32 0.5, %v5529_v42 }
 0x547   : > { %v3008_v13 = vadd.f32 0.112945676, %v3007_v46  ;;  %v2997_v28 = vadd.f32 0.05243302, %v2996_v7  ;;  %v2826_v25 = vsel %vm2823_vm11, %v2825_v63, %v2821_v0 }
 0x548   : > { %v2830_v32 = vmul.f32 %v5579_v8, %v5579_v8  ;;  %v3076_v3 = vadd.f32 %v3060_v36, %v5707_v27  ;;  %v2827_v16 = vmul.f32 %v2826_v25, %v2802_v60  ;;  %v2369_v60 = vmul.f32 0.5, %v5573_v23  ;;  %v5710_v27 = vld [vmem:[#allocation8_spill] sm:$0xff] }
 0x549   : > { %v3009_v2 = vmul.f32 %v3008_v13, %v5545_v49  ;;  %v2998_v30 = vmul.f32 %v2997_v28, %v5545_v49 }
 0x54a   : > { %v5588_v53 = vmin.f32 %v2830_v32, 16.0  ;;  %3092 = vst [vmem:[%s5652_s11 + $0x70] sm:$0xff] %v3076_v3  ;;  %v3296_v4 = vclamps-f32 %v2827_v16, 1.0 }
 0x54b   : > { %v3010_v50 = vadd.f32 0.4994258, %v3009_v2  ;;  %v2999_v61 = vadd.f32 0.18741608, %v2998_v30 }
 0x54c   : > { %v2832_v12 = vmul.f32 2.1237322e-06, %v5588_v53  ;;  %v2843_v62 = vmul.f32 3.8918573e-05, %v5588_v53  ;;  %v3040_v46 = vadd.f32 1.0, %v3296_v4 }
 0x54d   : > { %v3011_v9 = vmul.f32 %v3010_v50, %v5545_v49  ;;  %v3000_v17 = vmul.f32 %v2999_v61, %v5545_v49 }
 0x54e   : > { %v2833_v48 = vadd.f32 0.00028619796, %v2832_v12  ;;  %v2844_v18 = vadd.f32 0.001143296, %v2843_v62  ;;  %v3056_v14 = vmul.f32 %v3040_v46, %v2368_v22 }
 0x54f   : > { %v3012_v20 = vadd.f32 1.0, %v3011_v9  ;;  %v3001_v58 = vadd.f32 1.1283791, %v3000_v17  ;;  %v5709_v9 = vld [vmem:[#allocation5_spill] sm:$0xff] }
 0x550   : > { %v2834_v10 = vmul.f32 %v2833_v48, %v5588_v53  ;;  %v2845_v59 = vmul.f32 %v2844_v18, %v5588_v53  ;;  %v3072_v54 = vadd.f32 %v3056_v14, %v5708_v45 }
 0x551   : > { %3512 = vrcp.f32 %v3012_v20  ;;  %v3024_v7 = vand.u32 2147483648, %v3012_v20  ;;  %v3022_v49 = vand.u32 2147483647, %v3012_v20  ;;  %vm3018_vm13 = vweird.f32 %v3012_v20 }
 0x552   : > { %v2846_v6 = vadd.f32 0.014752088, %v2845_v59  ;;  %v2835_v57 = vadd.f32 0.0036580483, %v2834_v10  ;;  %3088 = vst [vmem:[%s5652_s11 + $0x50] sm:$0xff] %v3072_v54  ;;  %v3002_v56 = vmul.f32 %v3001_v58, %v5535_v26 }
 0x553   : > { %v3025_v15 = vor.u32 1.1754944e-38, %v3024_v7  ;;  %vm3023_vm15 = vcmp.eq.f32.partialorder %v3022_v49, 8.507059e+37 }
 0x554   : > { %v2847_v1 = vmul.f32 %v2846_v6, %v5588_v53  ;;  %v2836_v13 = vmul.f32 %v2835_v57, %v5588_v53 }
 0x556   : > { %v2848_v41 = vadd.f32 0.112945676, %v2847_v1  ;;  %v2837_v47 = vadd.f32 0.05243302, %v2836_v13 }
 0x557   : > { %v3513_v21 = vpop.eup %3512 }
 0x558   : > { %v3014_v39 = vmul.f32 %v3513_v21, %v3012_v20  ;;  %v2849_v33 = vmul.f32 %v2848_v41, %v5588_v53  ;;  %vm3019_vm12 = vweird.f32 %v3513_v21  ;;  %v2838_v28 = vmul.f32 %v2837_v47, %v5588_v53 }
 0x559   : > { %vm3020_vm14 = vmor %vm3018_vm13, %vm3019_vm12 }
 0x55a   : > { %v3015_v40 = vsub.f32 1.0, %v3014_v39  ;;  %v2850_v37 = vadd.f32 0.4994258, %v2849_v33  ;;  %v2839_v19 = vadd.f32 0.18741608, %v2838_v28 }
 0x55c   : > { %v3016_v2 = vmul.f32 %v3513_v21, %v3015_v40  ;;  %v2851_v32 = vmul.f32 %v2850_v37, %v5588_v53  ;;  %v2840_v31 = vmul.f32 %v2839_v19, %v5588_v53 }
 0x55e   : > { %v3017_v51 = vadd.f32 %v3513_v21, %v3016_v2  ;;  %v2852_v5 = vadd.f32 1.0, %v2851_v32  ;;  %v2841_v52 = vadd.f32 1.1283791, %v2840_v31 }
 0x560   : > { %v3021_v29 = vsel %vm3020_vm14, %v3513_v21, %v3017_v51  ;;  %3514 = vrcp.f32 %v2852_v5  ;;  %v2864_v62 = vand.u32 2147483648, %v2852_v5  ;;  %v2862_v20 = vand.u32 2147483647, %v2852_v5 }
 0x561   : > { %v3026_v43 = vsel %vm3023_vm15, %v3025_v15, %v3021_v29  ;;  %vm2858_vm0 = vweird.f32 %v2852_v5  ;;  %v2842_v35 = vmul.f32 %v2841_v52, %v5579_v8 }
 0x562   : > { %v3027_v38 = vmul.f32 %v3026_v43, %v3002_v56  ;;  %v2865_v48 = vor.u32 1.1754944e-38, %v2864_v62  ;;  %vm2863_vm3 = vcmp.eq.f32.partialorder %v2862_v20, 8.507059e+37 }
 0x564   : > { %v3301_v50 = vclamps-f32 %v3027_v38, 1.0 }
 0x566   : > { %v3045_v24 = vadd.f32 1.0, %v3301_v50  ;;  %v3515_v11 = vpop.eup %3514 }
 0x567   : > { %v2854_v26 = vmul.f32 %v3515_v11, %v2852_v5  ;;  %vm2859_vm1 = vweird.f32 %v3515_v11 }
 0x568   : > { %v3061_v34 = vmul.f32 %v3045_v24, %v2373_v44  ;;  %vm2860_vm2 = vmor %vm2858_vm0, %vm2859_vm1 }
 0x569   : > { %v2855_v55 = vsub.f32 1.0, %v2854_v26 }
 0x56a   : > { %v3077_v12 = vadd.f32 %v3061_v34, %v5709_v9 }
 0x56b   : > { %v2856_v30 = vmul.f32 %v3515_v11, %v2855_v55 }
 0x56c   : > { %3093 = vst [vmem:[%s5652_s11 + $0x78] sm:$0xff] %v3077_v12 }
 0x56d   : > { %v2857_v42 = vadd.f32 %v3515_v11, %v2856_v30 }
 0x56f   : > { %v2861_v18 = vsel %vm2860_vm2, %v3515_v11, %v2857_v42 }
 0x570   : > { %v2866_v53 = vsel %vm2863_vm3, %v2865_v48, %v2861_v18 }
 0x571   : > { %v2867_v36 = vmul.f32 %v2866_v53, %v2842_v35 }
 0x573   : > { %v3297_v63 = vclamps-f32 %v2867_v36, 1.0 }
 0x575   : > { %v3041_v0 = vadd.f32 1.0, %v3297_v63 }
 0x577   : > { %v3057_v10 = vmul.f32 %v3041_v0, %v2369_v60 }
 0x579   : > { %v3073_v3 = vadd.f32 %v3057_v10, %v5710_v27 }
 0x57b   : > { %3089 = vst [vmem:[%s5652_s11 + $0x58] sm:$0xff] %v3073_v3 }
 0x57c PF: > { %s21_s19 = sadd.s32 1, %s3543_s19   ;;  %s5711_s17 = sld [smem:[#allocation2_spill]] }
 0x57d   : > { %p18_p6 = scmp.ge.s32.totalorder %s21_s19, 6   ;;  %s5712_s18 = sld [smem:[#allocation3_spill]] }
 0x57f   :  { %20 = sbr.rel (!%p18_p6) target bundleno = 2 (0x2), region = 128 }

</bundles_post_ra>
